<compile_context>
chip_gen: v7x
topology: tpu7x:2x2x1
jax: 0.10.0
libtpu: 0.0.40
codegen_flags: <defaults>
</compile_context>

<pallas_src>
import numpy as np

import jax
import jax.numpy as jnp
from jax import lax
from jax.experimental import pallas as pl
from jax.experimental.pallas import tpu as pltpu


# ---------------------------------------------------------------------------
# Fixed geometry implied by the PyTorch module (32x32x3 input -> 16*5*5 = 400)
# ---------------------------------------------------------------------------
H0, C0 = 32, 3          # input spatial / channels
C1, K1 = 6, 5           # conv1: 3 -> 6, 5x5
C2, K2 = 16, 5          # conv2: 6 -> 16, 5x5
H1 = H0 - K1 + 1        # 28   (conv1 output spatial)
P1 = H1 // 2            # 14   (after pool1)
H2 = P1 - K2 + 1        # 10   (conv2 output spatial)
P2 = H2 // 2            # 5    (after pool2)
F1, F2, F3 = 120, 84, 10
OUT_PAD = 128           # lane-dense padded logits width
DEFAULT_B_TILE = 32     # images per grid step (>=26 fills conv2 M on v6e/v7x)


def _round_up(n, m):
    return ((n + m - 1) // m) * m


# ---------------------------------------------------------------------------
# Deterministic parameter init (PyTorch layouts: conv (O,I,KH,KW), fc (out,in))
# ---------------------------------------------------------------------------
def init_params(key):
    ks = jax.random.split(key, 10)

    def w(k, shape, fan_in):
        return jax.random.normal(k, shape, jnp.float32) / jnp.sqrt(fan_in)

    return {
        "conv1_w": w(ks[0], (C1, C0, K1, K1), C0 * K1 * K1),
        "conv1_b": w(ks[1], (C1,), C0 * K1 * K1),
        "conv2_w": w(ks[2], (C2, C1, K2, K2), C1 * K2 * K2),
        "conv2_b": w(ks[3], (C2,), C1 * K2 * K2),
        "fc1_w": w(ks[4], (F1, C2 * P2 * P2), C2 * P2 * P2),
        "fc1_b": w(ks[5], (F1,), C2 * P2 * P2),
        "fc2_w": w(ks[6], (F2, F1), F1),
        "fc2_b": w(ks[7], (F2,), F1),
        "fc3_w": w(ks[8], (F3, F2), F2),
        "fc3_b": w(ks[9], (F3,), F2),
    }


# ---------------------------------------------------------------------------
# One-time weight packing (host-side, outside the forward)
# ---------------------------------------------------------------------------
def _conv_band_matrix(w, w_in):
    """(Cout,Cin,KH,KW) -> M[kh, (ow+kw)*Cin+ci, ow*Cout+co] = w[co,ci,kh,kw].

    With activations laid out as A[row, w*Cin+ci], the conv is
        out[row_oh, ow*Cout+co] = sum_kh (A[row_{oh+kh}, :] @ M[kh])[ow*Cout+co]
    i.e. KH row-shifted plain matmuls (implicit im2col).
    """
    cout, cin, khs, kws = w.shape
    ow_n = w_in - kws + 1
    wn = np.asarray(w, np.float32)
    m = np.zeros((khs, w_in * cin, ow_n * cout), np.float32)
    for kw in range(kws):
        blk = np.transpose(wn[:, :, :, kw], (2, 1, 0))        # (KH, Cin, Cout)
        for ow in range(ow_n):
            wc = ow + kw
            m[:, wc * cin:(wc + 1) * cin, ow * cout:(ow + 1) * cout] = blk
    return m


def _pool_col_select(ow, c):
    """0/1 matrices selecting even/odd 'w' groups (lane direction) of 2x2 pool."""
    owp = ow // 2
    se = np.zeros((ow * c, owp * c), np.float32)
    so = np.zeros((ow * c, owp * c), np.float32)
    for p in range(owp):
        for cc in range(c):
            se[(2 * p) * c + cc, p * c + cc] = 1.0
            so[(2 * p + 1) * c + cc, p * c + cc] = 1.0
    return se, so


def prepare_kernel_params(params):
    """Pack all weights once: banded conv matrices, tiled biases, bf16 pool
    selection matrices, layout-permuted / pre-transposed FC weights, and a
    lane-dense (128-wide) padded fc3."""
    bf = jnp.bfloat16
    m1 = jnp.asarray(_conv_band_matrix(params["conv1_w"], H0), bf)   # (5, 96, 168)
    m2 = jnp.asarray(_conv_band_matrix(params["conv2_w"], P1), bf)   # (5, 84, 160)
    b1 = jnp.asarray(np.tile(np.asarray(params["conv1_b"], np.float32), H1)[None, :])
    b2 = jnp.asarray(np.tile(np.asarray(params["conv2_b"], np.float32), H2)[None, :])
    # Pool selection matrices: exact 0/1 values -> bf16 is lossless.
    s1e, s1o = (jnp.asarray(s, bf) for s in _pool_col_select(H1, C1))  # (168, 84)
    s2e, s2o = (jnp.asarray(s, bf) for s in _pool_col_select(H2, C2))  # (160, 80)

    # fc1: torch flatten index is c*25 + h*5 + w; ours is row h, column w*16+c.
    w1 = np.asarray(params["fc1_w"], np.float32).reshape(F1, C2, P2, P2)
    w1 = np.transpose(w1, (2, 3, 1, 0)).reshape(P2, P2 * C2, F1)       # (5, 80, 120)
    w1 = jnp.asarray(w1, bf)
    fb1 = params["fc1_b"][None, :].astype(jnp.float32)
    w2 = params["fc2_w"].T.astype(bf)                                  # (120, 84)
    fb2 = params["fc2_b"][None, :].astype(jnp.float32)

    # fc3 padded to 128 output lanes -> unmasked, lane-dense final store.
    w3p = np.zeros((F2, OUT_PAD), np.float32)
    w3p[:, :F3] = np.asarray(params["fc3_w"], np.float32).T
    w3 = jnp.asarray(w3p, bf)                                          # (84, 128)
    fb3p = np.zeros((1, OUT_PAD), np.float32)
    fb3p[0, :F3] = np.asarray(params["fc3_b"], np.float32)
    fb3 = jnp.asarray(fb3p)

    return (m1, b1, s1e, s1o, m2, b2, s2e, s2o, w1, fb1, w2, fb2, w3, fb3)


# ---------------------------------------------------------------------------
# In-kernel helpers
# ---------------------------------------------------------------------------
def _row_pool_max(x2d, n_out, bt):
    """2x1 max over 'h' pairs when rows are interleaved as h*bt + b.

    Pure static slices + elementwise max + one sublane concat (all blocks are
    bt rows, bt is a multiple of 8 -> tile-aligned copies, no matmul)."""
    blocks = [
        jnp.maximum(x2d[(2 * p) * bt:(2 * p + 1) * bt, :],
                    x2d[(2 * p + 1) * bt:(2 * p + 2) * bt, :])
        for p in range(n_out)
    ]
    return jnp.concatenate(blocks, axis=0)


# ---------------------------------------------------------------------------
# The fused kernel: one grid step = B_TILE images, everything VMEM-resident.
# Activation layout: rows = h * B_TILE + b_local, cols = w * C + c.
# ---------------------------------------------------------------------------
def _lenet_kernel(x_ref, m1_ref, b1_ref, s1e_ref, s1o_ref,
                  m2_ref, b2_ref, s2e_ref, s2o_ref,
                  w1_ref, fb1_ref, w2_ref, fb2_ref, w3_ref, fb3_ref,
                  out_ref):
    f32, bf16 = jnp.float32, jnp.bfloat16
    bt = out_ref.shape[0]                       # images per grid step (static)

    a = x_ref[...]                              # (32*bt, 96) bf16

    # ---- conv1 + bias + ReLU: 5 row-shifted banded matmuls, M = 28*bt -------
    acc = jnp.dot(a[:H1 * bt, :], m1_ref[0], preferred_element_type=f32)
    for kh in range(1, K1):
        acc += jnp.dot(a[kh * bt:(kh + H1) * bt, :], m1_ref[kh],
                       preferred_element_type=f32)
    y1 = jnp.maximum(acc + b1_ref[...], 0.0).astype(bf16)      # (28*bt, 168)

    # ---- maxpool1: w-direction via bf16 selection matmuls, h-direction via
    #      tile-aligned slice+max (selection is exact, so bf16 is lossless) ---
    cmax = jnp.maximum(
        jnp.dot(y1, s1e_ref[...], preferred_element_type=f32),
        jnp.dot(y1, s1o_ref[...], preferred_element_type=f32)).astype(bf16)
    p1 = _row_pool_max(cmax, P1, bt)                           # (14*bt, 84)

    # ---- conv2 + bias + ReLU: M = 10*bt -------------------------------------
    acc = jnp.dot(p1[:H2 * bt, :], m2_ref[0], preferred_element_type=f32)
    for kh in range(1, K2):
        acc += jnp.dot(p1[kh * bt:(kh + H2) * bt, :], m2_ref[kh],
                       preferred_element_type=f32)
    y2 = jnp.maximum(acc + b2_ref[...], 0.0).astype(bf16)      # (10*bt, 160)

    # ---- maxpool2 ------------------------------------------------------------
    cmax = jnp.maximum(
        jnp.dot(y2, s2e_ref[...], preferred_element_type=f32),
        jnp.dot(y2, s2o_ref[...], preferred_element_type=f32)).astype(bf16)
    p2 = _row_pool_max(cmax, P2, bt)                           # (5*bt, 80)

    # ---- fc1 + ReLU: 5 accumulating matmuls with M = bt ----------------------
    h = jnp.dot(p2[:bt, :], w1_ref[0], preferred_element_type=f32)
    for r in range(1, P2):
        h += jnp.dot(p2[r * bt:(r + 1) * bt, :], w1_ref[r],
                     preferred_element_type=f32)
    h = jnp.maximum(h + fb1_ref[...], 0.0).astype(bf16)        # (bt, 120)

    # ---- fc2 + ReLU, fc3 (output pre-padded to 128 lanes -> unmasked store) --
    h = jnp.maximum(jnp.dot(h, w2_ref[...], preferred_element_type=f32)
                    + fb2_ref[...], 0.0).astype(bf16)          # (bt, 84)
    out_ref[...] = (jnp.dot(h, w3_ref[...], preferred_element_type=f32)
                    + fb3_ref[...])                            # (bt, 128)


def _const_index_map(ndim):
    return lambda i, _n=ndim: (0,) * _n


# ---------------------------------------------------------------------------
# Wrapper
# ---------------------------------------------------------------------------
def net_forward(params, x, kernel_params=None, b_tile=DEFAULT_B_TILE):
    """x: (B, 3, 32, 32) NCHW float32 -> logits (B, 10)."""
    if kernel_params is None:
        kernel_params = prepare_kernel_params(params)   # requires concrete params

    b = x.shape[0]
    # Tile size: multiple of 8 (sublane tile), no bigger than the padded batch.
    bt = _round_up(min(b_tile, _round_up(b, 8)), 8)
    bp = _round_up(b, bt)
    n_tiles = bp // bt

    # One cheap layout prep per batch (emitted directly in bf16):
    # NCHW -> per-tile sublane-interleaved layout rows = h*bt + b_local,
    # cols = w*C + c.
    xk = x.astype(jnp.bfloat16)
    if bp != b:
        xk = jnp.pad(xk, ((0, bp - b), (0, 0), (0, 0), (0, 0)))
    xk = xk.reshape(n_tiles, bt, C0, H0, H0)
    xk = jnp.transpose(xk, (0, 3, 1, 4, 2))               # (tile, h, b, w, c)
    xk = xk.reshape(n_tiles * H0 * bt, H0 * C0)            # (tiles*32*bt, 96)

    in_specs = [pl.BlockSpec((H0 * bt, H0 * C0), lambda i: (i, 0))]
    in_specs += [pl.BlockSpec(arr.shape, _const_index_map(arr.ndim))
                 for arr in kernel_params]

    out = pl.pallas_call(
        _lenet_kernel,
        out_shape=jax.ShapeDtypeStruct((bp, OUT_PAD), jnp.float32),
        grid=(n_tiles,),
        in_specs=in_specs,
        out_specs=pl.BlockSpec((bt, OUT_PAD), lambda i: (i, 0)),
        compiler_params=pltpu.CompilerParams(
            dimension_semantics=("parallel",),
        ),
    )(xk, *kernel_params)

    return out[:b, :F3]


# ---------------------------------------------------------------------------
# Pure-JAX reference (matches the PyTorch forward) for a sanity check
# ---------------------------------------------------------------------------
def net_forward_reference(params, x):
    def conv(z, w, bias):
        out = lax.conv_general_dilated(
            z, w, window_strides=(1, 1), padding="VALID",
            dimension_numbers=("NCHW", "OIHW", "NCHW"))
        return jax.nn.relu(out + bias.reshape(1, -1, 1, 1))

    def pool(z):
        return lax.reduce_window(z, -jnp.inf, lax.max,
                                 (1, 1, 2, 2), (1, 1, 2, 2), "VALID")

    z = pool(conv(x, params["conv1_w"], params["conv1_b"]))
    z = pool(conv(z, params["conv2_w"], params["conv2_b"]))
    z = z.reshape(z.shape[0], -1)                       # NCHW flatten == .view
    z = jax.nn.relu(z @ params["fc1_w"].T + params["fc1_b"])
    z = jax.nn.relu(z @ params["fc2_w"].T + params["fc2_b"])
    return z @ params["fc3_w"].T + params["fc3_b"]


if __name__ == "__main__":
    key = jax.random.PRNGKey(0)
    pkey, xkey = jax.random.split(key)
    params = init_params(pkey)
    kparams = prepare_kernel_params(params)
    x = jax.random.normal(xkey, (2, 3, 32, 32), jnp.float32)

    fwd = jax.jit(lambda xx: net_forward(params, xx, kparams))
    out = jax.block_until_ready(fwd(x))

    assert out.shape == (2, 10), out.shape
    assert bool(jnp.all(jnp.isfinite(out)))

    # Loose tolerance: inputs and all matmul operands run in bf16 (f32 acc).
    ref = net_forward_reference(params, x)
    max_err = float(jnp.max(jnp.abs(out - ref)))
    assert max_err < 2e-1, f"mismatch vs reference: max abs err {max_err}"

    print("KERNEL_OK")
</pallas_src>

<mosaic_0001>
module attributes {stable_mosaic.version = 11 : i64} {
  func.func @_lenet_kernel(%arg0: i32, %arg1: memref<256x96xbf16, #tpu.memory_space<vmem>>, %arg2: memref<5x96x168xbf16, #tpu.memory_space<vmem>>, %arg3: memref<1x168xf32, #tpu.memory_space<vmem>>, %arg4: memref<168x84xbf16, #tpu.memory_space<vmem>>, %arg5: memref<168x84xbf16, #tpu.memory_space<vmem>>, %arg6: memref<5x84x160xbf16, #tpu.memory_space<vmem>>, %arg7: memref<1x160xf32, #tpu.memory_space<vmem>>, %arg8: memref<160x80xbf16, #tpu.memory_space<vmem>>, %arg9: memref<160x80xbf16, #tpu.memory_space<vmem>>, %arg10: memref<5x80x120xbf16, #tpu.memory_space<vmem>>, %arg11: memref<1x120xf32, #tpu.memory_space<vmem>>, %arg12: memref<120x84xbf16, #tpu.memory_space<vmem>>, %arg13: memref<1x84xf32, #tpu.memory_space<vmem>>, %arg14: memref<84x128xbf16, #tpu.memory_space<vmem>>, %arg15: memref<1x128xf32, #tpu.memory_space<vmem>>, %arg16: memref<8x128xf32, #tpu.memory_space<vmem>>) attributes {dimension_semantics = [#tpu.dimension_semantics<parallel>], iteration_bounds = array<i64: 1>, scalar_prefetch = 0 : i64, scratch_operands = 0 : i64, tpu.core_type = #tpu.core_type<tc>, window_params = [{transform_indices = @transform_0, window_bounds = array<i64: 256, 96>}, {pipeline_mode = #tpu.pipeline_mode<synchronous>, transform_indices = @transform_1, window_bounds = array<i64: 5, 96, 168>}, {pipeline_mode = #tpu.pipeline_mode<synchronous>, transform_indices = @transform_2, window_bounds = array<i64: 1, 168>}, {pipeline_mode = #tpu.pipeline_mode<synchronous>, transform_indices = @transform_3, window_bounds = array<i64: 168, 84>}, {pipeline_mode = #tpu.pipeline_mode<synchronous>, transform_indices = @transform_4, window_bounds = array<i64: 168, 84>}, {pipeline_mode = #tpu.pipeline_mode<synchronous>, transform_indices = @transform_5, window_bounds = array<i64: 5, 84, 160>}, {pipeline_mode = #tpu.pipeline_mode<synchronous>, transform_indices = @transform_6, window_bounds = array<i64: 1, 160>}, {pipeline_mode = #tpu.pipeline_mode<synchronous>, transform_indices = @transform_7, window_bounds = array<i64: 160, 80>}, {pipeline_mode = #tpu.pipeline_mode<synchronous>, transform_indices = @transform_8, window_bounds = array<i64: 160, 80>}, {pipeline_mode = #tpu.pipeline_mode<synchronous>, transform_indices = @transform_9, window_bounds = array<i64: 5, 80, 120>}, {pipeline_mode = #tpu.pipeline_mode<synchronous>, transform_indices = @transform_10, window_bounds = array<i64: 1, 120>}, {pipeline_mode = #tpu.pipeline_mode<synchronous>, transform_indices = @transform_11, window_bounds = array<i64: 120, 84>}, {pipeline_mode = #tpu.pipeline_mode<synchronous>, transform_indices = @transform_12, window_bounds = array<i64: 1, 84>}, {pipeline_mode = #tpu.pipeline_mode<synchronous>, transform_indices = @transform_13, window_bounds = array<i64: 84, 128>}, {pipeline_mode = #tpu.pipeline_mode<synchronous>, transform_indices = @transform_14, window_bounds = array<i64: 1, 128>}, {transform_indices = @transform_15, window_bounds = array<i64: 8, 128>}]} {
    %c0 = arith.constant 0 : index
    %c0_0 = arith.constant 0 : index
    %0 = vector.load %arg1[%c0, %c0_0] : memref<256x96xbf16, #tpu.memory_space<vmem>>, vector<256x96xbf16>
    %1 = vector.extract_strided_slice %0 {offsets = [0, 0], sizes = [224, 96], strides = [1, 1]} : vector<256x96xbf16> to vector<224x96xbf16>
    %c0_1 = arith.constant 0 : index
    %c0_2 = arith.constant 0 : index
    %c0_3 = arith.constant 0 : index
    %2 = vector.load %arg2[%c0_1, %c0_2, %c0_3] : memref<5x96x168xbf16, #tpu.memory_space<vmem>>, vector<1x96x168xbf16>
    %3 = vector.shape_cast %2 : vector<1x96x168xbf16> to vector<96x168xbf16>
    %cst = arith.constant dense<0.000000e+00> : vector<224x168xf32>
    %4 = tpu.matmul %1, %3, %cst {dimension_numbers = #tpu.dot_dimension_numbers<[1], [0], [0], [1], [0, 0, 1, 1], [], []>} : vector<224x96xbf16>, vector<96x168xbf16>, vector<224x168xf32> -> vector<224x168xf32>
    %5 = vector.extract_strided_slice %0 {offsets = [8, 0], sizes = [224, 96], strides = [1, 1]} : vector<256x96xbf16> to vector<224x96xbf16>
    %c1 = arith.constant 1 : index
    %c0_4 = arith.constant 0 : index
    %c0_5 = arith.constant 0 : index
    %6 = vector.load %arg2[%c1, %c0_4, %c0_5] : memref<5x96x168xbf16, #tpu.memory_space<vmem>>, vector<1x96x168xbf16>
    %7 = vector.shape_cast %6 : vector<1x96x168xbf16> to vector<96x168xbf16>
    %cst_6 = arith.constant dense<0.000000e+00> : vector<224x168xf32>
    %8 = tpu.matmul %5, %7, %cst_6 {dimension_numbers = #tpu.dot_dimension_numbers<[1], [0], [0], [1], [0, 0, 1, 1], [], []>} : vector<224x96xbf16>, vector<96x168xbf16>, vector<224x168xf32> -> vector<224x168xf32>
    %9 = arith.addf %4, %8 : vector<224x168xf32>
    %10 = vector.extract_strided_slice %0 {offsets = [16, 0], sizes = [224, 96], strides = [1, 1]} : vector<256x96xbf16> to vector<224x96xbf16>
    %c2 = arith.constant 2 : index
    %c0_7 = arith.constant 0 : index
    %c0_8 = arith.constant 0 : index
    %11 = vector.load %arg2[%c2, %c0_7, %c0_8] : memref<5x96x168xbf16, #tpu.memory_space<vmem>>, vector<1x96x168xbf16>
    %12 = vector.shape_cast %11 : vector<1x96x168xbf16> to vector<96x168xbf16>
    %cst_9 = arith.constant dense<0.000000e+00> : vector<224x168xf32>
    %13 = tpu.matmul %10, %12, %cst_9 {dimension_numbers = #tpu.dot_dimension_numbers<[1], [0], [0], [1], [0, 0, 1, 1], [], []>} : vector<224x96xbf16>, vector<96x168xbf16>, vector<224x168xf32> -> vector<224x168xf32>
    %14 = arith.addf %9, %13 : vector<224x168xf32>
    %15 = vector.extract_strided_slice %0 {offsets = [24, 0], sizes = [224, 96], strides = [1, 1]} : vector<256x96xbf16> to vector<224x96xbf16>
    %c3 = arith.constant 3 : index
    %c0_10 = arith.constant 0 : index
    %c0_11 = arith.constant 0 : index
    %16 = vector.load %arg2[%c3, %c0_10, %c0_11] : memref<5x96x168xbf16, #tpu.memory_space<vmem>>, vector<1x96x168xbf16>
    %17 = vector.shape_cast %16 : vector<1x96x168xbf16> to vector<96x168xbf16>
    %cst_12 = arith.constant dense<0.000000e+00> : vector<224x168xf32>
    %18 = tpu.matmul %15, %17, %cst_12 {dimension_numbers = #tpu.dot_dimension_numbers<[1], [0], [0], [1], [0, 0, 1, 1], [], []>} : vector<224x96xbf16>, vector<96x168xbf16>, vector<224x168xf32> -> vector<224x168xf32>
    %19 = arith.addf %14, %18 : vector<224x168xf32>
    %20 = vector.extract_strided_slice %0 {offsets = [32, 0], sizes = [224, 96], strides = [1, 1]} : vector<256x96xbf16> to vector<224x96xbf16>
    %c4 = arith.constant 4 : index
    %c0_13 = arith.constant 0 : index
    %c0_14 = arith.constant 0 : index
    %21 = vector.load %arg2[%c4, %c0_13, %c0_14] : memref<5x96x168xbf16, #tpu.memory_space<vmem>>, vector<1x96x168xbf16>
    %22 = vector.shape_cast %21 : vector<1x96x168xbf16> to vector<96x168xbf16>
    %cst_15 = arith.constant dense<0.000000e+00> : vector<224x168xf32>
    %23 = tpu.matmul %20, %22, %cst_15 {dimension_numbers = #tpu.dot_dimension_numbers<[1], [0], [0], [1], [0, 0, 1, 1], [], []>} : vector<224x96xbf16>, vector<96x168xbf16>, vector<224x168xf32> -> vector<224x168xf32>
    %24 = arith.addf %19, %23 : vector<224x168xf32>
    %c0_16 = arith.constant 0 : index
    %c0_17 = arith.constant 0 : index
    %25 = vector.load %arg3[%c0_16, %c0_17] : memref<1x168xf32, #tpu.memory_space<vmem>>, vector<1x168xf32>
    %26 = vector.broadcast %25 : vector<1x168xf32> to vector<224x168xf32>
    %27 = arith.addf %24, %26 : vector<224x168xf32>
    %cst_18 = arith.constant 0.000000e+00 : f32
    %28 = vector.broadcast %cst_18 : f32 to vector<224x168xf32>
    %29 = arith.maximumf %27, %28 : vector<224x168xf32>
    %30 = arith.truncf %29 : vector<224x168xf32> to vector<224x168xbf16>
    %c0_19 = arith.constant 0 : index
    %c0_20 = arith.constant 0 : index
    %31 = vector.load %arg4[%c0_19, %c0_20] : memref<168x84xbf16, #tpu.memory_space<vmem>>, vector<168x84xbf16>
    %cst_21 = arith.constant dense<0.000000e+00> : vector<224x84xf32>
    %32 = tpu.matmul %30, %31, %cst_21 {dimension_numbers = #tpu.dot_dimension_numbers<[1], [0], [0], [1], [0, 0, 1, 1], [], []>} : vector<224x168xbf16>, vector<168x84xbf16>, vector<224x84xf32> -> vector<224x84xf32>
    %c0_22 = arith.constant 0 : index
    %c0_23 = arith.constant 0 : index
    %33 = vector.load %arg5[%c0_22, %c0_23] : memref<168x84xbf16, #tpu.memory_space<vmem>>, vector<168x84xbf16>
    %cst_24 = arith.constant dense<0.000000e+00> : vector<224x84xf32>
    %34 = tpu.matmul %30, %33, %cst_24 {dimension_numbers = #tpu.dot_dimension_numbers<[1], [0], [0], [1], [0, 0, 1, 1], [], []>} : vector<224x168xbf16>, vector<168x84xbf16>, vector<224x84xf32> -> vector<224x84xf32>
    %35 = arith.maximumf %32, %34 : vector<224x84xf32>
    %36 = arith.truncf %35 : vector<224x84xf32> to vector<224x84xbf16>
    %37 = vector.extract_strided_slice %36 {offsets = [0, 0], sizes = [8, 84], strides = [1, 1]} : vector<224x84xbf16> to vector<8x84xbf16>
    %38 = vector.extract_strided_slice %36 {offsets = [8, 0], sizes = [8, 84], strides = [1, 1]} : vector<224x84xbf16> to vector<8x84xbf16>
    %39 = arith.maximumf %37, %38 : vector<8x84xbf16>
    %40 = vector.extract_strided_slice %36 {offsets = [16, 0], sizes = [8, 84], strides = [1, 1]} : vector<224x84xbf16> to vector<8x84xbf16>
    %41 = vector.extract_strided_slice %36 {offsets = [24, 0], sizes = [8, 84], strides = [1, 1]} : vector<224x84xbf16> to vector<8x84xbf16>
    %42 = arith.maximumf %40, %41 : vector<8x84xbf16>
    %43 = vector.extract_strided_slice %36 {offsets = [32, 0], sizes = [8, 84], strides = [1, 1]} : vector<224x84xbf16> to vector<8x84xbf16>
    %44 = vector.extract_strided_slice %36 {offsets = [40, 0], sizes = [8, 84], strides = [1, 1]} : vector<224x84xbf16> to vector<8x84xbf16>
    %45 = arith.maximumf %43, %44 : vector<8x84xbf16>
    %46 = vector.extract_strided_slice %36 {offsets = [48, 0], sizes = [8, 84], strides = [1, 1]} : vector<224x84xbf16> to vector<8x84xbf16>
    %47 = vector.extract_strided_slice %36 {offsets = [56, 0], sizes = [8, 84], strides = [1, 1]} : vector<224x84xbf16> to vector<8x84xbf16>
    %48 = arith.maximumf %46, %47 : vector<8x84xbf16>
    %49 = vector.extract_strided_slice %36 {offsets = [64, 0], sizes = [8, 84], strides = [1, 1]} : vector<224x84xbf16> to vector<8x84xbf16>
    %50 = vector.extract_strided_slice %36 {offsets = [72, 0], sizes = [8, 84], strides = [1, 1]} : vector<224x84xbf16> to vector<8x84xbf16>
    %51 = arith.maximumf %49, %50 : vector<8x84xbf16>
    %52 = vector.extract_strided_slice %36 {offsets = [80, 0], sizes = [8, 84], strides = [1, 1]} : vector<224x84xbf16> to vector<8x84xbf16>
    %53 = vector.extract_strided_slice %36 {offsets = [88, 0], sizes = [8, 84], strides = [1, 1]} : vector<224x84xbf16> to vector<8x84xbf16>
    %54 = arith.maximumf %52, %53 : vector<8x84xbf16>
    %55 = vector.extract_strided_slice %36 {offsets = [96, 0], sizes = [8, 84], strides = [1, 1]} : vector<224x84xbf16> to vector<8x84xbf16>
    %56 = vector.extract_strided_slice %36 {offsets = [104, 0], sizes = [8, 84], strides = [1, 1]} : vector<224x84xbf16> to vector<8x84xbf16>
    %57 = arith.maximumf %55, %56 : vector<8x84xbf16>
    %58 = vector.extract_strided_slice %36 {offsets = [112, 0], sizes = [8, 84], strides = [1, 1]} : vector<224x84xbf16> to vector<8x84xbf16>
    %59 = vector.extract_strided_slice %36 {offsets = [120, 0], sizes = [8, 84], strides = [1, 1]} : vector<224x84xbf16> to vector<8x84xbf16>
    %60 = arith.maximumf %58, %59 : vector<8x84xbf16>
    %61 = vector.extract_strided_slice %36 {offsets = [128, 0], sizes = [8, 84], strides = [1, 1]} : vector<224x84xbf16> to vector<8x84xbf16>
    %62 = vector.extract_strided_slice %36 {offsets = [136, 0], sizes = [8, 84], strides = [1, 1]} : vector<224x84xbf16> to vector<8x84xbf16>
    %63 = arith.maximumf %61, %62 : vector<8x84xbf16>
    %64 = vector.extract_strided_slice %36 {offsets = [144, 0], sizes = [8, 84], strides = [1, 1]} : vector<224x84xbf16> to vector<8x84xbf16>
    %65 = vector.extract_strided_slice %36 {offsets = [152, 0], sizes = [8, 84], strides = [1, 1]} : vector<224x84xbf16> to vector<8x84xbf16>
    %66 = arith.maximumf %64, %65 : vector<8x84xbf16>
    %67 = vector.extract_strided_slice %36 {offsets = [160, 0], sizes = [8, 84], strides = [1, 1]} : vector<224x84xbf16> to vector<8x84xbf16>
    %68 = vector.extract_strided_slice %36 {offsets = [168, 0], sizes = [8, 84], strides = [1, 1]} : vector<224x84xbf16> to vector<8x84xbf16>
    %69 = arith.maximumf %67, %68 : vector<8x84xbf16>
    %70 = vector.extract_strided_slice %36 {offsets = [176, 0], sizes = [8, 84], strides = [1, 1]} : vector<224x84xbf16> to vector<8x84xbf16>
    %71 = vector.extract_strided_slice %36 {offsets = [184, 0], sizes = [8, 84], strides = [1, 1]} : vector<224x84xbf16> to vector<8x84xbf16>
    %72 = arith.maximumf %70, %71 : vector<8x84xbf16>
    %73 = vector.extract_strided_slice %36 {offsets = [192, 0], sizes = [8, 84], strides = [1, 1]} : vector<224x84xbf16> to vector<8x84xbf16>
    %74 = vector.extract_strided_slice %36 {offsets = [200, 0], sizes = [8, 84], strides = [1, 1]} : vector<224x84xbf16> to vector<8x84xbf16>
    %75 = arith.maximumf %73, %74 : vector<8x84xbf16>
    %76 = vector.extract_strided_slice %36 {offsets = [208, 0], sizes = [8, 84], strides = [1, 1]} : vector<224x84xbf16> to vector<8x84xbf16>
    %77 = vector.extract_strided_slice %36 {offsets = [216, 0], sizes = [8, 84], strides = [1, 1]} : vector<224x84xbf16> to vector<8x84xbf16>
    %78 = arith.maximumf %76, %77 : vector<8x84xbf16>
    %79 = tpu.concatenate %39, %42, %45, %48, %51, %54, %57, %60, %63, %66, %69, %72, %75, %78 in 0 : vector<8x84xbf16>, vector<8x84xbf16>, vector<8x84xbf16>, vector<8x84xbf16>, vector<8x84xbf16>, vector<8x84xbf16>, vector<8x84xbf16>, vector<8x84xbf16>, vector<8x84xbf16>, vector<8x84xbf16>, vector<8x84xbf16>, vector<8x84xbf16>, vector<8x84xbf16>, vector<8x84xbf16> -> vector<112x84xbf16>
    %80 = vector.extract_strided_slice %79 {offsets = [0, 0], sizes = [80, 84], strides = [1, 1]} : vector<112x84xbf16> to vector<80x84xbf16>
    %c0_25 = arith.constant 0 : index
    %c0_26 = arith.constant 0 : index
    %c0_27 = arith.constant 0 : index
    %81 = vector.load %arg6[%c0_25, %c0_26, %c0_27] : memref<5x84x160xbf16, #tpu.memory_space<vmem>>, vector<1x84x160xbf16>
    %82 = vector.shape_cast %81 : vector<1x84x160xbf16> to vector<84x160xbf16>
    %cst_28 = arith.constant dense<0.000000e+00> : vector<80x160xf32>
    %83 = tpu.matmul %80, %82, %cst_28 {dimension_numbers = #tpu.dot_dimension_numbers<[1], [0], [0], [1], [0, 0, 1, 1], [], []>} : vector<80x84xbf16>, vector<84x160xbf16>, vector<80x160xf32> -> vector<80x160xf32>
    %84 = vector.extract_strided_slice %79 {offsets = [8, 0], sizes = [80, 84], strides = [1, 1]} : vector<112x84xbf16> to vector<80x84xbf16>
    %c1_29 = arith.constant 1 : index
    %c0_30 = arith.constant 0 : index
    %c0_31 = arith.constant 0 : index
    %85 = vector.load %arg6[%c1_29, %c0_30, %c0_31] : memref<5x84x160xbf16, #tpu.memory_space<vmem>>, vector<1x84x160xbf16>
    %86 = vector.shape_cast %85 : vector<1x84x160xbf16> to vector<84x160xbf16>
    %cst_32 = arith.constant dense<0.000000e+00> : vector<80x160xf32>
    %87 = tpu.matmul %84, %86, %cst_32 {dimension_numbers = #tpu.dot_dimension_numbers<[1], [0], [0], [1], [0, 0, 1, 1], [], []>} : vector<80x84xbf16>, vector<84x160xbf16>, vector<80x160xf32> -> vector<80x160xf32>
    %88 = arith.addf %83, %87 : vector<80x160xf32>
    %89 = vector.extract_strided_slice %79 {offsets = [16, 0], sizes = [80, 84], strides = [1, 1]} : vector<112x84xbf16> to vector<80x84xbf16>
    %c2_33 = arith.constant 2 : index
    %c0_34 = arith.constant 0 : index
    %c0_35 = arith.constant 0 : index
    %90 = vector.load %arg6[%c2_33, %c0_34, %c0_35] : memref<5x84x160xbf16, #tpu.memory_space<vmem>>, vector<1x84x160xbf16>
    %91 = vector.shape_cast %90 : vector<1x84x160xbf16> to vector<84x160xbf16>
    %cst_36 = arith.constant dense<0.000000e+00> : vector<80x160xf32>
    %92 = tpu.matmul %89, %91, %cst_36 {dimension_numbers = #tpu.dot_dimension_numbers<[1], [0], [0], [1], [0, 0, 1, 1], [], []>} : vector<80x84xbf16>, vector<84x160xbf16>, vector<80x160xf32> -> vector<80x160xf32>
    %93 = arith.addf %88, %92 : vector<80x160xf32>
    %94 = vector.extract_strided_slice %79 {offsets = [24, 0], sizes = [80, 84], strides = [1, 1]} : vector<112x84xbf16> to vector<80x84xbf16>
    %c3_37 = arith.constant 3 : index
    %c0_38 = arith.constant 0 : index
    %c0_39 = arith.constant 0 : index
    %95 = vector.load %arg6[%c3_37, %c0_38, %c0_39] : memref<5x84x160xbf16, #tpu.memory_space<vmem>>, vector<1x84x160xbf16>
    %96 = vector.shape_cast %95 : vector<1x84x160xbf16> to vector<84x160xbf16>
    %cst_40 = arith.constant dense<0.000000e+00> : vector<80x160xf32>
    %97 = tpu.matmul %94, %96, %cst_40 {dimension_numbers = #tpu.dot_dimension_numbers<[1], [0], [0], [1], [0, 0, 1, 1], [], []>} : vector<80x84xbf16>, vector<84x160xbf16>, vector<80x160xf32> -> vector<80x160xf32>
    %98 = arith.addf %93, %97 : vector<80x160xf32>
    %99 = vector.extract_strided_slice %79 {offsets = [32, 0], sizes = [80, 84], strides = [1, 1]} : vector<112x84xbf16> to vector<80x84xbf16>
    %c4_41 = arith.constant 4 : index
    %c0_42 = arith.constant 0 : index
    %c0_43 = arith.constant 0 : index
    %100 = vector.load %arg6[%c4_41, %c0_42, %c0_43] : memref<5x84x160xbf16, #tpu.memory_space<vmem>>, vector<1x84x160xbf16>
    %101 = vector.shape_cast %100 : vector<1x84x160xbf16> to vector<84x160xbf16>
    %cst_44 = arith.constant dense<0.000000e+00> : vector<80x160xf32>
    %102 = tpu.matmul %99, %101, %cst_44 {dimension_numbers = #tpu.dot_dimension_numbers<[1], [0], [0], [1], [0, 0, 1, 1], [], []>} : vector<80x84xbf16>, vector<84x160xbf16>, vector<80x160xf32> -> vector<80x160xf32>
    %103 = arith.addf %98, %102 : vector<80x160xf32>
    %c0_45 = arith.constant 0 : index
    %c0_46 = arith.constant 0 : index
    %104 = vector.load %arg7[%c0_45, %c0_46] : memref<1x160xf32, #tpu.memory_space<vmem>>, vector<1x160xf32>
    %105 = vector.broadcast %104 : vector<1x160xf32> to vector<80x160xf32>
    %106 = arith.addf %103, %105 : vector<80x160xf32>
    %cst_47 = arith.constant 0.000000e+00 : f32
    %107 = vector.broadcast %cst_47 : f32 to vector<80x160xf32>
    %108 = arith.maximumf %106, %107 : vector<80x160xf32>
    %109 = arith.truncf %108 : vector<80x160xf32> to vector<80x160xbf16>
    %c0_48 = arith.constant 0 : index
    %c0_49 = arith.constant 0 : index
    %110 = vector.load %arg8[%c0_48, %c0_49] : memref<160x80xbf16, #tpu.memory_space<vmem>>, vector<160x80xbf16>
    %cst_50 = arith.constant dense<0.000000e+00> : vector<80x80xf32>
    %111 = tpu.matmul %109, %110, %cst_50 {dimension_numbers = #tpu.dot_dimension_numbers<[1], [0], [0], [1], [0, 0, 1, 1], [], []>} : vector<80x160xbf16>, vector<160x80xbf16>, vector<80x80xf32> -> vector<80x80xf32>
    %c0_51 = arith.constant 0 : index
    %c0_52 = arith.constant 0 : index
    %112 = vector.load %arg9[%c0_51, %c0_52] : memref<160x80xbf16, #tpu.memory_space<vmem>>, vector<160x80xbf16>
    %cst_53 = arith.constant dense<0.000000e+00> : vector<80x80xf32>
    %113 = tpu.matmul %109, %112, %cst_53 {dimension_numbers = #tpu.dot_dimension_numbers<[1], [0], [0], [1], [0, 0, 1, 1], [], []>} : vector<80x160xbf16>, vector<160x80xbf16>, vector<80x80xf32> -> vector<80x80xf32>
    %114 = arith.maximumf %111, %113 : vector<80x80xf32>
    %115 = arith.truncf %114 : vector<80x80xf32> to vector<80x80xbf16>
    %116 = vector.extract_strided_slice %115 {offsets = [0, 0], sizes = [8, 80], strides = [1, 1]} : vector<80x80xbf16> to vector<8x80xbf16>
    %117 = vector.extract_strided_slice %115 {offsets = [8, 0], sizes = [8, 80], strides = [1, 1]} : vector<80x80xbf16> to vector<8x80xbf16>
    %118 = arith.maximumf %116, %117 : vector<8x80xbf16>
    %119 = vector.extract_strided_slice %115 {offsets = [16, 0], sizes = [8, 80], strides = [1, 1]} : vector<80x80xbf16> to vector<8x80xbf16>
    %120 = vector.extract_strided_slice %115 {offsets = [24, 0], sizes = [8, 80], strides = [1, 1]} : vector<80x80xbf16> to vector<8x80xbf16>
    %121 = arith.maximumf %119, %120 : vector<8x80xbf16>
    %122 = vector.extract_strided_slice %115 {offsets = [32, 0], sizes = [8, 80], strides = [1, 1]} : vector<80x80xbf16> to vector<8x80xbf16>
    %123 = vector.extract_strided_slice %115 {offsets = [40, 0], sizes = [8, 80], strides = [1, 1]} : vector<80x80xbf16> to vector<8x80xbf16>
    %124 = arith.maximumf %122, %123 : vector<8x80xbf16>
    %125 = vector.extract_strided_slice %115 {offsets = [48, 0], sizes = [8, 80], strides = [1, 1]} : vector<80x80xbf16> to vector<8x80xbf16>
    %126 = vector.extract_strided_slice %115 {offsets = [56, 0], sizes = [8, 80], strides = [1, 1]} : vector<80x80xbf16> to vector<8x80xbf16>
    %127 = arith.maximumf %125, %126 : vector<8x80xbf16>
    %128 = vector.extract_strided_slice %115 {offsets = [64, 0], sizes = [8, 80], strides = [1, 1]} : vector<80x80xbf16> to vector<8x80xbf16>
    %129 = vector.extract_strided_slice %115 {offsets = [72, 0], sizes = [8, 80], strides = [1, 1]} : vector<80x80xbf16> to vector<8x80xbf16>
    %130 = arith.maximumf %128, %129 : vector<8x80xbf16>
    %131 = tpu.concatenate %118, %121, %124, %127, %130 in 0 : vector<8x80xbf16>, vector<8x80xbf16>, vector<8x80xbf16>, vector<8x80xbf16>, vector<8x80xbf16> -> vector<40x80xbf16>
    %132 = vector.extract_strided_slice %131 {offsets = [0, 0], sizes = [8, 80], strides = [1, 1]} : vector<40x80xbf16> to vector<8x80xbf16>
    %c0_54 = arith.constant 0 : index
    %c0_55 = arith.constant 0 : index
    %c0_56 = arith.constant 0 : index
    %133 = vector.load %arg10[%c0_54, %c0_55, %c0_56] : memref<5x80x120xbf16, #tpu.memory_space<vmem>>, vector<1x80x120xbf16>
    %134 = vector.shape_cast %133 : vector<1x80x120xbf16> to vector<80x120xbf16>
    %cst_57 = arith.constant dense<0.000000e+00> : vector<8x120xf32>
    %135 = tpu.matmul %132, %134, %cst_57 {dimension_numbers = #tpu.dot_dimension_numbers<[1], [0], [0], [1], [0, 0, 1, 1], [], []>} : vector<8x80xbf16>, vector<80x120xbf16>, vector<8x120xf32> -> vector<8x120xf32>
    %136 = vector.extract_strided_slice %131 {offsets = [8, 0], sizes = [8, 80], strides = [1, 1]} : vector<40x80xbf16> to vector<8x80xbf16>
    %c1_58 = arith.constant 1 : index
    %c0_59 = arith.constant 0 : index
    %c0_60 = arith.constant 0 : index
    %137 = vector.load %arg10[%c1_58, %c0_59, %c0_60] : memref<5x80x120xbf16, #tpu.memory_space<vmem>>, vector<1x80x120xbf16>
    %138 = vector.shape_cast %137 : vector<1x80x120xbf16> to vector<80x120xbf16>
    %cst_61 = arith.constant dense<0.000000e+00> : vector<8x120xf32>
    %139 = tpu.matmul %136, %138, %cst_61 {dimension_numbers = #tpu.dot_dimension_numbers<[1], [0], [0], [1], [0, 0, 1, 1], [], []>} : vector<8x80xbf16>, vector<80x120xbf16>, vector<8x120xf32> -> vector<8x120xf32>
    %140 = arith.addf %135, %139 : vector<8x120xf32>
    %141 = vector.extract_strided_slice %131 {offsets = [16, 0], sizes = [8, 80], strides = [1, 1]} : vector<40x80xbf16> to vector<8x80xbf16>
    %c2_62 = arith.constant 2 : index
    %c0_63 = arith.constant 0 : index
    %c0_64 = arith.constant 0 : index
    %142 = vector.load %arg10[%c2_62, %c0_63, %c0_64] : memref<5x80x120xbf16, #tpu.memory_space<vmem>>, vector<1x80x120xbf16>
    %143 = vector.shape_cast %142 : vector<1x80x120xbf16> to vector<80x120xbf16>
    %cst_65 = arith.constant dense<0.000000e+00> : vector<8x120xf32>
    %144 = tpu.matmul %141, %143, %cst_65 {dimension_numbers = #tpu.dot_dimension_numbers<[1], [0], [0], [1], [0, 0, 1, 1], [], []>} : vector<8x80xbf16>, vector<80x120xbf16>, vector<8x120xf32> -> vector<8x120xf32>
    %145 = arith.addf %140, %144 : vector<8x120xf32>
    %146 = vector.extract_strided_slice %131 {offsets = [24, 0], sizes = [8, 80], strides = [1, 1]} : vector<40x80xbf16> to vector<8x80xbf16>
    %c3_66 = arith.constant 3 : index
    %c0_67 = arith.constant 0 : index
    %c0_68 = arith.constant 0 : index
    %147 = vector.load %arg10[%c3_66, %c0_67, %c0_68] : memref<5x80x120xbf16, #tpu.memory_space<vmem>>, vector<1x80x120xbf16>
    %148 = vector.shape_cast %147 : vector<1x80x120xbf16> to vector<80x120xbf16>
    %cst_69 = arith.constant dense<0.000000e+00> : vector<8x120xf32>
    %149 = tpu.matmul %146, %148, %cst_69 {dimension_numbers = #tpu.dot_dimension_numbers<[1], [0], [0], [1], [0, 0, 1, 1], [], []>} : vector<8x80xbf16>, vector<80x120xbf16>, vector<8x120xf32> -> vector<8x120xf32>
    %150 = arith.addf %145, %149 : vector<8x120xf32>
    %151 = vector.extract_strided_slice %131 {offsets = [32, 0], sizes = [8, 80], strides = [1, 1]} : vector<40x80xbf16> to vector<8x80xbf16>
    %c4_70 = arith.constant 4 : index
    %c0_71 = arith.constant 0 : index
    %c0_72 = arith.constant 0 : index
    %152 = vector.load %arg10[%c4_70, %c0_71, %c0_72] : memref<5x80x120xbf16, #tpu.memory_space<vmem>>, vector<1x80x120xbf16>
    %153 = vector.shape_cast %152 : vector<1x80x120xbf16> to vector<80x120xbf16>
    %cst_73 = arith.constant dense<0.000000e+00> : vector<8x120xf32>
    %154 = tpu.matmul %151, %153, %cst_73 {dimension_numbers = #tpu.dot_dimension_numbers<[1], [0], [0], [1], [0, 0, 1, 1], [], []>} : vector<8x80xbf16>, vector<80x120xbf16>, vector<8x120xf32> -> vector<8x120xf32>
    %155 = arith.addf %150, %154 : vector<8x120xf32>
    %c0_74 = arith.constant 0 : index
    %c0_75 = arith.constant 0 : index
    %156 = vector.load %arg11[%c0_74, %c0_75] : memref<1x120xf32, #tpu.memory_space<vmem>>, vector<1x120xf32>
    %157 = vector.broadcast %156 : vector<1x120xf32> to vector<8x120xf32>
    %158 = arith.addf %155, %157 : vector<8x120xf32>
    %cst_76 = arith.constant 0.000000e+00 : f32
    %159 = vector.broadcast %cst_76 : f32 to vector<8x120xf32>
    %160 = arith.maximumf %158, %159 : vector<8x120xf32>
    %161 = arith.truncf %160 : vector<8x120xf32> to vector<8x120xbf16>
    %c0_77 = arith.constant 0 : index
    %c0_78 = arith.constant 0 : index
    %162 = vector.load %arg12[%c0_77, %c0_78] : memref<120x84xbf16, #tpu.memory_space<vmem>>, vector<120x84xbf16>
    %cst_79 = arith.constant dense<0.000000e+00> : vector<8x84xf32>
    %163 = tpu.matmul %161, %162, %cst_79 {dimension_numbers = #tpu.dot_dimension_numbers<[1], [0], [0], [1], [0, 0, 1, 1], [], []>} : vector<8x120xbf16>, vector<120x84xbf16>, vector<8x84xf32> -> vector<8x84xf32>
    %c0_80 = arith.constant 0 : index
    %c0_81 = arith.constant 0 : index
    %164 = vector.load %arg13[%c0_80, %c0_81] : memref<1x84xf32, #tpu.memory_space<vmem>>, vector<1x84xf32>
    %165 = vector.broadcast %164 : vector<1x84xf32> to vector<8x84xf32>
    %166 = arith.addf %163, %165 : vector<8x84xf32>
    %cst_82 = arith.constant 0.000000e+00 : f32
    %167 = vector.broadcast %cst_82 : f32 to vector<8x84xf32>
    %168 = arith.maximumf %166, %167 : vector<8x84xf32>
    %169 = arith.truncf %168 : vector<8x84xf32> to vector<8x84xbf16>
    %c0_83 = arith.constant 0 : index
    %c0_84 = arith.constant 0 : index
    %170 = vector.load %arg14[%c0_83, %c0_84] : memref<84x128xbf16, #tpu.memory_space<vmem>>, vector<84x128xbf16>
    %cst_85 = arith.constant dense<0.000000e+00> : vector<8x128xf32>
    %171 = tpu.matmul %169, %170, %cst_85 {dimension_numbers = #tpu.dot_dimension_numbers<[1], [0], [0], [1], [0, 0, 1, 1], [], []>} : vector<8x84xbf16>, vector<84x128xbf16>, vector<8x128xf32> -> vector<8x128xf32>
    %c0_86 = arith.constant 0 : index
    %c0_87 = arith.constant 0 : index
    %172 = vector.load %arg15[%c0_86, %c0_87] : memref<1x128xf32, #tpu.memory_space<vmem>>, vector<1x128xf32>
    %173 = vector.broadcast %172 : vector<1x128xf32> to vector<8x128xf32>
    %174 = arith.addf %171, %173 : vector<8x128xf32>
    %c0_88 = arith.constant 0 : index
    %c0_89 = arith.constant 0 : index
    %175 = vector.load %arg16[%c0_88, %c0_89] : memref<8x128xf32, #tpu.memory_space<vmem>>, vector<8x128xf32>
    tpu.vector_store %arg16[%c0_88, %c0_89], %174 {strides = array<i32>} : memref<8x128xf32, #tpu.memory_space<vmem>>, vector<8x128xf32>,
    return
  }
  func.func @transform_0(%arg0: i32) -> (i32, i32) {
    %c0_i32 = arith.constant 0 : i32
    %c0_i32_0 = arith.constant 0 : i32
    return %arg0, %c0_i32 : i32, i32
  }
  func.func @transform_1(%arg0: i32) -> (i32, i32, i32) {
    %c0_i32 = arith.constant 0 : i32
    %c0_i32_0 = arith.constant 0 : i32
    %c0_i32_1 = arith.constant 0 : i32
    %c0_i32_2 = arith.constant 0 : i32
    return %c0_i32, %c0_i32_0, %c0_i32_1 : i32, i32, i32
  }
  func.func @transform_2(%arg0: i32) -> (i32, i32) {
    %c0_i32 = arith.constant 0 : i32
    %c0_i32_0 = arith.constant 0 : i32
    %c0_i32_1 = arith.constant 0 : i32
    return %c0_i32, %c0_i32_0 : i32, i32
  }
  func.func @transform_3(%arg0: i32) -> (i32, i32) {
    %c0_i32 = arith.constant 0 : i32
    %c0_i32_0 = arith.constant 0 : i32
    %c0_i32_1 = arith.constant 0 : i32
    return %c0_i32, %c0_i32_0 : i32, i32
  }
  func.func @transform_4(%arg0: i32) -> (i32, i32) {
    %c0_i32 = arith.constant 0 : i32
    %c0_i32_0 = arith.constant 0 : i32
    %c0_i32_1 = arith.constant 0 : i32
    return %c0_i32, %c0_i32_0 : i32, i32
  }
  func.func @transform_5(%arg0: i32) -> (i32, i32, i32) {
    %c0_i32 = arith.constant 0 : i32
    %c0_i32_0 = arith.constant 0 : i32
    %c0_i32_1 = arith.constant 0 : i32
    %c0_i32_2 = arith.constant 0 : i32
    return %c0_i32, %c0_i32_0, %c0_i32_1 : i32, i32, i32
  }
  func.func @transform_6(%arg0: i32) -> (i32, i32) {
    %c0_i32 = arith.constant 0 : i32
    %c0_i32_0 = arith.constant 0 : i32
    %c0_i32_1 = arith.constant 0 : i32
    return %c0_i32, %c0_i32_0 : i32, i32
  }
  func.func @transform_7(%arg0: i32) -> (i32, i32) {
    %c0_i32 = arith.constant 0 : i32
    %c0_i32_0 = arith.constant 0 : i32
    %c0_i32_1 = arith.constant 0 : i32
    return %c0_i32, %c0_i32_0 : i32, i32
  }
  func.func @transform_8(%arg0: i32) -> (i32, i32) {
    %c0_i32 = arith.constant 0 : i32
    %c0_i32_0 = arith.constant 0 : i32
    %c0_i32_1 = arith.constant 0 : i32
    return %c0_i32, %c0_i32_0 : i32, i32
  }
  func.func @transform_9(%arg0: i32) -> (i32, i32, i32) {
    %c0_i32 = arith.constant 0 : i32
    %c0_i32_0 = arith.constant 0 : i32
    %c0_i32_1 = arith.constant 0 : i32
    %c0_i32_2 = arith.constant 0 : i32
    return %c0_i32, %c0_i32_0, %c0_i32_1 : i32, i32, i32
  }
  func.func @transform_10(%arg0: i32) -> (i32, i32) {
    %c0_i32 = arith.constant 0 : i32
    %c0_i32_0 = arith.constant 0 : i32
    %c0_i32_1 = arith.constant 0 : i32
    return %c0_i32, %c0_i32_0 : i32, i32
  }
  func.func @transform_11(%arg0: i32) -> (i32, i32) {
    %c0_i32 = arith.constant 0 : i32
    %c0_i32_0 = arith.constant 0 : i32
    %c0_i32_1 = arith.constant 0 : i32
    return %c0_i32, %c0_i32_0 : i32, i32
  }
  func.func @transform_12(%arg0: i32) -> (i32, i32) {
    %c0_i32 = arith.constant 0 : i32
    %c0_i32_0 = arith.constant 0 : i32
    %c0_i32_1 = arith.constant 0 : i32
    return %c0_i32, %c0_i32_0 : i32, i32
  }
  func.func @transform_13(%arg0: i32) -> (i32, i32) {
    %c0_i32 = arith.constant 0 : i32
    %c0_i32_0 = arith.constant 0 : i32
    %c0_i32_1 = arith.constant 0 : i32
    return %c0_i32, %c0_i32_0 : i32, i32
  }
  func.func @transform_14(%arg0: i32) -> (i32, i32) {
    %c0_i32 = arith.constant 0 : i32
    %c0_i32_0 = arith.constant 0 : i32
    %c0_i32_1 = arith.constant 0 : i32
    return %c0_i32, %c0_i32_0 : i32, i32
  }
  func.func @transform_15(%arg0: i32) -> (i32, i32) {
    %c0_i32 = arith.constant 0 : i32
    %c0_i32_0 = arith.constant 0 : i32
    return %arg0, %c0_i32 : i32, i32
  }
}

</mosaic_0001>

<bundles_post_ra>
// kernel: _lambda_.1
= control target key start
LH: loop header
LB: loop body
LE: loop exit
PB: predicated region body
PF: predicated region fallthrough
CT: control target
= control target key end

     0   :  { %v5696_v1 = vmov 0   ;;  %vm238_vm0 = vcmask 785408   ;;  %vm1948_vm1 = vcmask 1043456   ;;  %vm1905_vm2 = vcmask 326656   ;;  %s7344_s1 = inlined_call_operand.vmem [shape: bf16[5,96,168], index: 1, kind: input, shape index: {}]   ;;  %s7345_s0 = inlined_call_operand.vmem [shape: bf16[256,96], index: 0, kind: input, shape index: {}]   ;;  %s7346_s3 = inlined_call_operand.vmem [shape: bf16[168,84], index: 3, kind: input, shape index: {}]   ;;  %s7347_s4 = inlined_call_operand.vmem [shape: bf16[168,84], index: 4, kind: input, shape index: {}]   ;;  %s7348_s2 = inlined_call_operand.vmem [shape: f32[1,168], index: 2, kind: input, shape index: {}]   ;;  %s7349_s5 = inlined_call_operand.vmem [shape: bf16[5,84,160], index: 5, kind: input, shape index: {}]   ;;  %s7350_s7 = inlined_call_operand.vmem [shape: bf16[160,80], index: 7, kind: input, shape index: {}]   ;;  %s7351_s8 = inlined_call_operand.vmem [shape: bf16[160,80], index: 8, kind: input, shape index: {}]   ;;  %s7352_s9 = inlined_call_operand.vmem [shape: bf16[5,80,120], index: 9, kind: input, shape index: {}]   ;;  %s7353_s6 = inlined_call_operand.vmem [shape: f32[1,160], index: 6, kind: input, shape index: {}]   ;;  %s7354_s11 = inlined_call_operand.vmem [shape: bf16[120,84], index: 11, kind: input, shape index: {}]   ;;  %s7355_s13 = inlined_call_operand.vmem [shape: bf16[84,128], index: 13, kind: input, shape index: {}]   ;;  %s7356_s10 = inlined_call_operand.vmem [shape: f32[1,120], index: 10, kind: input, shape index: {}]   ;;  %s7357_s12 = inlined_call_operand.vmem [shape: f32[1,84], index: 12, kind: input, shape index: {}]   ;;  %s7358_s14 = inlined_call_operand.vmem [shape: f32[1,128], index: 14, kind: input, shape index: {}]   ;;  %s7359_s15 = inlined_call_operand.vmem [shape: f32[8,128], index: 15, kind: output, shape index: {}]  }
   0x1   :  { %v5409_v0 = vld [vmem:[%s7344_s1 + $0x64] ss:$8 sps:$4 sm:$0xff]   ;;  %313 = vmatprep.mubr.bf16.mxu0 %v5696_v1  ;;  %1952 = vmatprep.subr.bf16.mxu1 %v5696_v1  ;;  %v5411_v2 = vld [vmem:[%s7344_s1 + $0x60] ss:$8 sps:$4 sm:$0xff]   ;;  %v5412_v3 = vld [vmem:[%s7344_s1 + $0x74] ss:$8 sps:$4 sm:$0xff]  }
   0x2   :  { %281 = vmatprep.subr.bf16.mxu0 %v5409_v0  ;;  %v5414_v4 = vld [vmem:[%s7344_s1 + $0x70] ss:$8 sps:$4 sm:$0xff]   ;;  %v5415_v5 = vld [vmem:[%s7344_s1 + $0x84] ss:$8 sps:$4 sm:$0xff]   ;;  %v5417_v6 = vld [vmem:[%s7344_s1 + $0x80] ss:$8 sps:$4 sm:$0xff]  }
   0x3   :  { %282 = vmatpush1.bf16.msra.mxu0 %v5411_v2  ;;  %v5418_v7 = vld [vmem:[%s7344_s1 + $0x94] ss:$8 sps:$4 sm:$0xff]   ;;  %v53_v8 = vld [vmem:[%s7345_s0 + $0x8] sm:$0xf]  ;;  %v54_v9 = vld [vmem:[%s7345_s0 + $0xc] sm:$0xf] }
   0x4   :  { %283 = vmatprep.subr.bf16.mxu0 %v5412_v3  ;;  %v5420_v10 = vld [vmem:[%s7344_s1 + $0x90] ss:$8 sps:$4 sm:$0xff]   ;;  %v5811_v11 = vcombine.low %v53_v8, %v54_v9  ;;  %v5421_v12 = vld [vmem:[%s7344_s1 + $0xa4] ss:$8 sps:$4 sm:$0xff]   ;;  %v5423_v13 = vld [vmem:[%s7344_s1 + $0xa0] ss:$8 sps:$4 sm:$0xff]  }
   0x5   :  { %v5424_v14 = vld [vmem:[%s7344_s1 + $0xb4] ss:$8 sps:$4 sm:$0xff]   ;;  %v55_v15 = vld [vmem:[%s7345_s0 + $0x10] sm:$0xf]  ;;  %v5834_v18 = vld [vmem:[%s7345_s0 + $0x4] sm:$0xf] }
   0x6   :  { %v56_v16 = vld [vmem:[%s7345_s0 + $0x14] sm:$0xf]  ;;  %v5426_v17 = vld [vmem:[%s7344_s1 + $0xb0] ss:$8 sps:$4 sm:$0xff]   ;;  %v5431_v20 = vld [vmem:[%s7344_s1 + $0x4] ss:$8 sps:$4 sm:$0xff]   ;;  %v4450_v21 = vcombine.low %v5834_v18, %v53_v8  ;;  %v5867_v30 = vcombine.low %v54_v9, %v55_v15 }
   0x7   :  { %284 = vmatpush1.bf16.msra.mxu0 %v5414_v4  ;;  %v5836_v19 = vcombine.low %v55_v15, %v56_v16  ;;  %v5429_v22 = vld [vmem:[%s7344_s1] ss:$8 sps:$4 sm:$0xff]   ;;  %v5436_v23 = vld [vmem:[%s7344_s1 + $0x14] ss:$8 sps:$4 sm:$0xff]   ;;  %v57_v24 = vld [vmem:[%s7345_s0 + $0x18] sm:$0xf] }
   0x8   :  { %285 = vmatprep.subr.bf16.mxu0 %v5415_v5  ;;  %v58_v25 = vld [vmem:[%s7345_s0 + $0x1c] sm:$0xf]  ;;  %v5434_v26 = vld [vmem:[%s7344_s1 + $0x10] ss:$8 sps:$4 sm:$0xff]   ;;  %v5441_v28 = vld [vmem:[%s7344_s1 + $0x24] ss:$8 sps:$4 sm:$0xff]   ;;  %v5889_v37 = vcombine.low %v56_v16, %v57_v24 }
   0x9   :  { %v5859_v27 = vcombine.low %v57_v24, %v58_v25  ;;  %v5439_v29 = vld [vmem:[%s7344_s1 + $0x20] ss:$8 sps:$4 sm:$0xff]   ;;  %v5447_v31 = vld [vmem:[%s7344_s1 + $0x34] ss:$8 sps:$4 sm:$0xff]   ;;  %v60_v33 = vld [vmem:[%s7345_s0 + $0x24] sm:$0xf] }
   0xa   :  { %v59_v32 = vld [vmem:[%s7345_s0 + $0x20] sm:$0xf]  ;;  %v5445_v34 = vld [vmem:[%s7344_s1 + $0x30] ss:$8 sps:$4 sm:$0xff]   ;;  %v5452_v35 = vld [vmem:[%s7344_s1 + $0x44] ss:$8 sps:$4 sm:$0xff]  }
   0xb   :  { %286 = vmatpush1.bf16.msra.mxu0 %v5417_v6  ;;  %v5887_v36 = vcombine.low %v59_v32, %v60_v33  ;;  %v5450_v38 = vld [vmem:[%s7344_s1 + $0x40] ss:$8 sps:$4 sm:$0xff]   ;;  %v5457_v39 = vld [vmem:[%s7344_s1 + $0x54] ss:$8 sps:$4 sm:$0xff]   ;;  %v62_v41 = vld [vmem:[%s7345_s0 + $0x2c] sm:$0xf]  ;;  %v5914_v45 = vcombine.low %v58_v25, %v59_v32 }
   0xc   :  { %287 = vmatprep.subr.bf16.mxu0 %v5418_v7  ;;  %v61_v40 = vld [vmem:[%s7345_s0 + $0x28] sm:$0xf]  ;;  %v5455_v42 = vld [vmem:[%s7344_s1 + $0x50] ss:$8 sps:$4 sm:$0xff]   ;;  %v5462_v44 = vld [vmem:[%s7344_s1 + $0xc4] ss:$8 sps:$4 sm:$0xff]  }
   0xd   :  { %v5909_v43 = vcombine.low %v61_v40, %v62_v41  ;;  %v63_v46 = vld [vmem:[%s7345_s0 + $0x30] sm:$0xf]  ;;  %v64_v47 = vld [vmem:[%s7345_s0 + $0x34] sm:$0xf]  ;;  %v5927_v49 = vcombine.low %v60_v33, %v61_v40  ;;  %v65_v50 = vld [vmem:[%s7345_s0 + $0x38] sm:$0xf] }
   0xe   :  { %v5925_v48 = vcombine.low %v63_v46, %v64_v47  ;;  %v66_v51 = vld [vmem:[%s7345_s0 + $0x3c] sm:$0xf]  ;;  %v5940_v53 = vcombine.low %v62_v41, %v63_v46  ;;  %v67_v54 = vld [vmem:[%s7345_s0 + $0x40] sm:$0xf]  ;;  %v68_v55 = vld [vmem:[%s7345_s0 + $0x44] sm:$0xf]  ;;  %v5953_v57 = vcombine.low %v64_v47, %v65_v50 }
   0xf   :  { %288 = vmatpush1.bf16.msra.mxu0 %v5420_v10  ;;  %v5938_v52 = vcombine.low %v65_v50, %v66_v51  ;;  %v5951_v56 = vcombine.low %v67_v54, %v68_v55  ;;  %v69_v58 = vld [vmem:[%s7345_s0 + $0x48] sm:$0xf]  ;;  %v70_v59 = vld [vmem:[%s7345_s0 + $0x4c] sm:$0xf]  ;;  %v5966_v61 = vcombine.low %v66_v51, %v67_v54  ;;  %v71_v62 = vld [vmem:[%s7345_s0 + $0x50] sm:$0xf] }
  0x10   :  { %289 = vmatprep.subr.bf16.mxu0 %v5421_v12  ;;  %v5964_v60 = vcombine.low %v69_v58, %v70_v59  ;;  %v72_v63 = vld [vmem:[%s7345_s0 + $0x54] sm:$0xf]  ;;  %v5979_v2 = vcombine.low %v68_v55, %v69_v58  ;;  %v5984_v3 = vcombine.low %v70_v59, %v71_v62  ;;  %v5992_v4 = vld [vmem:[%s7345_s0 + $0x58] sm:$0xf]  ;;  %v6003_v6 = vld [vmem:[%s7345_s0 + $0x5c] sm:$0xf] }
  0x11   :  { %v5977_v0 = vcombine.low %v71_v62, %v72_v63  ;;  %v5995_v5 = vcombine.low %v72_v63, %v5992_v4  ;;  %v6008_v7 = vld [vmem:[%s7345_s0 + $0x60] sm:$0xf]  ;;  %v76_v9 = vld [vmem:[%s7345_s0 + $0x64] sm:$0xf]  ;;  %v6023_v10 = vld [vmem:[%s7345_s0 + $0x68] sm:$0xf]  ;;  %v6119_v33 = vcombine.low %v5992_v4, %v6003_v6 }
  0x12   :  { %v6012_v8 = vcombine.low %v6003_v6, %v6008_v7  ;;  %v6026_v12 = vcombine.low %v76_v9, %v6023_v10  ;;  %v51_v16 = vld [vmem:[%s7345_s0] sm:$0xf]  ;;  %v5478_v24 = vld [vmem:[%s7344_s1 + $0xf4] ss:$8 sps:$4 sm:$0xff]   ;;  %v5476_v25 = vld [vmem:[%s7344_s1 + $0xf0] ss:$8 sps:$4 sm:$0xff]  }
  0x13   :  { %290 = vmatpush1.bf16.msra.mxu0 %v5423_v13  ;;  %v78_v13 = vld [vmem:[%s7345_s0 + $0x6c] sm:$0xf]  ;;  %v5494_v40 = vld [vmem:[%s7344_s1 + $0x130] ss:$8 sps:$4 sm:$0xff]   ;;  %v5503_v47 = vld [vmem:[%s7344_s1 + $0x160] ss:$8 sps:$4 sm:$0xff]  }
  0x14   :  { %291 = vmatprep.subr.bf16.mxu0 %v5424_v14  ;;  %v6037_v14 = vld [vmem:[%s7345_s0 + $0x70] sm:$0xf]  ;;  %v5493_v32 = vld [vmem:[%s7344_s1 + $0x124] ss:$8 sps:$4 sm:$0xff]   ;;  %v5508_v50 = vld [vmem:[%s7344_s1 + $0x174] ss:$8 sps:$4 sm:$0xff]  }
  0x15   :  { %v6040_v15 = vcombine.low %v78_v13, %v6037_v14  ;;  %v5499_v41 = vld [vmem:[%s7344_s1 + $0x144] ss:$8 sps:$4 sm:$0xff]   ;;  %v5506_v51 = vld [vmem:[%s7344_s1 + $0x170] ss:$8 sps:$4 sm:$0xff]   ;;  %v6214_v55 = vld [vmem:[%s7345_s0 + $0x74] sm:$0xf] }
  0x16   :  { %v5505_v46 = vld [vmem:[%s7344_s1 + $0x164] ss:$8 sps:$4 sm:$0xff]   ;;  %v6218_v58 = vcombine.low %v6037_v14, %v6214_v55  ;;  %v5510_v59 = vld [vmem:[%s7344_s1 + $0x180] ss:$8 sps:$4 sm:$0xff]   ;;  %v5515_v62 = vld [vmem:[%s7344_s1 + $0x194] ss:$8 sps:$4 sm:$0xff]  }
  0x17   :  { %292 = vmatpush1.bf16.msra.mxu0 %v5426_v17  ;;  %v4490_v17 = vcombine.low %v51_v16, %v5834_v18  ;;  %v5472_v18 = vld [vmem:[%s7344_s1 + $0xe4] ss:$8 sps:$4 sm:$0xff]   ;;  %v5513_v63 = vld [vmem:[%s7344_s1 + $0x190] ss:$8 sps:$4 sm:$0xff]   ;;  %v5516_v6 = vld [vmem:[%s7344_s1 + $0x1a0] ss:$8 sps:$4 sm:$0xff]  }
  0x18   :  { %572 = vmatprep.subr.bf16.mxu0 %v5431_v20  ;;  %v5460_v20 = vld [vmem:[%s7344_s1 + $0xc0] ss:$8 sps:$4 sm:$0xff]   ;;  %v5512_v54 = vld [vmem:[%s7344_s1 + $0x184] ss:$8 sps:$4 sm:$0xff]   ;;  %vm2574_vm3 = vcmask 1041408   ;;  %vm2558_vm4 = vcmask 687104  }
  0x19   :  { %v5518_v4 = vld [vmem:[%s7344_s1 + $0x1a4] ss:$8 sps:$4 sm:$0xff]   ;;  %v1669_v14 = vld [vmem:[%s7348_s2] sm:$0x3]  ;;  %vm3498_vm5 = vcmask 261120   ;;  %vm5698_vm6 = vmmov 0  }
  0x1a   :  { %4476 = vmatmul.mubr.msk.bf16.vlgmr.msra.gmra.mrb[0].mxu0 %vm238_vm0, %v4450_v21  ;;  %v5467_v21 = vld [vmem:[%s7344_s1 + $0xd4] ss:$8 sps:$4 sm:$0xff]   ;;  %vm3838_vm7 = vcmask 654336   ;;  %vm4287_vm8 = vcmask 982016  }
  0x1b   :  { %573 = vmatpush1.bf16.msra.mxu0 %v5429_v22  ;;  %323 = vmatprep.mubr.bf16.mxu0 %v5696_v1  ;;  %v5465_v22 = vld [vmem:[%s7344_s1 + $0xd0] ss:$8 sps:$4 sm:$0xff]  }
  0x1c   :  { %574 = vmatprep.subr.bf16.mxu0 %v5436_v23  ;;  %v5470_v23 = vld [vmem:[%s7344_s1 + $0xe0] ss:$8 sps:$4 sm:$0xff]  }
  0x1f   :  { %575 = vmatpush1.bf16.msra.mxu0 %v5434_v26  ;;  %v5483_v26 = vld [vmem:[%s7344_s1 + $0x104] ss:$8 sps:$4 sm:$0xff]  }
  0x20   :  { %576 = vmatprep.subr.bf16.mxu0 %v5441_v28  ;;  %v5481_v28 = vld [vmem:[%s7344_s1 + $0x100] ss:$8 sps:$4 sm:$0xff]  }
  0x22   :  { %4477 = vmatmul.mubr.msk.bf16.gmra.mrb[4].mxu0 %vm238_vm0, %v5867_v30 }
  0x23   :  { %333 = vmatprep.mubr.bf16.mxu0 %v5696_v1  ;;  %577 = vmatpush1.bf16.msra.mxu0 %v5439_v29  ;;  %v5488_v29 = vld [vmem:[%s7344_s1 + $0x114] ss:$8 sps:$4 sm:$0xff]  }
  0x24   :  { %578 = vmatprep.subr.bf16.mxu0 %v5447_v31  ;;  %v5486_v31 = vld [vmem:[%s7344_s1 + $0x110] ss:$8 sps:$4 sm:$0xff]  }
  0x27   :  { %579 = vmatpush1.bf16.msra.mxu0 %v5445_v34  ;;  %v6125_v34 = vcombine.low %v6008_v7, %v76_v9  ;;  %v5519_v7 = vld [vmem:[%s7344_s1 + $0x1b0] ss:$8 sps:$4 sm:$0xff]   ;;  %v5524_v9 = vld [vmem:[%s7344_s1 + $0x1c4] ss:$8 sps:$4 sm:$0xff]  }
  0x28   :  { %580 = vmatprep.subr.bf16.mxu0 %v5452_v35  ;;  %v6131_v35 = vcombine.low %v6023_v10, %v78_v13  ;;  %v5522_v10 = vld [vmem:[%s7344_s1 + $0x1c0] ss:$8 sps:$4 sm:$0xff]   ;;  %v5525_v13 = vld [vmem:[%s7344_s1 + $0x1d0] ss:$8 sps:$4 sm:$0xff]  }
  0x2a   :  { %4478 = vmatmul.mubr.msk.bf16.gmra.mrb[8].mxu0 %vm238_vm0, %v5889_v37 }
  0x2b   :  { %343 = vmatprep.mubr.bf16.mxu0 %v5696_v1  ;;  %581 = vmatpush1.bf16.msra.mxu0 %v5450_v38  ;;  %v5491_v38 = vld [vmem:[%s7344_s1 + $0x120] ss:$8 sps:$4 sm:$0xff]  }
  0x2c   :  { %582 = vmatprep.subr.bf16.mxu0 %v5457_v39  ;;  %v5496_v39 = vld [vmem:[%s7344_s1 + $0x134] ss:$8 sps:$4 sm:$0xff]  }
  0x2f   :  { %583 = vmatpush1.bf16.msra.mxu0 %v5455_v42  ;;  %v5497_v42 = vld [vmem:[%s7344_s1 + $0x140] ss:$8 sps:$4 sm:$0xff]  }
  0x30   :  { %824 = vmatprep.subr.bf16.mxu0 %v5462_v44  ;;  %v5500_v44 = vld [vmem:[%s7344_s1 + $0x150] ss:$8 sps:$4 sm:$0xff]  }
  0x32   :  { %4479 = vmatmul.mubr.msk.bf16.gmra.mrb[12].mxu0 %vm238_vm0, %v5914_v45 }
  0x33   :  { %353 = vmatprep.mubr.bf16.mxu0 %v5696_v1 }
  0x3a   :  { %4480 = vmatmul.mubr.msk.bf16.gmra.mrb[16].mxu0 %vm238_vm0, %v5927_v49 }
  0x3b   :  { %363 = vmatprep.mubr.bf16.mxu0 %v5696_v1 }
  0x42   :  { %4481 = vmatmul.mubr.msk.bf16.gmra.mrb[20].mxu0 %vm238_vm0, %v5940_v53 }
  0x43   :  { %373 = vmatprep.mubr.bf16.mxu0 %v5696_v1 }
  0x4a   :  { %4482 = vmatmul.mubr.msk.bf16.gmra.mrb[24].mxu0 %vm238_vm0, %v5953_v57 }
  0x4b   :  { %383 = vmatprep.mubr.bf16.mxu0 %v5696_v1 }
  0x52   :  { %4483 = vmatmul.mubr.msk.bf16.gmra.mrb[28].mxu0 %vm238_vm0, %v5966_v61 }
  0x53   :  { %393 = vmatprep.mubr.bf16.mxu0 %v5696_v1 }
  0x5a   :  { %4484 = vmatmul.mubr.msk.bf16.gmra.mrb[32].mxu0 %vm238_vm0, %v5979_v2 }
  0x5b   :  { %403 = vmatprep.mubr.bf16.mxu0 %v5696_v1 }
  0x62   :  { %4485 = vmatmul.mubr.msk.bf16.gmra.mrb[36].mxu0 %vm238_vm0, %v5984_v3 }
  0x63   :  { %413 = vmatprep.mubr.bf16.mxu0 %v5696_v1 }
  0x6a   :  { %4486 = vmatmul.mubr.msk.bf16.gmra.mrb[40].mxu0 %vm238_vm0, %v5995_v5 }
  0x6b   :  { %423 = vmatprep.mubr.bf16.mxu0 %v5696_v1 }
  0x72   :  { %4487 = vmatmul.mubr.msk.bf16.gmra.mrb[44].mxu0 %vm238_vm0, %v6012_v8 }
  0x73   :  { %433 = vmatprep.mubr.bf16.mxu0 %v5696_v1 }
  0x7a   :  { %4488 = vmatmul.mubr.msk.bf16.gmra.mrb[48].mxu0 %vm238_vm0, %v6026_v12 }
  0x7b   :  { %443 = vmatprep.mubr.bf16.mxu0 %v5696_v1 }
  0x82   :  { %4489 = vmatmul.mubr.msk.bf16.gmra.mrb[52].mxu0 %vm238_vm0, %v6040_v15 }
  0x83   :  { %604 = vmatprep.mubr.bf16.mxu0 %v5696_v1 }
  0x8a   :  { %4516 = vmatmul.mubr.msk.bf16.vlgmr.msra.gmra.mrb[0].mxu0 %vm238_vm0, %v4490_v17 }
  0x8b   :  { %825 = vmatpush1.bf16.msra.mxu0 %v5460_v20  ;;  %614 = vmatprep.mubr.bf16.mxu0 %v5696_v1 }
  0x8c   :  { %826 = vmatprep.subr.bf16.mxu0 %v5467_v21 }
  0x8f   :  { %827 = vmatpush1.bf16.msra.mxu0 %v5465_v22 }
  0x90   :  { %828 = vmatprep.subr.bf16.mxu0 %v5472_v18 }
  0x92   :  { %4517 = vmatmul.mubr.msk.bf16.gmra.mrb[4].mxu0 %vm238_vm0, %v5811_v11 }
  0x93   :  { %624 = vmatprep.mubr.bf16.mxu0 %v5696_v1  ;;  %829 = vmatpush1.bf16.msra.mxu0 %v5470_v23 }
  0x94   :  { %830 = vmatprep.subr.bf16.mxu0 %v5478_v24 }
  0x97   :  { %831 = vmatpush1.bf16.msra.mxu0 %v5476_v25 }
  0x98   :  { %832 = vmatprep.subr.bf16.mxu0 %v5483_v26 }
  0x9a   :  { %4518 = vmatmul.mubr.msk.bf16.gmra.mrb[8].mxu0 %vm238_vm0, %v5836_v19 }
  0x9b   :  { %634 = vmatprep.mubr.bf16.mxu0 %v5696_v1  ;;  %833 = vmatpush1.bf16.msra.mxu0 %v5481_v28 }
  0x9c   :  { %834 = vmatprep.subr.bf16.mxu0 %v5488_v29 }
  0x9f   :  { %835 = vmatpush1.bf16.msra.mxu0 %v5486_v31 }
  0xa0   :  { %1132 = vmatprep.subr.bf16.mxu0 %v5493_v32 }
  0xa2   :  { %4519 = vmatmul.mubr.msk.bf16.gmra.mrb[12].mxu0 %vm238_vm0, %v5859_v27 }
  0xa3   :  { %644 = vmatprep.mubr.bf16.mxu0 %v5696_v1 }
  0xaa   :  { %4520 = vmatmul.mubr.msk.bf16.gmra.mrb[16].mxu0 %vm238_vm0, %v5887_v36 }
  0xab   :  { %654 = vmatprep.mubr.bf16.mxu0 %v5696_v1 }
  0xb2   :  { %4521 = vmatmul.mubr.msk.bf16.gmra.mrb[20].mxu0 %vm238_vm0, %v5909_v43 }
  0xb3   :  { %664 = vmatprep.mubr.bf16.mxu0 %v5696_v1 }
  0xba   :  { %4522 = vmatmul.mubr.msk.bf16.gmra.mrb[24].mxu0 %vm238_vm0, %v5925_v48 }
  0xbb   :  { %674 = vmatprep.mubr.bf16.mxu0 %v5696_v1 }
  0xc2   :  { %4523 = vmatmul.mubr.msk.bf16.gmra.mrb[28].mxu0 %vm238_vm0, %v5938_v52 }
  0xc3   :  { %684 = vmatprep.mubr.bf16.mxu0 %v5696_v1 }
  0xca   :  { %4524 = vmatmul.mubr.msk.bf16.gmra.mrb[32].mxu0 %vm238_vm0, %v5951_v56 }
  0xcb   :  { %694 = vmatprep.mubr.bf16.mxu0 %v5696_v1 }
  0xd2   :  { %4525 = vmatmul.mubr.msk.bf16.gmra.mrb[36].mxu0 %vm238_vm0, %v5964_v60 }
  0xd3   :  { %704 = vmatprep.mubr.bf16.mxu0 %v5696_v1 }
  0xda   :  { %4526 = vmatmul.mubr.msk.bf16.gmra.mrb[40].mxu0 %vm238_vm0, %v5977_v0 }
  0xdb   :  { %714 = vmatprep.mubr.bf16.mxu0 %v5696_v1 }
  0xe2   :  { %4527 = vmatmul.mubr.msk.bf16.gmra.mrb[44].mxu0 %vm238_vm0, %v6119_v33 }
  0xe3   :  { %724 = vmatprep.mubr.bf16.mxu0 %v5696_v1 }
  0xea   :  { %4528 = vmatmul.mubr.msk.bf16.gmra.mrb[48].mxu0 %vm238_vm0, %v6125_v34 }
  0xeb   :  { %734 = vmatprep.mubr.bf16.mxu0 %v5696_v1 }
  0xf2   :  { %4529 = vmatmul.mubr.msk.bf16.gmra.mrb[52].mxu0 %vm238_vm0, %v6131_v35 }
  0xf3   :  { %856 = vmatprep.mubr.bf16.mxu0 %v5696_v1 }
  0xfa   :  { %4555 = vmatmul.mubr.msk.bf16.vlgmr.msra.gmra.mrb[0].mxu0 %vm238_vm0, %v5811_v11  ;;  %v5502_v11 = vld [vmem:[%s7344_s1 + $0x154] ss:$8 sps:$4 sm:$0xff]  }
  0xfb   :  { %1133 = vmatpush1.bf16.msra.mxu0 %v5491_v38  ;;  %866 = vmatprep.mubr.bf16.mxu0 %v5696_v1  ;;  %v5541_v38 = vld [vmem:[%s7347_s4] sm:$0xff]  }
  0xfc   :  { %1134 = vmatprep.subr.bf16.mxu0 %v5496_v39 }
  0xff   :  { %1135 = vmatpush1.bf16.msra.mxu0 %v5494_v40 }
 0x100   :  { %1136 = vmatprep.subr.bf16.mxu0 %v5499_v41 }
 0x102   :  { %4556 = vmatmul.mubr.msk.bf16.gmra.mrb[4].mxu0 %vm238_vm0, %v5836_v19 }
 0x103   :  { %876 = vmatprep.mubr.bf16.mxu0 %v5696_v1  ;;  %1137 = vmatpush1.bf16.msra.mxu0 %v5497_v42 }
 0x104   :  { %1138 = vmatprep.subr.bf16.mxu0 %v5502_v11 }
 0x107   :  { %1139 = vmatpush1.bf16.msra.mxu0 %v5500_v44 }
 0x108   :  { %1140 = vmatprep.subr.bf16.mxu0 %v5505_v46 }
 0x10a   :  { %4557 = vmatmul.mubr.msk.bf16.gmra.mrb[8].mxu0 %vm238_vm0, %v5859_v27 }
 0x10b   :  { %886 = vmatprep.mubr.bf16.mxu0 %v5696_v1  ;;  %1141 = vmatpush1.bf16.msra.mxu0 %v5503_v47  ;;  %v5542_v47 = vld [vmem:[%s7347_s4 + $0x8] sm:$0xff]  }
 0x10c   :  { %1142 = vmatprep.subr.bf16.mxu0 %v5508_v50 }
 0x10f   :  { %1143 = vmatpush1.bf16.msra.mxu0 %v5506_v51 }
 0x110   :  { %1440 = vmatprep.subr.bf16.mxu0 %v5512_v54 }
 0x112   :  { %4558 = vmatmul.mubr.msk.bf16.gmra.mrb[12].mxu0 %vm238_vm0, %v5887_v36 }
 0x113   :  { %896 = vmatprep.mubr.bf16.mxu0 %v5696_v1 }
 0x11a   :  { %4559 = vmatmul.mubr.msk.bf16.gmra.mrb[16].mxu0 %vm238_vm0, %v5909_v43 }
 0x11b   :  { %906 = vmatprep.mubr.bf16.mxu0 %v5696_v1 }
 0x122   :  { %4560 = vmatmul.mubr.msk.bf16.gmra.mrb[20].mxu0 %vm238_vm0, %v5925_v48 }
 0x123   :  { %916 = vmatprep.mubr.bf16.mxu0 %v5696_v1 }
 0x12a   :  { %4561 = vmatmul.mubr.msk.bf16.gmra.mrb[24].mxu0 %vm238_vm0, %v5938_v52 }
 0x12b   :  { %926 = vmatprep.mubr.bf16.mxu0 %v5696_v1 }
 0x132   :  { %4562 = vmatmul.mubr.msk.bf16.gmra.mrb[28].mxu0 %vm238_vm0, %v5951_v56 }
 0x133   :  { %936 = vmatprep.mubr.bf16.mxu0 %v5696_v1 }
 0x13a   :  { %4563 = vmatmul.mubr.msk.bf16.gmra.mrb[32].mxu0 %vm238_vm0, %v5964_v60 }
 0x13b   :  { %946 = vmatprep.mubr.bf16.mxu0 %v5696_v1 }
 0x142   :  { %4564 = vmatmul.mubr.msk.bf16.gmra.mrb[36].mxu0 %vm238_vm0, %v5977_v0 }
 0x143   :  { %956 = vmatprep.mubr.bf16.mxu0 %v5696_v1 }
 0x14a   :  { %4565 = vmatmul.mubr.msk.bf16.gmra.mrb[40].mxu0 %vm238_vm0, %v6119_v33 }
 0x14b   :  { %966 = vmatprep.mubr.bf16.mxu0 %v5696_v1 }
 0x152   :  { %4566 = vmatmul.mubr.msk.bf16.gmra.mrb[44].mxu0 %vm238_vm0, %v6125_v34 }
 0x153   :  { %976 = vmatprep.mubr.bf16.mxu0 %v5696_v1 }
 0x15a   :  { %4567 = vmatmul.mubr.msk.bf16.gmra.mrb[48].mxu0 %vm238_vm0, %v6131_v35 }
 0x15b   :  { %986 = vmatprep.mubr.bf16.mxu0 %v5696_v1 }
 0x162   :  { %4568 = vmatmul.mubr.msk.bf16.gmra.mrb[52].mxu0 %vm238_vm0, %v6218_v58 }
 0x163   :  { %1164 = vmatprep.mubr.bf16.mxu0 %v5696_v1 }
 0x16a   :  { %4594 = vmatmul.mubr.msk.bf16.vlgmr.msra.gmra.mrb[0].mxu0 %vm238_vm0, %v5867_v30  ;;  %v5521_v30 = vld [vmem:[%s7344_s1 + $0x1b4] ss:$8 sps:$4 sm:$0xff]  }
 0x16b   :  { %1441 = vmatpush1.bf16.msra.mxu0 %v5510_v59  ;;  %1174 = vmatprep.mubr.bf16.mxu0 %v5696_v1 }
 0x16c   :  { %1442 = vmatprep.subr.bf16.mxu0 %v5515_v62 }
 0x16f   :  { %1443 = vmatpush1.bf16.msra.mxu0 %v5513_v63  ;;  %v5543_v63 = vld [vmem:[%s7347_s4 + $0x10] sm:$0xff]  }
 0x170   :  { %1444 = vmatprep.subr.bf16.mxu0 %v5518_v4 }
 0x172   :  { %4595 = vmatmul.mubr.msk.bf16.gmra.mrb[4].mxu0 %vm238_vm0, %v5889_v37  ;;  %v5527_v37 = vld [vmem:[%s7344_s1 + $0x1d4] ss:$8 sps:$4 sm:$0xff]  }
 0x173   :  { %1184 = vmatprep.mubr.bf16.mxu0 %v5696_v1  ;;  %1445 = vmatpush1.bf16.msra.mxu0 %v5516_v6 }
 0x174   :  { %1446 = vmatprep.subr.bf16.mxu0 %v5521_v30 }
 0x177   :  { %1447 = vmatpush1.bf16.msra.mxu0 %v5519_v7 }
 0x178   :  { %1448 = vmatprep.subr.bf16.mxu0 %v5524_v9 }
 0x17a   :  { %4596 = vmatmul.mubr.msk.bf16.gmra.mrb[8].mxu0 %vm238_vm0, %v5914_v45  ;;  %v5530_v45 = vld [vmem:[%s7346_s3] sm:$0xff]  }
 0x17b   :  { %1194 = vmatprep.mubr.bf16.mxu0 %v5696_v1  ;;  %1449 = vmatpush1.bf16.msra.mxu0 %v5522_v10 }
 0x17c   :  { %1450 = vmatprep.subr.bf16.mxu0 %v5527_v37  ;;  %1953 = vmatpush1.bf16.msra.mxu1 %v5530_v45 }
 0x17d   :  { %1954 = vmatprep.subr.bf16.mxu1 %v5696_v1 }
 0x17f   :  { %1451 = vmatpush1.bf16.msra.mxu0 %v5525_v13  ;;  %v5544_v13 = vld [vmem:[%s7347_s4 + $0x18] sm:$0xff]  }
 0x182   :  { %4597 = vmatmul.mubr.msk.bf16.gmra.mrb[12].mxu0 %vm238_vm0, %v5927_v49  ;;  %v5531_v49 = vld [vmem:[%s7346_s3 + $0x8] sm:$0xff]  }
 0x183   :  { %1204 = vmatprep.mubr.bf16.mxu0 %v5696_v1  ;;  %1955 = vmatpush1.bf16.msra.mxu1 %v5531_v49 }
 0x184   :  { %1956 = vmatprep.subr.bf16.mxu1 %v5696_v1 }
 0x18a   :  { %4598 = vmatmul.mubr.msk.bf16.gmra.mrb[16].mxu0 %vm238_vm0, %v5940_v53  ;;  %v5532_v53 = vld [vmem:[%s7346_s3 + $0x10] sm:$0xff]  }
 0x18b   :  { %1214 = vmatprep.mubr.bf16.mxu0 %v5696_v1  ;;  %1957 = vmatpush1.bf16.msra.mxu1 %v5532_v53 }
 0x18c   :  { %1958 = vmatprep.subr.bf16.mxu1 %v5696_v1 }
 0x192   :  { %4599 = vmatmul.mubr.msk.bf16.gmra.mrb[20].mxu0 %vm238_vm0, %v5953_v57  ;;  %v6307_v57 = vld [vmem:[%s7345_s0 + $0x78] sm:$0xf] }
 0x193   :  { %1224 = vmatprep.mubr.bf16.mxu0 %v5696_v1 }
 0x19a   :  { %4600 = vmatmul.mubr.msk.bf16.gmra.mrb[24].mxu0 %vm238_vm0, %v5966_v61  ;;  %v5533_v61 = vld [vmem:[%s7346_s3 + $0x18] sm:$0xff]  }
 0x19b   :  { %1234 = vmatprep.mubr.bf16.mxu0 %v5696_v1  ;;  %1959 = vmatpush1.bf16.msra.mxu1 %v5533_v61 }
 0x19c   :  { %1960 = vmatprep.subr.bf16.mxu1 %v5696_v1 }
 0x1a2   :  { %4601 = vmatmul.mubr.msk.bf16.gmra.mrb[28].mxu0 %vm238_vm0, %v5979_v2  ;;  %v4581_v2 = vcombine.low %v6214_v55, %v6307_v57 }
 0x1a3   :  { %1244 = vmatprep.mubr.bf16.mxu0 %v5696_v1 }
 0x1aa   :  { %4602 = vmatmul.mubr.msk.bf16.gmra.mrb[32].mxu0 %vm238_vm0, %v5984_v3  ;;  %v5534_v3 = vld [vmem:[%s7346_s3 + $0x20] sm:$0xff]  }
 0x1ab   :  { %1254 = vmatprep.mubr.bf16.mxu0 %v5696_v1  ;;  %1961 = vmatpush1.bf16.msra.mxu1 %v5534_v3 }
 0x1ac   :  { %1962 = vmatprep.subr.bf16.mxu1 %v5696_v1 }
 0x1b2   :  { %4603 = vmatmul.mubr.msk.bf16.gmra.mrb[36].mxu0 %vm238_vm0, %v5995_v5  ;;  %v5535_v5 = vld [vmem:[%s7346_s3 + $0x28] sm:$0xff]  }
 0x1b3   :  { %1264 = vmatprep.mubr.bf16.mxu0 %v5696_v1  ;;  %1963 = vmatpush1.bf16.msra.mxu1 %v5535_v5  ;;  %v5545_v5 = vld [vmem:[%s7347_s4 + $0x20] sm:$0xff]  }
 0x1b4   :  { %1964 = vmatprep.subr.bf16.mxu1 %v5696_v1 }
 0x1ba   :  { %4604 = vmatmul.mubr.msk.bf16.gmra.mrb[40].mxu0 %vm238_vm0, %v6012_v8  ;;  %v5536_v8 = vld [vmem:[%s7346_s3 + $0x30] sm:$0xff]  }
 0x1bb   :  { %1274 = vmatprep.mubr.bf16.mxu0 %v5696_v1  ;;  %1965 = vmatpush1.bf16.msra.mxu1 %v5536_v8 }
 0x1bc   :  { %1966 = vmatprep.subr.bf16.mxu1 %v5696_v1 }
 0x1c2   :  { %4605 = vmatmul.mubr.msk.bf16.gmra.mrb[44].mxu0 %vm238_vm0, %v6026_v12  ;;  %v5537_v12 = vld [vmem:[%s7346_s3 + $0x38] sm:$0xff]  }
 0x1c3   :  { %1284 = vmatprep.mubr.bf16.mxu0 %v5696_v1  ;;  %1967 = vmatpush1.bf16.msra.mxu1 %v5537_v12 }
 0x1c4   :  { %1968 = vmatprep.subr.bf16.mxu1 %v5696_v1 }
 0x1ca   :  { %4606 = vmatmul.mubr.msk.bf16.gmra.mrb[48].mxu0 %vm238_vm0, %v6040_v15 }
 0x1cb   :  { %1294 = vmatprep.mubr.bf16.mxu0 %v5696_v1 }
 0x1d2   :  { %4607 = vmatmul.mubr.msk.bf16.gmra.mrb[52].mxu0 %vm238_vm0, %v4581_v2 }
 0x1d3   :  { %1472 = vmatprep.mubr.bf16.mxu0 %v5696_v1 }
 0x1da   :  { %4633 = vmatmul.mubr.msk.bf16.vlgmr.msra.gmra.mrb[0].mxu0 %vm238_vm0, %v5836_v19  ;;  %v5538_v19 = vld [vmem:[%s7346_s3 + $0x40] sm:$0xff]  }
 0x1db   :  { %1482 = vmatprep.mubr.bf16.mxu0 %v5696_v1  ;;  %1969 = vmatpush1.bf16.msra.mxu1 %v5538_v19 }
 0x1dc   :  { %1970 = vmatprep.subr.bf16.mxu1 %v5696_v1 }
 0x1e2   :  { %4634 = vmatmul.mubr.msk.bf16.gmra.mrb[4].mxu0 %vm238_vm0, %v5859_v27  ;;  %v5539_v27 = vld [vmem:[%s7346_s3 + $0x48] sm:$0xff]  }
 0x1e3   :  { %1492 = vmatprep.mubr.bf16.mxu0 %v5696_v1  ;;  %1971 = vmatpush1.bf16.msra.mxu1 %v5539_v27 }
 0x1e4   :  { %1972 = vmatprep.subr.bf16.mxu1 %v5696_v1 }
 0x1ea   :  { %4635 = vmatmul.mubr.msk.bf16.gmra.mrb[8].mxu0 %vm238_vm0, %v5887_v36  ;;  %v5540_v36 = vld [vmem:[%s7346_s3 + $0x50] ss:$0 sps:$4 sm:$0xff]  }
 0x1eb   :  { %1502 = vmatprep.mubr.bf16.mxu0 %v5696_v1 }
 0x1f2   :  { %4636 = vmatmul.mubr.msk.bf16.gmra.mrb[12].mxu0 %vm238_vm0, %v5909_v43  ;;  %v1950_v43 = vsel %vm1948_vm1, %v5540_v36, 0 }
 0x1f3   :  { %1512 = vmatprep.mubr.bf16.mxu0 %v5696_v1  ;;  %1973 = vmatpush1.bf16.msra.mxu1 %v1950_v43 }
 0x1f4   :  { %2184 = vmatprep.subr.bf16.mxu1 %v5696_v1 }
 0x1fa   :  { %4637 = vmatmul.mubr.msk.bf16.gmra.mrb[16].mxu0 %vm238_vm0, %v5925_v48  ;;  %v82_v48 = vld [vmem:[%s7345_s0 + $0x7c] sm:$0xf] }
 0x1fb   :  { %1522 = vmatprep.mubr.bf16.mxu0 %v5696_v1 }
 0x202   :  { %4638 = vmatmul.mubr.msk.bf16.gmra.mrb[20].mxu0 %vm238_vm0, %v5938_v52  ;;  %v4620_v52 = vcombine.low %v6307_v57, %v82_v48 }
 0x203   :  { %1532 = vmatprep.mubr.bf16.mxu0 %v5696_v1 }
 0x20a   :  { %4639 = vmatmul.mubr.msk.bf16.gmra.mrb[24].mxu0 %vm238_vm0, %v5951_v56  ;;  %v1671_v56 = vlaneseq }
 0x20b   :  { %1542 = vmatprep.mubr.bf16.mxu0 %v5696_v1 }
 0x212   :  { %4640 = vmatmul.mubr.msk.bf16.gmra.mrb[28].mxu0 %vm238_vm0, %v5964_v60  ;;  %v6393_v60 = vshrl.u32 %v1671_v56, 7 }
 0x213   :  { %1552 = vmatprep.mubr.bf16.mxu0 %v5696_v1 }
 0x214   :  { %v1677_v15 = vsub.s32 1, %v6393_v60 }
 0x216   :  { %v6406_v17 = vrot.slane %v1669_v14, %v1677_v15 }
 0x21a   :  { %4641 = vmatmul.mubr.msk.bf16.gmra.mrb[32].mxu0 %vm238_vm0, %v5977_v0  ;;  %v1673_v0 = vsub.s32 0, %v6393_v60 }
 0x21b   :  { %1562 = vmatprep.mubr.bf16.mxu0 %v5696_v1 }
 0x21c   :  { %v6402_v16 = vrot.slane %v1669_v14, %v1673_v0 }
 0x222   :  { %4642 = vmatmul.mubr.msk.bf16.gmra.mrb[36].mxu0 %vm238_vm0, %v6119_v33 }
 0x223   :  { %1572 = vmatprep.mubr.bf16.mxu0 %v5696_v1 }
 0x22a   :  { %4643 = vmatmul.mubr.msk.bf16.gmra.mrb[40].mxu0 %vm238_vm0, %v6125_v34 }
 0x22b   :  { %1582 = vmatprep.mubr.bf16.mxu0 %v5696_v1 }
 0x232   :  { %4644 = vmatmul.mubr.msk.bf16.gmra.mrb[44].mxu0 %vm238_vm0, %v6131_v35 }
 0x233   :  { %1592 = vmatprep.mubr.bf16.mxu0 %v5696_v1 }
 0x23a   :  { %4645 = vmatmul.mubr.msk.bf16.gmra.mrb[48].mxu0 %vm238_vm0, %v6218_v58 }
 0x23b   :  { %1602 = vmatprep.mubr.bf16.mxu0 %v5696_v1 }
 0x242   :  { %4646 = vmatmul.mubr.msk.bf16.gmra.mrb[52].mxu0 %vm238_vm0, %v4620_v52  ;;  %v5546_v52 = vld [vmem:[%s7347_s4 + $0x28] sm:$0xff]  }
 0x2ad   :  { %v1474_v20 = vpop.f32.mrb[0].mxu0 }
 0x2ae   :  { %v1681_v21 = vadd.f32 %v6402_v16, %v1474_v20  ;;  %v1476_v22 = vpop.f32.mrb[1].mxu0 }
 0x2af   :  { %v1682_v18 = vadd.f32 %v6406_v17, %v1476_v22  ;;  %v1478_v23 = vpop.f32.mrb[2].mxu0 }
 0x2b0   :  { %v1683_v24 = vadd.f32 %v6402_v16, %v1478_v23  ;;  %v1480_v25 = vpop.f32.mrb[3].mxu0  ;;  %v1737_v28 = vmax.f32 %v1681_v21, 0.0 }
 0x2b1   :  { %v1684_v26 = vadd.f32 %v6406_v17, %v1480_v25  ;;  %v1738_v31 = vmax.f32 %v1682_v18, 0.0 }
 0x2b2   :  { %v1739_v29 = vmax.f32 %v1683_v24, 0.0  ;;  %v5547_v24 = vld [vmem:[%s7347_s4 + $0x30] sm:$0xff]  }
 0x2b3   :  { %v1740_v32 = vmax.f32 %v1684_v26, 0.0 }
 0x2b4   :  { %v6412_v33 = vpack.c.bf16 %v1739_v29, %v1737_v28 }
 0x2b5   :  { %v1484_v34 = vpop.f32.mrb[4].mxu0  ;;  %v6414_v35 = vpack.c.bf16 %v1740_v32, %v1738_v31 }
 0x2b6   :  { %v1685_v39 = vadd.f32 %v6402_v16, %v1484_v34  ;;  %v1486_v40 = vpop.f32.mrb[5].mxu0 }
 0x2b7   :  { %v1686_v41 = vadd.f32 %v6406_v17, %v1486_v40  ;;  %v1488_v42 = vpop.f32.mrb[6].mxu0  ;;  %4658 = vmatprep.mubr.msk.bf16.mxu1 %vm1905_vm2, %v6414_v35 }
 0x2b8   :  { %v1687_v11 = vadd.f32 %v6402_v16, %v1488_v42  ;;  %v1490_v44 = vpop.f32.mrb[7].mxu0  ;;  %1985 = vmatmul.mubr.bf16.vlgmr.msra.gmra.mrb[0].mxu1 %v6412_v33  ;;  %v1741_v50 = vmax.f32 %v1685_v39, 0.0 }
 0x2b9   :  { %v1688_v46 = vadd.f32 %v6406_v17, %v1490_v44  ;;  %2185 = vmatpush1.bf16.msra.mxu1 %v5541_v38  ;;  %v1742_v54 = vmax.f32 %v1686_v41, 0.0  ;;  %v5548_v38 = vld [vmem:[%s7347_s4 + $0x38] sm:$0xff]  }
 0x2ba   :  { %v1743_v51 = vmax.f32 %v1687_v11, 0.0  ;;  %2186 = vmatprep.subr.bf16.mxu1 %v5696_v1 }
 0x2bb   :  { %v1744_v55 = vmax.f32 %v1688_v46, 0.0 }
 0x2bc   :  { %v6430_v58 = vpack.c.bf16 %v1743_v51, %v1741_v50 }
 0x2bd   :  { %v6432_v59 = vpack.c.bf16 %v1744_v55, %v1742_v54  ;;  %v1494_v62 = vpop.f32.mrb[8].mxu0  ;;  %2187 = vmatpush1.bf16.msra.mxu1 %v5542_v47  ;;  %v5549_v47 = vld [vmem:[%s7347_s4 + $0x40] sm:$0xff]  }
 0x2be   :  { %v1689_v4 = vadd.f32 %v6402_v16, %v1494_v62  ;;  %v1496_v6 = vpop.f32.mrb[9].mxu0  ;;  %2188 = vmatprep.subr.bf16.mxu1 %v5696_v1 }
 0x2bf   :  { %v1690_v30 = vadd.f32 %v6406_v17, %v1496_v6  ;;  %v1498_v7 = vpop.f32.mrb[10].mxu0  ;;  %4659 = vmatprep.mubr.msk.bf16.mxu1 %vm1905_vm2, %v6432_v59  ;;  %v5550_v6 = vld [vmem:[%s7347_s4 + $0x48] sm:$0xff]  }
 0x2c0   :  { %v1691_v9 = vadd.f32 %v6402_v16, %v1498_v7  ;;  %v1500_v10 = vpop.f32.mrb[11].mxu0  ;;  %1993 = vmatmul.mubr.bf16.gmra.mrb[4].mxu1 %v6430_v58  ;;  %v1745_v45 = vmax.f32 %v1689_v4, 0.0 }
 0x2c1   :  { %v1692_v37 = vadd.f32 %v6406_v17, %v1500_v10  ;;  %2189 = vmatpush1.bf16.msra.mxu1 %v5543_v63  ;;  %v1746_v53 = vmax.f32 %v1690_v30, 0.0 }
 0x2c2   :  { %v1747_v49 = vmax.f32 %v1691_v9, 0.0  ;;  %2190 = vmatprep.subr.bf16.mxu1 %v5696_v1  ;;  %v5551_v9 = vld [vmem:[%s7347_s4 + $0x50] ss:$0 sps:$4 sm:$0xff]  }
 0x2c3   :  { %v1748_v57 = vmax.f32 %v1692_v37, 0.0 }
 0x2c4   :  { %v6449_v61 = vpack.c.bf16 %v1747_v49, %v1745_v45 }
 0x2c5   :  { %v6451_v2 = vpack.c.bf16 %v1748_v57, %v1746_v53  ;;  %v1504_v3 = vpop.f32.mrb[12].mxu0  ;;  %2191 = vmatpush1.bf16.msra.mxu1 %v5544_v13 }
 0x2c6   :  { %v1693_v8 = vadd.f32 %v6402_v16, %v1504_v3  ;;  %v1506_v12 = vpop.f32.mrb[13].mxu0  ;;  %2192 = vmatprep.subr.bf16.mxu1 %v5696_v1  ;;  %v2182_v3 = vsel %vm1948_vm1, %v5551_v9, 0 }
 0x2c7   :  { %v1694_v19 = vadd.f32 %v6406_v17, %v1506_v12  ;;  %v1508_v27 = vpop.f32.mrb[14].mxu0  ;;  %4660 = vmatprep.mubr.msk.bf16.mxu1 %vm1905_vm2, %v6451_v2 }
 0x2c8   :  { %v1695_v36 = vadd.f32 %v6402_v16, %v1508_v27  ;;  %v1510_v43 = vpop.f32.mrb[15].mxu0  ;;  %2001 = vmatmul.mubr.bf16.gmra.mrb[8].mxu1 %v6449_v61  ;;  %v1749_v56 = vmax.f32 %v1693_v8, 0.0 }
 0x2c9   :  { %v1696_v48 = vadd.f32 %v6406_v17, %v1510_v43  ;;  %2193 = vmatpush1.bf16.msra.mxu1 %v5545_v5  ;;  %v1750_v20 = vmax.f32 %v1694_v19, 0.0 }
 0x2ca   :  { %v1751_v14 = vmax.f32 %v1695_v36, 0.0  ;;  %2194 = vmatprep.subr.bf16.mxu1 %v5696_v1 }
 0x2cb   :  { %v1752_v21 = vmax.f32 %v1696_v48, 0.0 }
 0x2cc   :  { %v6468_v22 = vpack.c.bf16 %v1751_v14, %v1749_v56 }
 0x2cd   :  { %v6470_v18 = vpack.c.bf16 %v1752_v21, %v1750_v20  ;;  %v1514_v23 = vpop.f32.mrb[16].mxu0  ;;  %2195 = vmatpush1.bf16.msra.mxu1 %v5546_v52 }
 0x2ce   :  { %v1697_v25 = vadd.f32 %v6402_v16, %v1514_v23  ;;  %v1516_v26 = vpop.f32.mrb[17].mxu0  ;;  %2196 = vmatprep.subr.bf16.mxu1 %v5696_v1 }
 0x2cf   :  { %v1698_v28 = vadd.f32 %v6406_v17, %v1516_v26  ;;  %v1518_v29 = vpop.f32.mrb[18].mxu0  ;;  %4661 = vmatprep.mubr.msk.bf16.mxu1 %vm1905_vm2, %v6470_v18 }
 0x2d0   :  { %v1699_v31 = vadd.f32 %v6402_v16, %v1518_v29  ;;  %v1520_v32 = vpop.f32.mrb[19].mxu0  ;;  %2009 = vmatmul.mubr.bf16.gmra.mrb[12].mxu1 %v6468_v22  ;;  %v1753_v39 = vmax.f32 %v1697_v25, 0.0 }
 0x2d1   :  { %v1700_v34 = vadd.f32 %v6406_v17, %v1520_v32  ;;  %2197 = vmatpush1.bf16.msra.mxu1 %v5547_v24  ;;  %v1754_v41 = vmax.f32 %v1698_v28, 0.0 }
 0x2d2   :  { %v1755_v40 = vmax.f32 %v1699_v31, 0.0  ;;  %2198 = vmatprep.subr.bf16.mxu1 %v5696_v1 }
 0x2d3   :  { %v1756_v42 = vmax.f32 %v1700_v34, 0.0 }
 0x2d4   :  { %v6487_v11 = vpack.c.bf16 %v1755_v40, %v1753_v39 }
 0x2d5   :  { %v6489_v44 = vpack.c.bf16 %v1756_v42, %v1754_v41  ;;  %v1524_v46 = vpop.f32.mrb[20].mxu0  ;;  %2199 = vmatpush1.bf16.msra.mxu1 %v5548_v38 }
 0x2d6   :  { %v1701_v50 = vadd.f32 %v6402_v16, %v1524_v46  ;;  %v1526_v51 = vpop.f32.mrb[21].mxu0  ;;  %2200 = vmatprep.subr.bf16.mxu1 %v5696_v1 }
 0x2d7   :  { %v1702_v54 = vadd.f32 %v6406_v17, %v1526_v51  ;;  %v1528_v55 = vpop.f32.mrb[22].mxu0  ;;  %4662 = vmatprep.mubr.msk.bf16.mxu1 %vm1905_vm2, %v6489_v44 }
 0x2d8   :  { %v1703_v62 = vadd.f32 %v6402_v16, %v1528_v55  ;;  %v1530_v63 = vpop.f32.mrb[23].mxu0  ;;  %2017 = vmatmul.mubr.bf16.gmra.mrb[16].mxu1 %v6487_v11  ;;  %v1757_v30 = vmax.f32 %v1701_v50, 0.0 }
 0x2d9   :  { %v1704_v4 = vadd.f32 %v6406_v17, %v1530_v63  ;;  %2201 = vmatpush1.bf16.msra.mxu1 %v5549_v47  ;;  %v1758_v10 = vmax.f32 %v1702_v54, 0.0 }
 0x2da   :  { %v1759_v7 = vmax.f32 %v1703_v62, 0.0  ;;  %2202 = vmatprep.subr.bf16.mxu1 %v5696_v1 }
 0x2db   :  { %v1760_v37 = vmax.f32 %v1704_v4, 0.0 }
 0x2dc   :  { %v6509_v13 = vpack.c.bf16 %v1759_v7, %v1757_v30 }
 0x2dd   :  { %v6511_v45 = vpack.c.bf16 %v1760_v37, %v1758_v10  ;;  %v1534_v49 = vpop.f32.mrb[24].mxu0  ;;  %2203 = vmatpush1.bf16.msra.mxu1 %v5550_v6 }
 0x2de   :  { %v1705_v53 = vadd.f32 %v6402_v16, %v1534_v49  ;;  %v1536_v57 = vpop.f32.mrb[25].mxu0  ;;  %2204 = vmatprep.subr.bf16.mxu1 %v5696_v1 }
 0x2df   :  { %v1706_v5 = vadd.f32 %v6406_v17, %v1536_v57  ;;  %v1538_v8 = vpop.f32.mrb[26].mxu0  ;;  %4663 = vmatprep.mubr.msk.bf16.mxu1 %vm1905_vm2, %v6511_v45 }
 0x2e0   :  { %v1707_v12 = vadd.f32 %v6402_v16, %v1538_v8  ;;  %v1540_v19 = vpop.f32.mrb[27].mxu0  ;;  %2025 = vmatmul.mubr.bf16.gmra.mrb[20].mxu1 %v6509_v13  ;;  %v1761_v36 = vmax.f32 %v1705_v53, 0.0 }
 0x2e1   :  { %v1708_v27 = vadd.f32 %v6406_v17, %v1540_v19  ;;  %2205 = vmatpush1.bf16.msra.mxu1 %v2182_v3  ;;  %v1762_v48 = vmax.f32 %v1706_v5, 0.0 }
 0x2e2   :  { %v1763_v43 = vmax.f32 %v1707_v12, 0.0 }
 0x2e3   :  { %v1764_v52 = vmax.f32 %v1708_v27, 0.0 }
 0x2e4   :  { %v6522_v56 = vpack.c.bf16 %v1763_v43, %v1761_v36 }
 0x2e5   :  { %v6524_v14 = vpack.c.bf16 %v1764_v52, %v1762_v48  ;;  %v1544_v20 = vpop.f32.mrb[28].mxu0 }
 0x2e6   :  { %v1709_v21 = vadd.f32 %v6402_v16, %v1544_v20  ;;  %v1546_v23 = vpop.f32.mrb[29].mxu0 }
 0x2e7   :  { %v1710_v24 = vadd.f32 %v6406_v17, %v1546_v23  ;;  %v1548_v25 = vpop.f32.mrb[30].mxu0  ;;  %4664 = vmatprep.mubr.msk.bf16.mxu1 %vm1905_vm2, %v6524_v14 }
 0x2e8   :  { %v1711_v26 = vadd.f32 %v6402_v16, %v1548_v25  ;;  %v1550_v28 = vpop.f32.mrb[31].mxu0  ;;  %2033 = vmatmul.mubr.bf16.gmra.mrb[24].mxu1 %v6522_v56  ;;  %v1765_v31 = vmax.f32 %v1709_v21, 0.0 }
 0x2e9   :  { %v1712_v29 = vadd.f32 %v6406_v17, %v1550_v28  ;;  %v1766_v34 = vmax.f32 %v1710_v24, 0.0 }
 0x2ea   :  { %v1767_v32 = vmax.f32 %v1711_v26, 0.0 }
 0x2eb   :  { %v1768_v38 = vmax.f32 %v1712_v29, 0.0 }
 0x2ec   :  { %v6533_v39 = vpack.c.bf16 %v1767_v32, %v1765_v31 }
 0x2ed   :  { %v6535_v40 = vpack.c.bf16 %v1768_v38, %v1766_v34  ;;  %v1554_v41 = vpop.f32.mrb[32].mxu0 }
 0x2ee   :  { %v1713_v42 = vadd.f32 %v6402_v16, %v1554_v41  ;;  %v1556_v46 = vpop.f32.mrb[33].mxu0 }
 0x2ef   :  { %v1714_v47 = vadd.f32 %v6406_v17, %v1556_v46  ;;  %v1558_v50 = vpop.f32.mrb[34].mxu0  ;;  %4665 = vmatprep.mubr.msk.bf16.mxu1 %vm1905_vm2, %v6535_v40 }
 0x2f0   :  { %v1715_v51 = vadd.f32 %v6402_v16, %v1558_v50  ;;  %v1560_v54 = vpop.f32.mrb[35].mxu0  ;;  %2041 = vmatmul.mubr.bf16.gmra.mrb[28].mxu1 %v6533_v39  ;;  %v1769_v62 = vmax.f32 %v1713_v42, 0.0 }
 0x2f1   :  { %v1716_v55 = vadd.f32 %v6406_v17, %v1560_v54  ;;  %v1770_v4 = vmax.f32 %v1714_v47, 0.0 }
 0x2f2   :  { %v1771_v63 = vmax.f32 %v1715_v51, 0.0 }
 0x2f3   :  { %v1772_v6 = vmax.f32 %v1716_v55, 0.0 }
 0x2f4   :  { %v6544_v30 = vpack.c.bf16 %v1771_v63, %v1769_v62 }
 0x2f5   :  { %v6546_v7 = vpack.c.bf16 %v1772_v6, %v1770_v4  ;;  %v1564_v9 = vpop.f32.mrb[36].mxu0 }
 0x2f6   :  { %v1717_v10 = vadd.f32 %v6402_v16, %v1564_v9  ;;  %v1566_v37 = vpop.f32.mrb[37].mxu0 }
 0x2f7   :  { %v1718_v49 = vadd.f32 %v6406_v17, %v1566_v37  ;;  %v1568_v53 = vpop.f32.mrb[38].mxu0  ;;  %4666 = vmatprep.mubr.msk.bf16.mxu1 %vm1905_vm2, %v6546_v7 }
 0x2f8   :  { %v1719_v57 = vadd.f32 %v6402_v16, %v1568_v53  ;;  %v1570_v3 = vpop.f32.mrb[39].mxu0  ;;  %2049 = vmatmul.mubr.bf16.gmra.mrb[32].mxu1 %v6544_v30  ;;  %v1773_v8 = vmax.f32 %v1717_v10, 0.0 }
 0x2f9   :  { %v1720_v5 = vadd.f32 %v6406_v17, %v1570_v3  ;;  %v1774_v19 = vmax.f32 %v1718_v49, 0.0 }
 0x2fa   :  { %v1775_v12 = vmax.f32 %v1719_v57, 0.0 }
 0x2fb   :  { %v1776_v27 = vmax.f32 %v1720_v5, 0.0 }
 0x2fc   :  { %v6555_v36 = vpack.c.bf16 %v1775_v12, %v1773_v8 }
 0x2fd   :  { %v6557_v43 = vpack.c.bf16 %v1776_v27, %v1774_v19  ;;  %v1574_v48 = vpop.f32.mrb[40].mxu0 }
 0x2fe   :  { %v1721_v52 = vadd.f32 %v6402_v16, %v1574_v48  ;;  %v1576_v20 = vpop.f32.mrb[41].mxu0 }
 0x2ff   :  { %v1722_v21 = vadd.f32 %v6406_v17, %v1576_v20  ;;  %v1578_v23 = vpop.f32.mrb[42].mxu0  ;;  %4667 = vmatprep.mubr.msk.bf16.mxu1 %vm1905_vm2, %v6557_v43 }
 0x300   :  { %v1723_v24 = vadd.f32 %v6402_v16, %v1578_v23  ;;  %v1580_v25 = vpop.f32.mrb[43].mxu0  ;;  %2057 = vmatmul.mubr.bf16.gmra.mrb[36].mxu1 %v6555_v36  ;;  %v1777_v28 = vmax.f32 %v1721_v52, 0.0 }
 0x301   :  { %v1724_v26 = vadd.f32 %v6406_v17, %v1580_v25  ;;  %v1778_v31 = vmax.f32 %v1722_v21, 0.0 }
 0x302   :  { %v1779_v29 = vmax.f32 %v1723_v24, 0.0 }
 0x303   :  { %v1780_v32 = vmax.f32 %v1724_v26, 0.0 }
 0x304   :  { %v6566_v34 = vpack.c.bf16 %v1779_v29, %v1777_v28 }
 0x305   :  { %v6568_v38 = vpack.c.bf16 %v1780_v32, %v1778_v31  ;;  %v1584_v41 = vpop.f32.mrb[44].mxu0 }
 0x306   :  { %v1725_v42 = vadd.f32 %v6402_v16, %v1584_v41  ;;  %v1586_v46 = vpop.f32.mrb[45].mxu0 }
 0x307   :  { %v1726_v47 = vadd.f32 %v6406_v17, %v1586_v46  ;;  %v1588_v50 = vpop.f32.mrb[46].mxu0  ;;  %4668 = vmatprep.mubr.msk.bf16.mxu1 %vm1905_vm2, %v6568_v38 }
 0x308   :  { %v1727_v51 = vadd.f32 %v6402_v16, %v1588_v50  ;;  %v1590_v54 = vpop.f32.mrb[47].mxu0  ;;  %2065 = vmatmul.mubr.bf16.gmra.mrb[40].mxu1 %v6566_v34  ;;  %v1781_v62 = vmax.f32 %v1725_v42, 0.0 }
 0x309   :  { %v1728_v55 = vadd.f32 %v6406_v17, %v1590_v54  ;;  %v1782_v4 = vmax.f32 %v1726_v47, 0.0 }
 0x30a   :  { %v1783_v63 = vmax.f32 %v1727_v51, 0.0 }
 0x30b   :  { %v1784_v6 = vmax.f32 %v1728_v55, 0.0 }
 0x30c   :  { %v6577_v9 = vpack.c.bf16 %v1783_v63, %v1781_v62 }
 0x30d   :  { %v6579_v10 = vpack.c.bf16 %v1784_v6, %v1782_v4  ;;  %v1594_v37 = vpop.f32.mrb[48].mxu0 }
 0x30e   :  { %v1729_v49 = vadd.f32 %v6402_v16, %v1594_v37  ;;  %v1596_v53 = vpop.f32.mrb[49].mxu0 }
 0x30f   :  { %v1730_v57 = vadd.f32 %v6406_v17, %v1596_v53  ;;  %v1598_v3 = vpop.f32.mrb[50].mxu0  ;;  %4669 = vmatprep.mubr.msk.bf16.mxu1 %vm1905_vm2, %v6579_v10 }
 0x310   :  { %v1731_v5 = vadd.f32 %v6402_v16, %v1598_v3  ;;  %v1600_v8 = vpop.f32.mrb[51].mxu0  ;;  %2073 = vmatmul.mubr.bf16.gmra.mrb[44].mxu1 %v6577_v9  ;;  %v1785_v19 = vmax.f32 %v1729_v49, 0.0 }
 0x311   :  { %v1732_v12 = vadd.f32 %v6406_v17, %v1600_v8  ;;  %v1786_v48 = vmax.f32 %v1730_v57, 0.0 }
 0x312   :  { %v1787_v27 = vmax.f32 %v1731_v5, 0.0 }
 0x313   :  { %v1788_v52 = vmax.f32 %v1732_v12, 0.0 }
 0x314   :  { %v1817_v20 = vpack.c.bf16 %v1787_v27, %v1785_v19 }
 0x315   :  { %v1818_v21 = vpack.c.bf16 %v1788_v52, %v1786_v48  ;;  %v1604_v23 = vpop.f32.mrb[52].mxu0 }
 0x316   :  { %v1733_v24 = vadd.f32 %v6402_v16, %v1604_v23  ;;  %v1606_v25 = vpop.f32.mrb[53].mxu0 }
 0x317   :  { %v1734_v26 = vadd.f32 %v6406_v17, %v1606_v25  ;;  %v1608_v28 = vpop.f32.mrb[54].mxu0  ;;  %4670 = vmatprep.mubr.msk.bf16.mxu1 %vm1905_vm2, %v1818_v21 }
 0x318   :  { %v1735_v29 = vadd.f32 %v6402_v16, %v1608_v28  ;;  %v1610_v31 = vpop.f32.mrb[55].mxu0  ;;  %2081 = vmatmul.mubr.bf16.gmra.mrb[48].mxu1 %v1817_v20  ;;  %v1789_v41 = vmax.f32 %v1733_v24, 0.0  ;;  %v5552_v16 = vld [vmem:[%s7349_s5 + $0x58] ss:$8 sps:$4 sm:$0xff]  }
 0x319   :  { %v1736_v32 = vadd.f32 %v6406_v17, %v1610_v31  ;;  %v1790_v46 = vmax.f32 %v1734_v26, 0.0  ;;  %v5554_v17 = vld [vmem:[%s7349_s5 + $0x5c] ss:$8 sps:$4 sm:$0xff]  }
 0x31a   :  { %v1791_v42 = vmax.f32 %v1735_v29, 0.0  ;;  %2581 = vmatprep.subr.bf16.mxu1 %v5554_v17 }
 0x31b   :  { %v1792_v47 = vmax.f32 %v1736_v32, 0.0 }
 0x31c   :  { %v1819_v50 = vpack.c.bf16 %v1791_v42, %v1789_v41 }
 0x31d   :  { %v1820_v51 = vpack.c.bf16 %v1792_v47, %v1790_v46 }
 0x31f   :  { %4671 = vmatprep.mubr.msk.bf16.mxu1 %vm1905_vm2, %v1820_v51 }
 0x320   :  { %2089 = vmatmul.mubr.bf16.gmra.mrb[52].mxu1 %v1819_v50 }
 0x321   :  { %4683 = vmatprep.mubr.msk.bf16.mxu1 %vm1905_vm2, %v6414_v35  ;;  %v5557_v35 = vld [vmem:[%s7349_s5 + $0x6c] ss:$8 sps:$4 sm:$0xff]  }
 0x328   :  { %2217 = vmatmul.mubr.bf16.vlgmr.msra.gmra.mrb[56].mxu1 %v6412_v33  ;;  %v5555_v33 = vld [vmem:[%s7349_s5 + $0x68] ss:$8 sps:$4 sm:$0xff]  }
 0x329   :  { %4684 = vmatprep.mubr.msk.bf16.mxu1 %vm1905_vm2, %v6432_v59  ;;  %2582 = vmatpush1.bf16.msra.mxu1 %v5552_v16  ;;  %v5560_v59 = vld [vmem:[%s7349_s5 + $0x7c] ss:$8 sps:$4 sm:$0xff]  }
 0x32a   :  { %2583 = vmatprep.subr.bf16.mxu1 %v5557_v35 }
 0x32d   :  { %2584 = vmatpush1.bf16.msra.mxu1 %v5555_v33 }
 0x32e   :  { %2585 = vmatprep.subr.bf16.mxu1 %v5560_v59 }
 0x330   :  { %2225 = vmatmul.mubr.bf16.gmra.mrb[60].mxu1 %v6430_v58  ;;  %v5558_v58 = vld [vmem:[%s7349_s5 + $0x78] ss:$8 sps:$4 sm:$0xff]  }
 0x331   :  { %4685 = vmatprep.mubr.msk.bf16.mxu1 %vm1905_vm2, %v6451_v2  ;;  %2586 = vmatpush1.bf16.msra.mxu1 %v5558_v58 }
 0x338   :  { %2233 = vmatmul.mubr.bf16.gmra.mrb[64].mxu1 %v6449_v61 }
 0x339   :  { %4686 = vmatprep.mubr.msk.bf16.mxu1 %vm1905_vm2, %v6470_v18 }
 0x340   :  { %2241 = vmatmul.mubr.bf16.gmra.mrb[68].mxu1 %v6468_v22 }
 0x341   :  { %4687 = vmatprep.mubr.msk.bf16.mxu1 %vm1905_vm2, %v6489_v44  ;;  %v5563_v44 = vld [vmem:[%s7349_s5 + $0x8c] ss:$8 sps:$4 sm:$0xff]  }
 0x342   :  { %2587 = vmatprep.subr.bf16.mxu1 %v5563_v44 }
 0x348   :  { %2249 = vmatmul.mubr.bf16.gmra.mrb[72].mxu1 %v6487_v11  ;;  %v5561_v11 = vld [vmem:[%s7349_s5 + $0x88] ss:$8 sps:$4 sm:$0xff]  }
 0x349   :  { %4688 = vmatprep.mubr.msk.bf16.mxu1 %vm1905_vm2, %v6511_v45  ;;  %2588 = vmatpush1.bf16.msra.mxu1 %v5561_v11 }
 0x350   :  { %2257 = vmatmul.mubr.bf16.gmra.mrb[76].mxu1 %v6509_v13 }
 0x351   :  { %4689 = vmatprep.mubr.msk.bf16.mxu1 %vm1905_vm2, %v6524_v14 }
 0x358   :  { %2265 = vmatmul.mubr.bf16.gmra.mrb[80].mxu1 %v6522_v56 }
 0x359   :  { %4690 = vmatprep.mubr.msk.bf16.mxu1 %vm1905_vm2, %v6535_v40 }
 0x360   :  { %2273 = vmatmul.mubr.bf16.gmra.mrb[84].mxu1 %v6533_v39  ;;  %v5566_v39 = vld [vmem:[%s7349_s5 + $0x9c] ss:$8 sps:$4 sm:$0xff]  }
 0x361   :  { %4691 = vmatprep.mubr.msk.bf16.mxu1 %vm1905_vm2, %v6546_v7  ;;  %2589 = vmatprep.subr.bf16.mxu1 %v5566_v39 }
 0x368   :  { %2281 = vmatmul.mubr.bf16.gmra.mrb[88].mxu1 %v6544_v30  ;;  %v5564_v30 = vld [vmem:[%s7349_s5 + $0x98] ss:$8 sps:$4 sm:$0xff]  }
 0x369   :  { %4692 = vmatprep.mubr.msk.bf16.mxu1 %vm1905_vm2, %v6557_v43  ;;  %2590 = vmatpush1.bf16.msra.mxu1 %v5564_v30  ;;  %v4707_v43 = vld [vmem:[%s7349_s5 + $0xa8] sm:$0x33] }
 0x36a   :  { %v4718_v54 = vcombine.low %v4707_v43, %v4707_v43 }
 0x36c   :  { %v2576_v55 = vsel %vm2574_vm3, %v4718_v54, 0 }
 0x370   :  { %2289 = vmatmul.mubr.bf16.gmra.mrb[92].mxu1 %v6555_v36 }
 0x371   :  { %4693 = vmatprep.mubr.msk.bf16.mxu1 %vm1905_vm2, %v6568_v38  ;;  %v4719_v38 = vcombine.high %v4707_v43, %v4707_v43 }
 0x373   :  { %4720 = vmatprep.subr.msk.bf16.mxu1 %vm2574_vm3, %v4719_v38 }
 0x374   :  { %2592 = vmatpush1.bf16.msra.mxu1 %v2576_v55 }
 0x378   :  { %2297 = vmatmul.mubr.bf16.gmra.mrb[96].mxu1 %v6566_v34 }
 0x379   :  { %4694 = vmatprep.mubr.msk.bf16.mxu1 %vm1905_vm2, %v6579_v10 }
 0x380   :  { %2305 = vmatmul.mubr.bf16.gmra.mrb[100].mxu1 %v6577_v9 }
 0x381   :  { %4695 = vmatprep.mubr.msk.bf16.mxu1 %vm1905_vm2, %v1818_v21 }
 0x388   :  { %2313 = vmatmul.mubr.bf16.gmra.mrb[104].mxu1 %v1817_v20  ;;  %v5571_v20 = vld [vmem:[%s7349_s5 + $0x4] ss:$8 sps:$4 sm:$0xff]  }
 0x389   :  { %4696 = vmatprep.mubr.msk.bf16.mxu1 %vm1905_vm2, %v1820_v51  ;;  %2735 = vmatprep.subr.bf16.mxu1 %v5571_v20 }
 0x38b   :  { %v6650_v61 = vpop.f32.mrb[0].mxu1 }
 0x38c   :  { %v1988_v2 = vpop.f32.mrb[1].mxu1 }
 0x38d   :  { %v6652_v22 = vpop.f32.mrb[2].mxu1 }
 0x38e   :  { %v1991_v18 = vpop.f32.mrb[3].mxu1 }
 0x390   :  { %2321 = vmatmul.mubr.bf16.gmra.mrb[108].mxu1 %v1819_v50 }
 0x391   :  { %2613 = vmatprep.mubr.bf16.mxu1 %v5696_v1 }
 0x393   :  { %v6661_v13 = vpop.f32.mrb[4].mxu1 }
 0x394   :  { %v1996_v45 = vpop.f32.mrb[5].mxu1 }
 0x395   :  { %v6663_v56 = vpop.f32.mrb[6].mxu1 }
 0x396   :  { %v1999_v14 = vpop.f32.mrb[7].mxu1 }
 0x39b   :  { %v6668_v40 = vpop.f32.mrb[8].mxu1 }
 0x39c   :  { %v2004_v7 = vpop.f32.mrb[9].mxu1 }
 0x39d   :  { %v6673_v36 = vpop.f32.mrb[10].mxu1 }
 0x39e   :  { %v2007_v34 = vpop.f32.mrb[11].mxu1 }
 0x3a3   :  { %v6680_v62 = vpop.f32.mrb[12].mxu1 }
 0x3a4   :  { %v2012_v63 = vpop.f32.mrb[13].mxu1 }
 0x3a5   :  { %v6682_v4 = vpop.f32.mrb[14].mxu1 }
 0x3a6   :  { %v2015_v6 = vpop.f32.mrb[15].mxu1 }
 0x3ab   :  { %v6684_v9 = vpop.f32.mrb[16].mxu1 }
 0x3ac   :  { %v2020_v10 = vpop.f32.mrb[17].mxu1 }
 0x3ad   :  { %v6686_v37 = vpop.f32.mrb[18].mxu1 }
 0x3ae   :  { %v2023_v49 = vpop.f32.mrb[19].mxu1 }
 0x3b3   :  { %v6688_v53 = vpop.f32.mrb[20].mxu1 }
 0x3b4   :  { %v2028_v57 = vpop.f32.mrb[21].mxu1 }
 0x3b5   :  { %v6690_v3 = vpop.f32.mrb[22].mxu1 }
 0x3b6   :  { %v2031_v5 = vpop.f32.mrb[23].mxu1 }
 0x3bb   :  { %v6692_v8 = vpop.f32.mrb[24].mxu1 }
 0x3bc   :  { %v2036_v12 = vpop.f32.mrb[25].mxu1 }
 0x3bd   :  { %v6694_v19 = vpop.f32.mrb[26].mxu1 }
 0x3be   :  { %v2039_v27 = vpop.f32.mrb[27].mxu1 }
 0x3c3   :  { %v6696_v48 = vpop.f32.mrb[28].mxu1 }
 0x3c4   :  { %v2044_v52 = vpop.f32.mrb[29].mxu1 }
 0x3c5   :  { %v6701_v21 = vpop.f32.mrb[30].mxu1 }
 0x3c6   :  { %v2047_v23 = vpop.f32.mrb[31].mxu1 }
 0x3cb   :  { %v6703_v24 = vpop.f32.mrb[32].mxu1 }
 0x3cc   :  { %v2052_v25 = vpop.f32.mrb[33].mxu1 }
 0x3cd   :  { %v6705_v26 = vpop.f32.mrb[34].mxu1 }
 0x3ce   :  { %v2055_v28 = vpop.f32.mrb[35].mxu1 }
 0x3d3   :  { %v6707_v29 = vpop.f32.mrb[36].mxu1 }
 0x3d4   :  { %v2060_v31 = vpop.f32.mrb[37].mxu1 }
 0x3d5   :  { %v6709_v32 = vpop.f32.mrb[38].mxu1 }
 0x3d6   :  { %v2063_v41 = vpop.f32.mrb[39].mxu1 }
 0x3db   :  { %v6711_v42 = vpop.f32.mrb[40].mxu1 }
 0x3dc   :  { %v2068_v46 = vpop.f32.mrb[41].mxu1 }
 0x3dd   :  { %v6713_v47 = vpop.f32.mrb[42].mxu1 }
 0x3de   :  { %v2071_v50 = vpop.f32.mrb[43].mxu1 }
 0x3e3   :  { %v6715_v51 = vpop.f32.mrb[44].mxu1 }
 0x3e4   :  { %v2076_v16 = vpop.f32.mrb[45].mxu1 }
 0x3e5   :  { %v6717_v17 = vpop.f32.mrb[46].mxu1 }
 0x3e6   :  { %v2079_v33 = vpop.f32.mrb[47].mxu1 }
 0x3eb   :  { %v6719_v35 = vpop.f32.mrb[48].mxu1 }
 0x3ec   :  { %v2084_v58 = vpop.f32.mrb[49].mxu1 }
 0x3ed   :  { %v6721_v59 = vpop.f32.mrb[50].mxu1 }
 0x3ee   :  { %v2087_v2 = vpop.f32.mrb[51].mxu1 }
 0x3f3   :  { %v6723_v18 = vpop.f32.mrb[52].mxu1 }
 0x3f4   :  { %v2092_v11 = vpop.f32.mrb[53].mxu1 }
 0x3f5   :  { %v6725_v44 = vpop.f32.mrb[54].mxu1 }
 0x3f6   :  { %v2095_v45 = vpop.f32.mrb[55].mxu1 }
 0x3fb   :  { %v2218_v14 = vpop.f32.mrb[56].mxu1 }
 0x3fc   :  { %v2329_v39 = vmax.f32 %v6650_v61, %v2218_v14  ;;  %v2220_v30 = vpop.f32.mrb[57].mxu1 }
 0x3fd   :  { %v2221_v7 = vpop.f32.mrb[58].mxu1 }
 0x3fe   :  { %v2330_v43 = vmax.f32 %v6652_v22, %v2221_v7  ;;  %v2223_v34 = vpop.f32.mrb[59].mxu1 }
 0x400   :  { %v2357_v38 = vpack.c.bf16 %v2330_v43, %v2329_v39 }
 0x402   :  { %v2372_v5 = vrot.slane %v2357_v38, 4 }
 0x403   :  { %v2226_v54 = vpop.f32.mrb[60].mxu1 }
 0x404   :  { %v2331_v55 = vmax.f32 %v6661_v13, %v2226_v54  ;;  %v2228_v63 = vpop.f32.mrb[61].mxu1  ;;  %v2374_v22 = vmax.bf16 %v2372_v5, %v2357_v38  ;;  %v5572_v5 = vld [vmem:[%s7349_s5 + $0x10] ss:$8 sps:$4 sm:$0xff]  }
 0x405   :  { %v2229_v6 = vpop.f32.mrb[62].mxu1  ;;  %v5574_v63 = vld [vmem:[%s7349_s5 + $0x14] ss:$8 sps:$4 sm:$0xff]  }
 0x406   :  { %v2332_v10 = vmax.f32 %v6663_v56, %v2229_v6  ;;  %v2231_v49 = vpop.f32.mrb[63].mxu1 }
 0x408   :  { %v2358_v57 = vpack.c.bf16 %v2332_v10, %v2331_v55 }
 0x40a   :  { %v2376_v12 = vrot.slane %v2358_v57, 4 }
 0x40b   :  { %v2234_v27 = vpop.f32.mrb[64].mxu1 }
 0x40c   :  { %v2378_v52 = vmax.bf16 %v2376_v12, %v2358_v57  ;;  %v2333_v61 = vmax.f32 %v6668_v40, %v2234_v27  ;;  %v2236_v20 = vpop.f32.mrb[65].mxu1 }
 0x40d   :  { %v2237_v23 = vpop.f32.mrb[66].mxu1 }
 0x40e   :  { %v2428_v25 = vrot.slane %v2378_v52, 4  ;;  %v2334_v28 = vmax.f32 %v6673_v36, %v2237_v23  ;;  %v2239_v31 = vpop.f32.mrb[67].mxu1  ;;  %v5577_v52 = vld [vmem:[%s7349_s5 + $0x24] ss:$8 sps:$4 sm:$0xff]  }
 0x410   :  { %v6734_v13 = vsel %vm1948_vm1, %v2374_v22, %v2428_v25  ;;  %v2359_v41 = vpack.c.bf16 %v2334_v28, %v2333_v61  ;;  %v5575_v61 = vld [vmem:[%s7349_s5 + $0x20] ss:$8 sps:$4 sm:$0xff]   ;;  %v5580_v22 = vld [vmem:[%s7349_s5 + $0x34] ss:$8 sps:$4 sm:$0xff]  }
 0x412   :  { %v2380_v2 = vrot.slane %v2359_v41, 4 }
 0x413   :  { %v2242_v56 = vpop.f32.mrb[68].mxu1 }
 0x414   :  { %v2335_v46 = vmax.f32 %v6680_v62, %v2242_v56  ;;  %v2244_v50 = vpop.f32.mrb[69].mxu1  ;;  %v2382_v7 = vmax.bf16 %v2380_v2, %v2359_v41  ;;  %v5578_v56 = vld [vmem:[%s7349_s5 + $0x30] ss:$8 sps:$4 sm:$0xff]  }
 0x415   :  { %v2245_v16 = vpop.f32.mrb[70].mxu1 }
 0x416   :  { %v2336_v33 = vmax.f32 %v6682_v4, %v2245_v16  ;;  %v2247_v58 = vpop.f32.mrb[71].mxu1  ;;  %v2492_v4 = vrot.slane %v6734_v13, 4 }
 0x417   :  { %v5583_v58 = vld [vmem:[%s7349_s5 + $0x44] ss:$8 sps:$4 sm:$0xff]  }
 0x418   :  { %v2360_v40 = vpack.c.bf16 %v2336_v33, %v2335_v46 }
 0x41a   :  { %v2384_v11 = vrot.slane %v2360_v40, 4 }
 0x41b   :  { %v2250_v45 = vpop.f32.mrb[72].mxu1 }
 0x41c   :  { %v2386_v14 = vmax.bf16 %v2384_v11, %v2360_v40  ;;  %v2337_v36 = vmax.f32 %v6684_v9, %v2250_v45  ;;  %v2252_v39 = vpop.f32.mrb[73].mxu1  ;;  %v5569_v9 = vld [vmem:[%s7349_s5] ss:$8 sps:$4 sm:$0xff]  }
 0x41d   :  { %v2253_v30 = vpop.f32.mrb[74].mxu1 }
 0x41e   :  { %v2430_v43 = vrot.slane %v2386_v14, 4  ;;  %v2338_v34 = vmax.f32 %v6686_v37, %v2253_v30  ;;  %v2255_v38 = vpop.f32.mrb[75].mxu1 }
 0x420   :  { %v6741_v62 = vsel %vm1948_vm1, %v2382_v7, %v2430_v43  ;;  %v2361_v54 = vpack.c.bf16 %v2338_v34, %v2337_v36 }
 0x421   :  { %v2493_v55 = vrot.slane %v6741_v62, 4 }
 0x422   :  { %v2388_v20 = vrot.slane %v2361_v54, 4 }
 0x423   :  { %v2258_v6 = vpop.f32.mrb[76].mxu1  ;;  %v2494_v37 = vsel %vm1948_vm1, %v2492_v4, %v2493_v55  ;;  %v5588_v4 = vld [vmem:[%s7349_s5 + $0xb4] ss:$8 sps:$4 sm:$0xff]  }
 0x424   :  { %v2339_v10 = vmax.f32 %v6688_v53, %v2258_v6  ;;  %v2260_v49 = vpop.f32.mrb[77].mxu1  ;;  %4721 = vmatmul.mubr.msk.bf16.vlgmr.msra.gmra.mrb[112].mxu1 %vm2558_vm4, %v2494_v37  ;;  %v2390_v46 = vmax.bf16 %v2388_v20, %v2361_v54 }
 0x425   :  { %v2261_v57 = vpop.f32.mrb[78].mxu1  ;;  %2623 = vmatprep.mubr.bf16.mxu1 %v5696_v1  ;;  %2736 = vmatpush1.bf16.msra.mxu1 %v5569_v9 }
 0x426   :  { %v2340_v12 = vmax.f32 %v6690_v3, %v2261_v57  ;;  %v2263_v27 = vpop.f32.mrb[79].mxu1  ;;  %2737 = vmatprep.subr.bf16.mxu1 %v5574_v63 }
 0x428   :  { %v2362_v53 = vpack.c.bf16 %v2340_v12, %v2339_v10 }
 0x429   :  { %2738 = vmatpush1.bf16.msra.mxu1 %v5572_v5 }
 0x42a   :  { %v2392_v23 = vrot.slane %v2362_v53, 4  ;;  %2739 = vmatprep.subr.bf16.mxu1 %v5577_v52 }
 0x42b   :  { %v2266_v3 = vpop.f32.mrb[80].mxu1 }
 0x42c   :  { %v2394_v25 = vmax.bf16 %v2392_v23, %v2362_v53  ;;  %v2341_v28 = vmax.f32 %v6692_v8, %v2266_v3  ;;  %v2268_v31 = vpop.f32.mrb[81].mxu1  ;;  %v2472_v8 = vld [vmem:[%s7349_s5 + $0x50] sm:$0x33] }
 0x42d   :  { %v2269_v41 = vpop.f32.mrb[82].mxu1  ;;  %2740 = vmatpush1.bf16.msra.mxu1 %v5575_v61  ;;  %v4737_v45 = vcombine.high %v2472_v8, %v2472_v8  ;;  %v4736_v14 = vcombine.low %v2472_v8, %v2472_v8 }
 0x42e   :  { %v2432_v50 = vrot.slane %v2394_v25, 4  ;;  %v2342_v16 = vmax.f32 %v6694_v19, %v2269_v41  ;;  %v2271_v33 = vpop.f32.mrb[83].mxu1  ;;  %2741 = vmatprep.subr.bf16.mxu1 %v5580_v22  ;;  %v5581_v19 = vld [vmem:[%s7349_s5 + $0x40] ss:$8 sps:$4 sm:$0xff]  }
 0x42f   :  { %v2730_v54 = vsel %vm2574_vm3, %v4736_v14, 0 }
 0x430   :  { %v6780_v40 = vsel %vm1948_vm1, %v2390_v46, %v2432_v50  ;;  %v2363_v2 = vpack.c.bf16 %v2342_v16, %v2341_v28 }
 0x431   :  { %v2495_v11 = vrot.slane %v6780_v40, 4  ;;  %2742 = vmatpush1.bf16.msra.mxu1 %v5578_v56 }
 0x432   :  { %2743 = vmatprep.subr.bf16.mxu1 %v5583_v58 }
 0x433   :  { %v2274_v36 = vpop.f32.mrb[84].mxu1  ;;  %v6787_v39 = vsel %vm1948_vm1, %v2493_v55, %v2495_v11  ;;  %v2396_v55 = vrot.slane %v2363_v2, 4 }
 0x434   :  { %v2343_v30 = vmax.f32 %v6696_v48, %v2274_v36  ;;  %v2276_v7 = vpop.f32.mrb[85].mxu1  ;;  %4722 = vmatmul.mubr.msk.bf16.gmra.mrb[116].mxu1 %vm2558_vm4, %v6787_v39 }
 0x435   :  { %v2277_v43 = vpop.f32.mrb[86].mxu1  ;;  %2633 = vmatprep.mubr.bf16.mxu1 %v5696_v1  ;;  %2744 = vmatpush1.bf16.msra.mxu1 %v5581_v19  ;;  %v2398_v49 = vmax.bf16 %v2396_v55, %v2363_v2 }
 0x436   :  { %v2344_v34 = vmax.f32 %v6701_v21, %v2277_v43  ;;  %v2279_v38 = vpop.f32.mrb[87].mxu1  ;;  %4738 = vmatprep.subr.msk.bf16.mxu1 %vm2574_vm3, %v4737_v45 }
 0x438   :  { %v2364_v48 = vpack.c.bf16 %v2344_v34, %v2343_v30 }
 0x439   :  { %2746 = vmatpush1.bf16.msra.mxu1 %v2730_v54 }
 0x43a   :  { %v2400_v9 = vrot.slane %v2364_v48, 4  ;;  %2893 = vmatprep.subr.bf16.mxu1 %v5588_v4 }
 0x43b   :  { %v2282_v63 = vpop.f32.mrb[88].mxu1 }
 0x43c   :  { %v2402_v6 = vmax.bf16 %v2400_v9, %v2364_v48  ;;  %v2345_v37 = vmax.f32 %v6703_v24, %v2282_v63  ;;  %v2284_v10 = vpop.f32.mrb[89].mxu1 }
 0x43d   :  { %v2285_v21 = vpop.f32.mrb[90].mxu1 }
 0x43e   :  { %v2434_v57 = vrot.slane %v2402_v6, 4  ;;  %v2346_v5 = vmax.f32 %v6705_v26, %v2285_v21  ;;  %v2287_v12 = vpop.f32.mrb[91].mxu1 }
 0x440   :  { %v6802_v27 = vsel %vm1948_vm1, %v2398_v49, %v2434_v57  ;;  %v2365_v52 = vpack.c.bf16 %v2346_v5, %v2345_v37 }
 0x441   :  { %v2497_v53 = vrot.slane %v6802_v27, 4 }
 0x442   :  { %v2404_v28 = vrot.slane %v2365_v52, 4 }
 0x443   :  { %v2290_v61 = vpop.f32.mrb[92].mxu1  ;;  %v6806_v20 = vsel %vm1948_vm1, %v2495_v11, %v2497_v53 }
 0x444   :  { %v2347_v23 = vmax.f32 %v6707_v29, %v2290_v61  ;;  %v2292_v24 = vpop.f32.mrb[93].mxu1  ;;  %4723 = vmatmul.mubr.msk.bf16.gmra.mrb[120].mxu1 %vm2558_vm4, %v6806_v20  ;;  %v2406_v29 = vmax.bf16 %v2404_v28, %v2365_v52 }
 0x445   :  { %v2293_v22 = vpop.f32.mrb[94].mxu1  ;;  %2643 = vmatprep.mubr.bf16.mxu1 %v5696_v1 }
 0x446   :  { %v2348_v26 = vmax.f32 %v6709_v32, %v2293_v22  ;;  %v2295_v3 = vpop.f32.mrb[95].mxu1 }
 0x447   :  { %v5594_v3 = vld [vmem:[%s7349_s5 + $0xd4] ss:$8 sps:$4 sm:$0xff]  }
 0x448   :  { %v2366_v25 = vpack.c.bf16 %v2348_v26, %v2347_v23 }
 0x44a   :  { %v2408_v31 = vrot.slane %v2366_v25, 4 }
 0x44b   :  { %v2298_v41 = vpop.f32.mrb[96].mxu1 }
 0x44c   :  { %v2410_v56 = vmax.bf16 %v2408_v31, %v2366_v25  ;;  %v2349_v46 = vmax.f32 %v6711_v42, %v2298_v41  ;;  %v2300_v50 = vpop.f32.mrb[97].mxu1  ;;  %v5597_v31 = vld [vmem:[%s7349_s5 + $0xe4] ss:$8 sps:$4 sm:$0xff]  }
 0x44d   :  { %v2301_v16 = vpop.f32.mrb[98].mxu1  ;;  %v4754_v50 = vld [vmem:[%s7349_s5 + $0x100] sm:$0x33] }
 0x44e   :  { %v2436_v33 = vrot.slane %v2410_v56, 4  ;;  %v2350_v58 = vmax.f32 %v6713_v47, %v2301_v16  ;;  %v2303_v8 = vpop.f32.mrb[99].mxu1  ;;  %v5595_v56 = vld [vmem:[%s7349_s5 + $0xe0] ss:$8 sps:$4 sm:$0xff]   ;;  %v5598_v16 = vld [vmem:[%s7349_s5 + $0xf0] ss:$8 sps:$4 sm:$0xff]  }
 0x44f   :  { %v5605_v8 = vld [vmem:[%s7349_s5 + $0x10c] ss:$8 sps:$4 sm:$0xff]  }
 0x450   :  { %v6816_v2 = vsel %vm1948_vm1, %v2406_v29, %v2436_v33  ;;  %v2367_v11 = vpack.c.bf16 %v2350_v58, %v2349_v46  ;;  %v5600_v46 = vld [vmem:[%s7349_s5 + $0xf4] ss:$8 sps:$4 sm:$0xff]   ;;  %v4766_v29 = vcombine.high %v4754_v50, %v4754_v50  ;;  %v4765_v33 = vcombine.low %v4754_v50, %v4754_v50 }
 0x451   :  { %v2499_v32 = vrot.slane %v6816_v2, 4 }
 0x452   :  { %v2412_v43 = vrot.slane %v2367_v11, 4  ;;  %v2888_v58 = vsel %vm2574_vm3, %v4765_v33, 0 }
 0x453   :  { %v2306_v19 = vpop.f32.mrb[100].mxu1  ;;  %v6820_v45 = vsel %vm1948_vm1, %v2497_v53, %v2499_v32  ;;  %v5586_v53 = vld [vmem:[%s7349_s5 + $0xb0] ss:$8 sps:$4 sm:$0xff]  }
 0x454   :  { %v2351_v14 = vmax.f32 %v6715_v51, %v2306_v19  ;;  %v2308_v42 = vpop.f32.mrb[101].mxu1  ;;  %4724 = vmatmul.mubr.msk.bf16.gmra.mrb[124].mxu1 %vm2558_vm4, %v6820_v45  ;;  %v2414_v51 = vmax.bf16 %v2412_v43, %v2367_v11  ;;  %v5603_v11 = vld [vmem:[%s7349_s5 + $0x108] ss:$8 sps:$4 sm:$0xff]   ;;  %v5606_v19 = vld [vmem:[%s7349_s5 + $0x118] ss:$8 sps:$4 sm:$0xff]  }
 0x455   :  { %v2309_v36 = vpop.f32.mrb[102].mxu1  ;;  %2653 = vmatprep.mubr.bf16.mxu1 %v5696_v1  ;;  %v5609_v42 = vld [vmem:[%s7349_s5 + $0x128] ss:$8 sps:$4 sm:$0xff]  }
 0x456   :  { %v2352_v47 = vmax.f32 %v6717_v17, %v2309_v36  ;;  %v2311_v30 = vpop.f32.mrb[103].mxu1  ;;  %v5612_v36 = vld [vmem:[%s7349_s5 + $0x138] ss:$8 sps:$4 sm:$0xff]  }
 0x457   :  { %v4783_v30 = vld [vmem:[%s7349_s5 + $0x158] sm:$0x33] }
 0x458   :  { %v2368_v7 = vpack.c.bf16 %v2352_v47, %v2351_v14  ;;  %v5611_v14 = vld [vmem:[%s7349_s5 + $0x12c] ss:$8 sps:$4 sm:$0xff]   ;;  %v4795_v43 = vcombine.high %v4783_v30, %v4783_v30 }
 0x459   :  { %v5617_v47 = vld [vmem:[%s7349_s5 + $0x14c] ss:$8 sps:$4 sm:$0xff]  }
 0x45a   :  { %v2416_v34 = vrot.slane %v2368_v7, 4 }
 0x45b   :  { %v2314_v38 = vpop.f32.mrb[104].mxu1 }
 0x45c   :  { %v2418_v54 = vmax.bf16 %v2416_v34, %v2368_v7  ;;  %v2353_v4 = vmax.f32 %v6719_v35, %v2314_v38  ;;  %v2316_v48 = vpop.f32.mrb[105].mxu1  ;;  %v5615_v7 = vld [vmem:[%s7349_s5 + $0x148] ss:$8 sps:$4 sm:$0xff]   ;;  %v4794_v34 = vcombine.low %v4783_v30, %v4783_v30 }
 0x45d   :  { %v2317_v55 = vpop.f32.mrb[106].mxu1  ;;  %v5625_v48 = vld [vmem:[%s7349_s5 + $0x174] ss:$8 sps:$4 sm:$0xff]  }
 0x45e   :  { %v2438_v9 = vrot.slane %v2418_v54, 4  ;;  %v2354_v63 = vmax.f32 %v6721_v59, %v2317_v55  ;;  %v2319_v6 = vpop.f32.mrb[107].mxu1  ;;  %v3070_v38 = vsel %vm2574_vm3, %v4794_v34, 0  ;;  %v5622_v54 = vld [vmem:[%s7349_s5 + $0x164] ss:$8 sps:$4 sm:$0xff]   ;;  %v5649_v34 = vld [vmem:[%s7351_s8 + $0x10] sm:$0xff]  }
 0x45f   :  { %v5623_v55 = vld [vmem:[%s7349_s5 + $0x170] ss:$8 sps:$4 sm:$0xff]   ;;  %v5634_v6 = vld [vmem:[%s7349_s5 + $0x1a4] ss:$8 sps:$4 sm:$0xff]  }
 0x460   :  { %v6830_v37 = vsel %vm1948_vm1, %v2414_v51, %v2438_v9  ;;  %v2369_v10 = vpack.c.bf16 %v2354_v63, %v2353_v4  ;;  %v5620_v4 = vld [vmem:[%s7349_s5 + $0x160] ss:$8 sps:$4 sm:$0xff]   ;;  %v5628_v51 = vld [vmem:[%s7349_s5 + $0x184] ss:$8 sps:$4 sm:$0xff]   ;;  %v5629_v63 = vld [vmem:[%s7349_s5 + $0x190] ss:$8 sps:$4 sm:$0xff]  }
 0x461   :  { %v2501_v17 = vrot.slane %v6830_v37, 4  ;;  %v5626_v9 = vld [vmem:[%s7349_s5 + $0x180] ss:$8 sps:$4 sm:$0xff]  }
 0x462   :  { %v2420_v61 = vrot.slane %v2369_v10, 4 }
 0x463   :  { %v2322_v21 = vpop.f32.mrb[108].mxu1  ;;  %v6834_v49 = vsel %vm1948_vm1, %v2499_v32, %v2501_v17  ;;  %v5608_v32 = vld [vmem:[%s7349_s5 + $0x11c] ss:$8 sps:$4 sm:$0xff]  }
 0x464   :  { %v2355_v57 = vmax.f32 %v6723_v18, %v2322_v21  ;;  %v2324_v35 = vpop.f32.mrb[109].mxu1  ;;  %4725 = vmatmul.mubr.msk.bf16.gmra.mrb[128].mxu1 %vm2558_vm4, %v6834_v49  ;;  %v5591_v18 = vld [vmem:[%s7349_s5 + $0xc4] ss:$8 sps:$4 sm:$0xff]   ;;  %v2422_v22 = vmax.bf16 %v2420_v61, %v2369_v10  ;;  %v4812_v10 = vld [vmem:[%s7349_s5 + $0x1b0] sm:$0x33]  ;;  %v5658_v61 = vld [vmem:[%s7352_s9 + $0x58] sm:$0xff]  }
 0x465   :  { %v2325_v5 = vpop.f32.mrb[110].mxu1  ;;  %2767 = vmatprep.mubr.bf16.mxu1 %v5696_v1  ;;  %v4823_v21 = vcombine.low %v4812_v10, %v4812_v10  ;;  %v5639_v35 = vld [vmem:[%s7350_s7 + $0x10] sm:$0xff]  }
 0x466   :  { %v2356_v59 = vmax.f32 %v6725_v44, %v2325_v5  ;;  %v2327_v12 = vpop.f32.mrb[111].mxu1  ;;  %v5589_v44 = vld [vmem:[%s7349_s5 + $0xc0] ss:$8 sps:$4 sm:$0xff]  }
 0x467   :  { %v5641_v5 = vld [vmem:[%s7350_s7 + $0x20] sm:$0xff]  }
 0x468   :  { %v2370_v52 = vpack.c.bf16 %v2356_v59, %v2355_v57  ;;  %v3248_v57 = vsel %vm2574_vm3, %v4823_v21, 0  ;;  %v5643_v59 = vld [vmem:[%s7350_s7 + $0x30] sm:$0xff]   ;;  %v5645_v12 = vld [vmem:[%s7350_s7 + $0x40] sm:$0xff]  }
 0x46a   :  { %v2424_v23 = vrot.slane %v2370_v52, 4 }
 0x46c   :  { %v2426_v24 = vmax.bf16 %v2424_v23, %v2370_v52  ;;  %4739 = vmatmul.mubr.msk.bf16.vlgmr.msra.gmra.mrb[112].mxu1 %vm2558_vm4, %v6734_v13  ;;  %v5592_v13 = vld [vmem:[%s7349_s5 + $0xd0] ss:$8 sps:$4 sm:$0xff]   ;;  %v5697_v52 = vmov 0.0   ;;  %v3356_v23 = vld [vmem:[%s7353_s6] sm:$0x3] }
 0x46d   :  { %2894 = vmatpush1.bf16.msra.mxu1 %v5586_v53  ;;  %2777 = vmatprep.mubr.bf16.mxu1 %v5696_v1  ;;  %v5657_v53 = vld [vmem:[%s7352_s9 + $0x50] sm:$0xff]  }
 0x46e   :  { %v2440_v26 = vrot.slane %v2426_v24, 4  ;;  %2895 = vmatprep.subr.bf16.mxu1 %v5591_v18  ;;  %5024 = vmatprep.subr.bf16.mxu0 %v5697_v52  ;;  %v7064_v18 = vrot.slane %v3356_v23, %v1673_v0  ;;  %v7068_v24 = vrot.slane %v3356_v23, %v1677_v15 }
 0x46f   :  { %5025 = vmatpush3.bf16.msra.mxu0 %v5657_v53  ;;  %5034 = vmatprep.mubr.msk.bf16.mxu0 %vm5698_vm6, %v5697_v52 }
 0x470   :  { %v6857_v25 = vsel %vm1948_vm1, %v2422_v22, %v2440_v26  ;;  %5026 = vmatprep.subr.bf16.mxu0 %v5697_v52 }
 0x471   :  { %2896 = vmatpush1.bf16.msra.mxu1 %v5589_v44  ;;  %v3009_v28 = vrot.slane %v6857_v25, 4 }
 0x472   :  { %2897 = vmatprep.subr.bf16.mxu1 %v5594_v3 }
 0x473   :  { %v6867_v41 = vsel %vm1948_vm1, %v2501_v17, %v3009_v28  ;;  %v4824_v17 = vcombine.high %v4812_v10, %v4812_v10  ;;  %5027 = vmatpush3.bf16.msra.mxu0 %v5658_v61 }
 0x474   :  { %4740 = vmatmul.mubr.msk.bf16.gmra.mrb[116].mxu1 %vm2558_vm4, %v6741_v62  ;;  %5028 = vmatprep.subr.bf16.mxu0 %v5697_v52 }
 0x475   :  { %2787 = vmatprep.mubr.bf16.mxu1 %v5696_v1  ;;  %2898 = vmatpush1.bf16.msra.mxu1 %v5592_v13 }
 0x476   :  { %2899 = vmatprep.subr.bf16.mxu1 %v5597_v31 }
 0x479   :  { %2900 = vmatpush1.bf16.msra.mxu1 %v5595_v56 }
 0x47a   :  { %2901 = vmatprep.subr.bf16.mxu1 %v5600_v46 }
 0x47c   :  { %4741 = vmatmul.mubr.msk.bf16.gmra.mrb[120].mxu1 %vm2558_vm4, %v6780_v40 }
 0x47d   :  { %2797 = vmatprep.mubr.bf16.mxu1 %v5696_v1  ;;  %2902 = vmatpush1.bf16.msra.mxu1 %v5598_v16  ;;  %v5647_v16 = vld [vmem:[%s7351_s8] sm:$0xff]  }
 0x47e   :  { %4767 = vmatprep.subr.msk.bf16.mxu1 %vm2574_vm3, %v4766_v29 }
 0x481   :  { %2904 = vmatpush1.bf16.msra.mxu1 %v2888_v58 }
 0x482   :  { %3075 = vmatprep.subr.bf16.mxu1 %v5605_v8 }
 0x484   :  { %4742 = vmatmul.mubr.msk.bf16.gmra.mrb[124].mxu1 %vm2558_vm4, %v6802_v27 }
 0x485   :  { %2807 = vmatprep.mubr.bf16.mxu1 %v5696_v1 }
 0x48c   :  { %4743 = vmatmul.mubr.msk.bf16.gmra.mrb[128].mxu1 %vm2558_vm4, %v6816_v2 }
 0x48d   :  { %2925 = vmatprep.mubr.bf16.mxu1 %v5696_v1 }
 0x494   :  { %4768 = vmatmul.mubr.msk.bf16.vlgmr.msra.gmra.mrb[112].mxu1 %vm2558_vm4, %v6741_v62  ;;  %v5614_v62 = vld [vmem:[%s7349_s5 + $0x13c] ss:$8 sps:$4 sm:$0xff]  }
 0x495   :  { %3076 = vmatpush1.bf16.msra.mxu1 %v5603_v11  ;;  %2935 = vmatprep.mubr.bf16.mxu1 %v5696_v1 }
 0x496   :  { %3077 = vmatprep.subr.bf16.mxu1 %v5608_v32 }
 0x499   :  { %3078 = vmatpush1.bf16.msra.mxu1 %v5606_v19 }
 0x49a   :  { %3079 = vmatprep.subr.bf16.mxu1 %v5611_v14  ;;  %v5648_v14 = vld [vmem:[%s7351_s8 + $0x8] sm:$0xff]  }
 0x49c   :  { %4769 = vmatmul.mubr.msk.bf16.gmra.mrb[116].mxu1 %vm2558_vm4, %v6780_v40 }
 0x49d   :  { %2945 = vmatprep.mubr.bf16.mxu1 %v5696_v1  ;;  %3080 = vmatpush1.bf16.msra.mxu1 %v5609_v42 }
 0x49e   :  { %3081 = vmatprep.subr.bf16.mxu1 %v5614_v62 }
 0x4a1   :  { %3082 = vmatpush1.bf16.msra.mxu1 %v5612_v36 }
 0x4a2   :  { %3083 = vmatprep.subr.bf16.mxu1 %v5617_v47 }
 0x4a4   :  { %4770 = vmatmul.mubr.msk.bf16.gmra.mrb[120].mxu1 %vm2558_vm4, %v6802_v27 }
 0x4a5   :  { %2955 = vmatprep.mubr.bf16.mxu1 %v5696_v1  ;;  %3084 = vmatpush1.bf16.msra.mxu1 %v5615_v7 }
 0x4a6   :  { %4796 = vmatprep.subr.msk.bf16.mxu1 %vm2574_vm3, %v4795_v43 }
 0x4a9   :  { %3086 = vmatpush1.bf16.msra.mxu1 %v3070_v38 }
 0x4aa   :  { %3253 = vmatprep.subr.bf16.mxu1 %v5622_v54 }
 0x4ac   :  { %4771 = vmatmul.mubr.msk.bf16.gmra.mrb[124].mxu1 %vm2558_vm4, %v6816_v2 }
 0x4ad   :  { %2965 = vmatprep.mubr.bf16.mxu1 %v5696_v1 }
 0x4b4   :  { %4772 = vmatmul.mubr.msk.bf16.gmra.mrb[128].mxu1 %vm2558_vm4, %v6830_v37 }
 0x4b5   :  { %3107 = vmatprep.mubr.bf16.mxu1 %v5696_v1 }
 0x4bc   :  { %4797 = vmatmul.mubr.msk.bf16.vlgmr.msra.gmra.mrb[112].mxu1 %vm2558_vm4, %v6787_v39  ;;  %v5631_v39 = vld [vmem:[%s7349_s5 + $0x194] ss:$8 sps:$4 sm:$0xff]  }
 0x4bd   :  { %3254 = vmatpush1.bf16.msra.mxu1 %v5620_v4  ;;  %3117 = vmatprep.mubr.bf16.mxu1 %v5696_v1 }
 0x4be   :  { %3255 = vmatprep.subr.bf16.mxu1 %v5625_v48 }
 0x4c1   :  { %3256 = vmatpush1.bf16.msra.mxu1 %v5623_v55 }
 0x4c2   :  { %3257 = vmatprep.subr.bf16.mxu1 %v5628_v51 }
 0x4c4   :  { %4798 = vmatmul.mubr.msk.bf16.gmra.mrb[116].mxu1 %vm2558_vm4, %v6806_v20  ;;  %v5632_v20 = vld [vmem:[%s7349_s5 + $0x1a0] ss:$8 sps:$4 sm:$0xff]  }
 0x4c5   :  { %3127 = vmatprep.mubr.bf16.mxu1 %v5696_v1  ;;  %3258 = vmatpush1.bf16.msra.mxu1 %v5626_v9 }
 0x4c6   :  { %3259 = vmatprep.subr.bf16.mxu1 %v5631_v39  ;;  %v5650_v39 = vld [vmem:[%s7351_s8 + $0x18] sm:$0xff]  }
 0x4c9   :  { %3260 = vmatpush1.bf16.msra.mxu1 %v5629_v63 }
 0x4ca   :  { %3261 = vmatprep.subr.bf16.mxu1 %v5634_v6 }
 0x4cc   :  { %4799 = vmatmul.mubr.msk.bf16.gmra.mrb[120].mxu1 %vm2558_vm4, %v6820_v45  ;;  %v5637_v45 = vld [vmem:[%s7350_s7] sm:$0xff]  }
 0x4cd   :  { %3137 = vmatprep.mubr.bf16.mxu1 %v5696_v1  ;;  %3262 = vmatpush1.bf16.msra.mxu1 %v5632_v20 }
 0x4ce   :  { %4825 = vmatprep.subr.msk.bf16.mxu1 %vm2574_vm3, %v4824_v17 }
 0x4d1   :  { %3264 = vmatpush1.bf16.msra.mxu1 %v3248_v57 }
 0x4d2   :  { %3514 = vmatprep.subr.bf16.mxu1 %v5696_v1 }
 0x4d4   :  { %4800 = vmatmul.mubr.msk.bf16.gmra.mrb[124].mxu1 %vm2558_vm4, %v6834_v49  ;;  %v5638_v49 = vld [vmem:[%s7350_s7 + $0x8] sm:$0xff]  }
 0x4d5   :  { %3147 = vmatprep.mubr.bf16.mxu1 %v5696_v1 }
 0x4dc   :  { %4801 = vmatmul.mubr.msk.bf16.gmra.mrb[128].mxu1 %vm2558_vm4, %v6867_v41 }
 0x4dd   :  { %3285 = vmatprep.mubr.bf16.mxu1 %v5696_v1 }
 0x4e4   :  { %4826 = vmatmul.mubr.msk.bf16.vlgmr.msra.gmra.mrb[112].mxu1 %vm2558_vm4, %v6780_v40  ;;  %v5640_v40 = vld [vmem:[%s7350_s7 + $0x18] sm:$0xff]  }
 0x4e5   :  { %3295 = vmatprep.mubr.bf16.mxu1 %v5696_v1  ;;  %3515 = vmatpush1.bf16.msra.mxu1 %v5637_v45  ;;  %v5651_v45 = vld [vmem:[%s7351_s8 + $0x20] sm:$0xff]  }
 0x4e6   :  { %3516 = vmatprep.subr.bf16.mxu1 %v5696_v1 }
 0x4e9   :  { %3517 = vmatpush1.bf16.msra.mxu1 %v5638_v49 }
 0x4ea   :  { %3518 = vmatprep.subr.bf16.mxu1 %v5696_v1 }
 0x4ec   :  { %4827 = vmatmul.mubr.msk.bf16.gmra.mrb[116].mxu1 %vm2558_vm4, %v6802_v27  ;;  %v5642_v27 = vld [vmem:[%s7350_s7 + $0x28] sm:$0xff]  }
 0x4ed   :  { %3305 = vmatprep.mubr.bf16.mxu1 %v5696_v1  ;;  %3519 = vmatpush1.bf16.msra.mxu1 %v5639_v35 }
 0x4ee   :  { %3520 = vmatprep.subr.bf16.mxu1 %v5696_v1 }
 0x4f1   :  { %3521 = vmatpush1.bf16.msra.mxu1 %v5640_v40 }
 0x4f2   :  { %3522 = vmatprep.subr.bf16.mxu1 %v5696_v1 }
 0x4f4   :  { %4828 = vmatmul.mubr.msk.bf16.gmra.mrb[120].mxu1 %vm2558_vm4, %v6816_v2  ;;  %v5644_v2 = vld [vmem:[%s7350_s7 + $0x38] sm:$0xff]  }
 0x4f5   :  { %3315 = vmatprep.mubr.bf16.mxu1 %v5696_v1  ;;  %3523 = vmatpush1.bf16.msra.mxu1 %v5641_v5 }
 0x4f6   :  { %3524 = vmatprep.subr.bf16.mxu1 %v5696_v1 }
 0x4f9   :  { %3525 = vmatpush1.bf16.msra.mxu1 %v5642_v27 }
 0x4fa   :  { %3526 = vmatprep.subr.bf16.mxu1 %v5696_v1 }
 0x4fc   :  { %4829 = vmatmul.mubr.msk.bf16.gmra.mrb[124].mxu1 %vm2558_vm4, %v6830_v37  ;;  %v5646_v37 = vld [vmem:[%s7350_s7 + $0x48] sm:$0xff]  }
 0x4fd   :  { %3325 = vmatprep.mubr.bf16.mxu1 %v5696_v1  ;;  %3527 = vmatpush1.bf16.msra.mxu1 %v5643_v59 }
 0x4fe   :  { %3528 = vmatprep.subr.bf16.mxu1 %v5696_v1 }
 0x501   :  { %3529 = vmatpush1.bf16.msra.mxu1 %v5644_v2 }
 0x502   :  { %3530 = vmatprep.subr.bf16.mxu1 %v5696_v1 }
 0x504   :  { %4830 = vmatmul.mubr.msk.bf16.gmra.mrb[128].mxu1 %vm2558_vm4, %v6857_v25 }
 0x505   :  { %3531 = vmatpush1.bf16.msra.mxu1 %v5645_v12  ;;  %v5652_v12 = vld [vmem:[%s7351_s8 + $0x28] sm:$0xff]  }
 0x506   :  { %3532 = vmatprep.subr.bf16.mxu1 %v5696_v1 }
 0x509   :  { %3533 = vmatpush1.bf16.msra.mxu1 %v5646_v37 }
 0x50a   :  { %3667 = vmatprep.subr.bf16.mxu1 %v5696_v1 }
 0x5b7   :  { %v3287_v44 = vpop.f32.mrb[112].mxu1 }
 0x5b8   :  { %v3368_v22 = vadd.f32 %v7064_v18, %v3287_v44  ;;  %v3289_v26 = vpop.f32.mrb[113].mxu1 }
 0x5b9   :  { %v3369_v3 = vadd.f32 %v7068_v24, %v3289_v26  ;;  %v3291_v25 = vpop.f32.mrb[114].mxu1 }
 0x5ba   :  { %v3370_v13 = vadd.f32 %v7064_v18, %v3291_v25  ;;  %v3293_v28 = vpop.f32.mrb[115].mxu1  ;;  %v3388_v41 = vmax.f32 %v3368_v22, 0.0 }
 0x5bb   :  { %v3371_v31 = vadd.f32 %v7068_v24, %v3293_v28  ;;  %v3389_v0 = vmax.f32 %v3369_v3, 0.0  ;;  %v5653_v3 = vld [vmem:[%s7351_s8 + $0x30] sm:$0xff]  }
 0x5bc   :  { %v3390_v56 = vmax.f32 %v3370_v13, 0.0 }
 0x5bd   :  { %v3391_v46 = vmax.f32 %v3371_v31, 0.0 }
 0x5be   :  { %v7074_v50 = vpack.c.bf16 %v3390_v56, %v3388_v41 }
 0x5bf   :  { %v7076_v60 = vpack.c.bf16 %v3391_v46, %v3389_v0  ;;  %v3297_v15 = vpop.f32.mrb[116].mxu1  ;;  %v5654_v46 = vld [vmem:[%s7351_s8 + $0x38] sm:$0xff]  }
 0x5c0   :  { %v3372_v29 = vadd.f32 %v7064_v18, %v3297_v15  ;;  %v3299_v33 = vpop.f32.mrb[117].mxu1 }
 0x5c1   :  { %v3373_v58 = vadd.f32 %v7068_v24, %v3299_v33  ;;  %v3301_v8 = vpop.f32.mrb[118].mxu1  ;;  %4841 = vmatprep.mubr.msk.bf16.mxu1 %vm3498_vm5, %v7076_v60 }
 0x5c2   :  { %v3374_v11 = vadd.f32 %v7064_v18, %v3301_v8  ;;  %v3303_v32 = vpop.f32.mrb[119].mxu1  ;;  %3547 = vmatmul.mubr.bf16.vlgmr.msra.gmra.mrb[132].mxu1 %v7074_v50  ;;  %v3392_v42 = vmax.f32 %v3372_v29, 0.0 }
 0x5c3   :  { %v3375_v19 = vadd.f32 %v7068_v24, %v3303_v32  ;;  %3668 = vmatpush1.bf16.msra.mxu1 %v5647_v16  ;;  %v3393_v36 = vmax.f32 %v3373_v58, 0.0  ;;  %v5663_v32 = vld [vmem:[%s7352_s9 + $0x68] sm:$0xff]  }
 0x5c4   :  { %v3394_v62 = vmax.f32 %v3374_v11, 0.0  ;;  %3669 = vmatprep.subr.bf16.mxu1 %v5696_v1  ;;  %v5662_v11 = vld [vmem:[%s7352_s9 + $0x38] sm:$0xff]  }
 0x5c5   :  { %v3395_v47 = vmax.f32 %v3375_v19, 0.0  ;;  %v5664_v19 = vld [vmem:[%s7352_s9 + $0x40] sm:$0xff]  }
 0x5c6   :  { %v7092_v30 = vpack.c.bf16 %v3394_v62, %v3392_v42  ;;  %v5667_v42 = vld [vmem:[%s7352_s9 + $0x70] sm:$0xff]  }
 0x5c7   :  { %v7094_v7 = vpack.c.bf16 %v3395_v47, %v3393_v36  ;;  %v3307_v43 = vpop.f32.mrb[120].mxu1  ;;  %3670 = vmatpush1.bf16.msra.mxu1 %v5648_v14  ;;  %v5665_v14 = vld [vmem:[%s7352_s9 + $0x48] sm:$0xff]  }
 0x5c8   :  { %v3376_v38 = vadd.f32 %v7064_v18, %v3307_v43  ;;  %v3309_v54 = vpop.f32.mrb[121].mxu1  ;;  %3671 = vmatprep.subr.bf16.mxu1 %v5696_v1 }
 0x5c9   :  { %v3377_v4 = vadd.f32 %v7068_v24, %v3309_v54  ;;  %v3311_v48 = vpop.f32.mrb[122].mxu1  ;;  %4842 = vmatprep.mubr.msk.bf16.mxu1 %vm3498_vm5, %v7094_v7 }
 0x5ca   :  { %v3378_v55 = vadd.f32 %v7064_v18, %v3311_v48  ;;  %v3313_v51 = vpop.f32.mrb[123].mxu1  ;;  %3555 = vmatmul.mubr.bf16.gmra.mrb[136].mxu1 %v7092_v30  ;;  %v3396_v63 = vmax.f32 %v3376_v38, 0.0 }
 0x5cb   :  { %v3379_v9 = vadd.f32 %v7068_v24, %v3313_v51  ;;  %3672 = vmatpush1.bf16.msra.mxu1 %v5649_v34  ;;  %v3397_v10 = vmax.f32 %v3377_v4, 0.0 }
 0x5cc   :  { %v3398_v6 = vmax.f32 %v3378_v55, 0.0  ;;  %3673 = vmatprep.subr.bf16.mxu1 %v5696_v1 }
 0x5cd   :  { %v3399_v20 = vmax.f32 %v3379_v9, 0.0 }
 0x5ce   :  { %v3412_v17 = vpack.c.bf16 %v3398_v6, %v3396_v63 }
 0x5cf   :  { %v3413_v21 = vpack.c.bf16 %v3399_v20, %v3397_v10  ;;  %v3317_v57 = vpop.f32.mrb[124].mxu1  ;;  %3674 = vmatpush1.bf16.msra.mxu1 %v5650_v39 }
 0x5d0   :  { %v3380_v49 = vadd.f32 %v7064_v18, %v3317_v57  ;;  %v3319_v35 = vpop.f32.mrb[125].mxu1  ;;  %3675 = vmatprep.subr.bf16.mxu1 %v5696_v1 }
 0x5d1   :  { %v3381_v40 = vadd.f32 %v7068_v24, %v3319_v35  ;;  %v3321_v5 = vpop.f32.mrb[126].mxu1  ;;  %4843 = vmatprep.mubr.msk.bf16.mxu1 %vm3498_vm5, %v3413_v21 }
 0x5d2   :  { %v3382_v27 = vadd.f32 %v7064_v18, %v3321_v5  ;;  %v3323_v59 = vpop.f32.mrb[127].mxu1  ;;  %3563 = vmatmul.mubr.bf16.gmra.mrb[140].mxu1 %v3412_v17  ;;  %v3400_v37 = vmax.f32 %v3380_v49, 0.0 }
 0x5d3   :  { %v3383_v2 = vadd.f32 %v7068_v24, %v3323_v59  ;;  %3676 = vmatpush1.bf16.msra.mxu1 %v5651_v45  ;;  %v3401_v61 = vmax.f32 %v3381_v40, 0.0 }
 0x5d4   :  { %v3402_v53 = vmax.f32 %v3382_v27, 0.0  ;;  %3677 = vmatprep.subr.bf16.mxu1 %v5696_v1 }
 0x5d5   :  { %v3403_v23 = vmax.f32 %v3383_v2, 0.0 }
 0x5d6   :  { %v3414_v44 = vpack.c.bf16 %v3402_v53, %v3400_v37 }
 0x5d7   :  { %v3415_v22 = vpack.c.bf16 %v3403_v23, %v3401_v61  ;;  %v3327_v26 = vpop.f32.mrb[128].mxu1  ;;  %3678 = vmatpush1.bf16.msra.mxu1 %v5652_v12 }
 0x5d8   :  { %v3384_v25 = vadd.f32 %v7064_v18, %v3327_v26  ;;  %v3329_v13 = vpop.f32.mrb[129].mxu1  ;;  %3679 = vmatprep.subr.bf16.mxu1 %v5696_v1 }
 0x5d9   :  { %v3385_v28 = vadd.f32 %v7068_v24, %v3329_v13  ;;  %v3331_v31 = vpop.f32.mrb[130].mxu1  ;;  %4844 = vmatprep.mubr.msk.bf16.mxu1 %vm3498_vm5, %v3415_v22 }
 0x5da   :  { %v3386_v41 = vadd.f32 %v7064_v18, %v3331_v31  ;;  %v3333_v56 = vpop.f32.mrb[131].mxu1  ;;  %3571 = vmatmul.mubr.bf16.gmra.mrb[144].mxu1 %v3414_v44  ;;  %v3404_v15 = vmax.f32 %v3384_v25, 0.0  ;;  %v5655_v18 = vld [vmem:[%s7351_s8 + $0x40] sm:$0xff]  }
 0x5db   :  { %v3387_v0 = vadd.f32 %v7068_v24, %v3333_v56  ;;  %3680 = vmatpush1.bf16.msra.mxu1 %v5653_v3  ;;  %v3405_v29 = vmax.f32 %v3385_v28, 0.0  ;;  %v5656_v24 = vld [vmem:[%s7351_s8 + $0x48] sm:$0xff]  }
 0x5dc   :  { %v3406_v16 = vmax.f32 %v3386_v41, 0.0  ;;  %3681 = vmatprep.subr.bf16.mxu1 %v5696_v1 }
 0x5dd   :  { %v3407_v33 = vmax.f32 %v3387_v0, 0.0 }
 0x5de   :  { %v3416_v58 = vpack.c.bf16 %v3406_v16, %v3404_v15  ;;  %v5666_v15 = vld [vmem:[%s7352_s9] sm:$0xff]  }
 0x5df   :  { %v3417_v8 = vpack.c.bf16 %v3407_v33, %v3405_v29  ;;  %3682 = vmatpush1.bf16.msra.mxu1 %v5654_v46 }
 0x5e0   :  { %3683 = vmatprep.subr.bf16.mxu1 %v5696_v1 }
 0x5e1   :  { %4845 = vmatprep.mubr.msk.bf16.mxu1 %vm3498_vm5, %v3417_v8 }
 0x5e2   :  { %3579 = vmatmul.mubr.bf16.gmra.mrb[148].mxu1 %v3416_v58 }
 0x5e3   :  { %3684 = vmatpush1.bf16.msra.mxu1 %v5655_v18  ;;  %4856 = vmatprep.mubr.msk.bf16.mxu1 %vm3498_vm5, %v7076_v60  ;;  %v5661_v60 = vld [vmem:[%s7352_s9 + $0x30] sm:$0xff]  }
 0x5e4   :  { %3685 = vmatprep.subr.bf16.mxu1 %v5696_v1  ;;  %v5659_v1 = vld [vmem:[%s7352_s9 + $0x60] sm:$0xff]  }
 0x5e5   :  { %5029 = vmatpush3.bf16.msra.mxu0 %v5659_v1 }
 0x5e6   :  { %5030 = vmatprep.subr.bf16.mxu0 %v5697_v52 }
 0x5e7   :  { %3686 = vmatpush1.bf16.msra.mxu1 %v5656_v24 }
 0x5e8   :  { %4996 = vmatprep.subr.bf16.mxu1 %v5697_v52 }
 0x5e9   :  { %5031 = vmatpush3.bf16.msra.mxu0 %v5663_v32 }
 0x5ea   :  { %3700 = vmatmul.mubr.bf16.vlgmr.msra.gmra.mrb[152].mxu1 %v7074_v50  ;;  %v5660_v50 = vld [vmem:[%s7352_s9 + $0x28] sm:$0xff]   ;;  %5032 = vmatprep.subr.bf16.mxu0 %v5697_v52 }
 0x5eb   :  { %4857 = vmatprep.mubr.msk.bf16.mxu1 %vm3498_vm5, %v7094_v7  ;;  %4997 = vmatpush3.bf16.msra.mxu1 %v5660_v50 }
 0x5ec   :  { %4998 = vmatprep.subr.bf16.mxu1 %v5697_v52 }
 0x5ed   :  { %5033 = vmatpush3.bf16.msra.mxu0 %v5667_v42 }
 0x5ee   :  { %5052 = vmatprep.subr.bf16.mxu0 %v5697_v52 }
 0x5ef   :  { %4999 = vmatpush3.bf16.msra.mxu1 %v5661_v60  ;;  %v5669_v60 = vld [vmem:[%s7352_s9 + $0x10] sm:$0xff]  }
 0x5f0   :  { %5000 = vmatprep.subr.bf16.mxu1 %v5697_v52 }
 0x5f2   :  { %3708 = vmatmul.mubr.bf16.gmra.mrb[156].mxu1 %v7092_v30 }
 0x5f3   :  { %4858 = vmatprep.mubr.msk.bf16.mxu1 %vm3498_vm5, %v3413_v21  ;;  %5001 = vmatpush3.bf16.msra.mxu1 %v5662_v11 }
 0x5f4   :  { %5002 = vmatprep.subr.bf16.mxu1 %v5697_v52 }
 0x5f7   :  { %5003 = vmatpush3.bf16.msra.mxu1 %v5664_v19 }
 0x5f8   :  { %5004 = vmatprep.subr.bf16.mxu1 %v5697_v52 }
 0x5fa   :  { %3716 = vmatmul.mubr.bf16.gmra.mrb[160].mxu1 %v3412_v17 }
 0x5fb   :  { %4859 = vmatprep.mubr.msk.bf16.mxu1 %vm3498_vm5, %v3415_v22  ;;  %5005 = vmatpush3.bf16.msra.mxu1 %v5665_v14 }
 0x5fc   :  { %5010 = vmatprep.subr.bf16.mxu1 %v5697_v52 }
 0x602   :  { %3724 = vmatmul.mubr.bf16.gmra.mrb[164].mxu1 %v3414_v44 }
 0x603   :  { %4860 = vmatprep.mubr.msk.bf16.mxu1 %vm3498_vm5, %v3417_v8  ;;  %v5668_v8 = vld [vmem:[%s7352_s9 + $0x8] sm:$0xff]  }
 0x60a   :  { %3732 = vmatmul.mubr.bf16.gmra.mrb[168].mxu1 %v3416_v58 }
 0x60b   :  { %5006 = vmatprep.mubr.msk.bf16.mxu1 %vm5698_vm6, %v5697_v52 }
 0x695   :  { %v3548_v62 = vpop.f32.mrb[132].mxu1 }
 0x696   :  { %v3550_v36 = vpop.f32.mrb[133].mxu1 }
 0x697   :  { %v3551_v47 = vpop.f32.mrb[134].mxu1  ;;  %v5670_v36 = vld [vmem:[%s7352_s9 + $0x18] sm:$0xff]  }
 0x698   :  { %v3553_v30 = vpop.f32.mrb[135].mxu1 }
 0x69d   :  { %v3556_v7 = vpop.f32.mrb[136].mxu1 }
 0x69e   :  { %v3558_v43 = vpop.f32.mrb[137].mxu1 }
 0x69f   :  { %v3559_v34 = vpop.f32.mrb[138].mxu1 }
 0x6a0   :  { %v3561_v38 = vpop.f32.mrb[139].mxu1 }
 0x6a1   :  { %v5671_v38 = vld [vmem:[%s7352_s9 + $0xa0] sm:$0xff]  }
 0x6a5   :  { %v3564_v54 = vpop.f32.mrb[140].mxu1 }
 0x6a6   :  { %v3566_v4 = vpop.f32.mrb[141].mxu1 }
 0x6a7   :  { %v3567_v48 = vpop.f32.mrb[142].mxu1 }
 0x6a8   :  { %v3569_v55 = vpop.f32.mrb[143].mxu1 }
 0x6a9   :  { %v5673_v55 = vld [vmem:[%s7352_s9 + $0xa8] sm:$0xff]  }
 0x6ad   :  { %v3572_v51 = vpop.f32.mrb[144].mxu1 }
 0x6ae   :  { %v3574_v9 = vpop.f32.mrb[145].mxu1 }
 0x6af   :  { %v3575_v39 = vpop.f32.mrb[146].mxu1  ;;  %v5675_v9 = vld [vmem:[%s7352_s9 + $0xb0] sm:$0xff]  }
 0x6b0   :  { %v3577_v63 = vpop.f32.mrb[147].mxu1 }
 0x6b1   :  { %v5677_v63 = vld [vmem:[%s7352_s9 + $0xb8] sm:$0xff]  }
 0x6b5   :  { %v7192_v6 = vpop.f32.mrb[148].mxu1 }
 0x6b6   :  { %v3582_v10 = vpop.f32.mrb[149].mxu1 }
 0x6b7   :  { %v7194_v20 = vpop.f32.mrb[150].mxu1  ;;  %v5679_v10 = vld [vmem:[%s7352_s9 + $0xc0] sm:$0xff]  }
 0x6b8   :  { %v3585_v17 = vpop.f32.mrb[151].mxu1 }
 0x6b9   :  { %v5680_v17 = vld [vmem:[%s7352_s9 + $0x90] sm:$0xff]  }
 0x6bd   :  { %v3701_v21 = vpop.f32.mrb[152].mxu1 }
 0x6be   :  { %v3740_v57 = vmax.f32 %v3548_v62, %v3701_v21  ;;  %v3703_v45 = vpop.f32.mrb[153].mxu1 }
 0x6bf   :  { %v3704_v49 = vpop.f32.mrb[154].mxu1 }
 0x6c0   :  { %v3741_v35 = vmax.f32 %v3551_v47, %v3704_v49  ;;  %v3706_v40 = vpop.f32.mrb[155].mxu1  ;;  %v5682_v49 = vld [vmem:[%s7354_s11] sm:$0xff]  }
 0x6c1   :  { %v5684_v40 = vld [vmem:[%s7354_s11 + $0x10] sm:$0xff]  }
 0x6c2   :  { %v3750_v5 = vpack.c.bf16 %v3741_v35, %v3740_v57  ;;  %v5681_v57 = vld [vmem:[%s7352_s9 + $0x98] sm:$0xff]   ;;  %v5683_v35 = vld [vmem:[%s7354_s11 + $0x8] sm:$0xff]  }
 0x6c4   :  { %v3756_v23 = vrot.slane %v3750_v5, 4 }
 0x6c5   :  { %v3709_v27 = vpop.f32.mrb[156].mxu1 }
 0x6c6   :  { %v3742_v59 = vmax.f32 %v3556_v7, %v3709_v27  ;;  %v3711_v2 = vpop.f32.mrb[157].mxu1  ;;  %v3758_v28 = vmax.bf16 %v3756_v23, %v3750_v5  ;;  %v5685_v5 = vld [vmem:[%s7354_s11 + $0x18] sm:$0xff]   ;;  %v5686_v27 = vld [vmem:[%s7354_s11 + $0x20] sm:$0xff]   ;;  %v5692_v23 = vld [vmem:[%s7355_s13 + $0x10] sm:$0xff]  }
 0x6c7   :  { %v3712_v12 = vpop.f32.mrb[158].mxu1  ;;  %v5688_v2 = vld [vmem:[%s7354_s11 + $0x30] sm:$0xff]  }
 0x6c8   :  { %v3743_v37 = vmax.f32 %v3559_v34, %v3712_v12  ;;  %v3714_v53 = vpop.f32.mrb[159].mxu1  ;;  %v5689_v12 = vld [vmem:[%s7354_s11 + $0x38] ss:$0 sps:$4 sm:$0xff]  }
 0x6c9   :  { %v5690_v53 = vld [vmem:[%s7355_s13] sm:$0xff]  }
 0x6ca   :  { %v3751_v61 = vpack.c.bf16 %v3743_v37, %v3742_v59  ;;  %v5687_v59 = vld [vmem:[%s7354_s11 + $0x28] sm:$0xff]   ;;  %v4292_v37 = vsel %vm1948_vm1, %v5689_v12, 0 }
 0x6cc   :  { %v3760_v44 = vrot.slane %v3751_v61, 4 }
 0x6cd   :  { %v3717_v22 = vpop.f32.mrb[160].mxu1 }
 0x6ce   :  { %v3762_v26 = vmax.bf16 %v3760_v44, %v3751_v61  ;;  %v3744_v3 = vmax.f32 %v3564_v54, %v3717_v22  ;;  %v3719_v25 = vpop.f32.mrb[161].mxu1  ;;  %v5691_v61 = vld [vmem:[%s7355_s13 + $0x8] sm:$0xff]   ;;  %v5693_v44 = vld [vmem:[%s7355_s13 + $0x18] sm:$0xff]  }
 0x6cf   :  { %v3720_v13 = vpop.f32.mrb[162].mxu1 }
 0x6d0   :  { %v3776_v31 = vrot.slane %v3762_v26, 4  ;;  %v3745_v41 = vmax.f32 %v3567_v48, %v3720_v13  ;;  %v3722_v56 = vpop.f32.mrb[163].mxu1  ;;  %v5672_v48 = vld [vmem:[%s7352_s9 + $0x20] sm:$0xff]  }
 0x6d2   :  { %v3781_v0 = vsel %vm1948_vm1, %v3758_v28, %v3776_v31  ;;  %v3752_v46 = vpack.c.bf16 %v3745_v41, %v3744_v3 }
 0x6d3   :  { %v3807_v16 = vrot.slane %v3781_v0, 4 }
 0x6d4   :  { %v3764_v11 = vrot.slane %v3752_v46, 4 }
 0x6d5   :  { %v3725_v29 = vpop.f32.mrb[164].mxu1  ;;  %5007 = vmatmul.mubr.msk.bf16.vlgmr.msra.gmra.mrb[172].mxu1 %vm3838_vm7, %v3807_v16 }
 0x6d6   :  { %v3746_v33 = vmax.f32 %v3572_v51, %v3725_v29  ;;  %5011 = vmatpush3.bf16.msra.mxu1 %v5666_v15  ;;  %v3727_v58 = vpop.f32.mrb[165].mxu1  ;;  %5020 = vmatprep.mubr.msk.bf16.mxu1 %vm5698_vm6, %v5697_v52  ;;  %v3766_v30 = vmax.bf16 %v3764_v11, %v3752_v46  ;;  %v5674_v51 = vld [vmem:[%s7352_s9 + $0x78] sm:$0xff]  }
 0x6d7   :  { %v3728_v18 = vpop.f32.mrb[166].mxu1  ;;  %5012 = vmatprep.subr.bf16.mxu1 %v5697_v52 }
 0x6d8   :  { %v3747_v24 = vmax.f32 %v3575_v39, %v3728_v18  ;;  %v3730_v1 = vpop.f32.mrb[167].mxu1  ;;  %v5676_v39 = vld [vmem:[%s7352_s9 + $0x80] sm:$0xff]  }
 0x6da   :  { %v3753_v50 = vpack.c.bf16 %v3747_v24, %v3746_v33  ;;  %5013 = vmatpush3.bf16.msra.mxu1 %v5668_v8 }
 0x6db   :  { %5014 = vmatprep.subr.bf16.mxu1 %v5697_v52 }
 0x6dc   :  { %v3768_v32 = vrot.slane %v3753_v50, 4 }
 0x6dd   :  { %v3733_v19 = vpop.f32.mrb[168].mxu1 }
 0x6de   :  { %v3770_v14 = vmax.bf16 %v3768_v32, %v3753_v50  ;;  %v3748_v42 = vmax.f32 %v7192_v6, %v3733_v19  ;;  %5015 = vmatpush3.bf16.msra.mxu1 %v5669_v60  ;;  %v3735_v62 = vpop.f32.mrb[169].mxu1  ;;  %v5678_v6 = vld [vmem:[%s7352_s9 + $0x88] sm:$0xff]   ;;  %v4931_v60 = vld [vmem:[%s7356_s10] ss:$0 sm:$0xff] }
 0x6df   :  { %v3736_v47 = vpop.f32.mrb[170].mxu1  ;;  %5016 = vmatprep.subr.bf16.mxu1 %v5697_v52 }
 0x6e0   :  { %v3778_v7 = vrot.slane %v3770_v14, 4  ;;  %v3749_v43 = vmax.f32 %v7194_v20, %v3736_v47  ;;  %v3738_v34 = vpop.f32.mrb[171].mxu1  ;;  %v5695_v47 = vld [vmem:[%s7355_s13 + $0x28] ss:$0 sps:$4 sm:$0x33]  }
 0x6e2   :  { %v3754_v54 = vpack.c.bf16 %v3749_v43, %v3748_v42  ;;  %5017 = vmatpush3.bf16.msra.mxu1 %v5670_v36  ;;  %v3784_v4 = vsel %vm1948_vm1, %v3766_v30, %v3778_v7  ;;  %v5694_v36 = vld [vmem:[%s7355_s13 + $0x20] sm:$0xff]   ;;  %v4391_v30 = vsel %vm2574_vm3, %v5695_v47, 0 }
 0x6e3   :  { %5035 = vmatmul.mubr.msk.bf16.vlgmr.msra.gmra.mrb[56].mxu0 %vm3838_vm7, %v3784_v4  ;;  %5018 = vmatprep.subr.bf16.mxu1 %v5697_v52  ;;  %v4050_v45 = vrot.slane %v3784_v4, 4  ;;  %v4932_v7 = vld [vmem:[%s7357_s12] ss:$0 sm:$0xff] }
 0x6e4   :  { %5053 = vmatpush3.bf16.msra.mxu0 %v5671_v38  ;;  %5062 = vmatprep.mubr.msk.bf16.mxu0 %vm5698_vm6, %v5697_v52  ;;  %v3772_v20 = vrot.slane %v3754_v54, 4 }
 0x6e5   :  { %5054 = vmatprep.subr.bf16.mxu0 %v5697_v52 }
 0x6e6   :  { %5019 = vmatpush3.bf16.msra.mxu1 %v5672_v48  ;;  %v3774_v21 = vmax.bf16 %v3772_v20, %v3754_v54 }
 0x6e7   :  { %5038 = vmatprep.subr.bf16.mxu1 %v5697_v52 }
 0x6e8   :  { %5055 = vmatpush3.bf16.msra.mxu0 %v5673_v55 }
 0x6e9   :  { %5021 = vmatmul.mubr.msk.bf16.vlgmr.msra.gmra.mrb[176].mxu1 %vm3838_vm7, %v3781_v0  ;;  %5056 = vmatprep.subr.bf16.mxu0 %v5697_v52 }
 0x6ea   :  { %5039 = vmatpush3.bf16.msra.mxu1 %v5674_v51  ;;  %5048 = vmatprep.mubr.msk.bf16.mxu1 %vm5698_vm6, %v5697_v52 }
 0x6eb   :  { %5040 = vmatprep.subr.bf16.mxu1 %v5697_v52 }
 0x6ec   :  { %5057 = vmatpush3.bf16.msra.mxu0 %v5675_v9 }
 0x6ed   :  { %5058 = vmatprep.subr.bf16.mxu0 %v5697_v52 }
 0x6ee   :  { %5041 = vmatpush3.bf16.msra.mxu1 %v5676_v39 }
 0x6ef   :  { %5042 = vmatprep.subr.bf16.mxu1 %v5697_v52 }
 0x6f0   :  { %5059 = vmatpush3.bf16.msra.mxu0 %v5677_v63 }
 0x6f1   :  { %5060 = vmatprep.subr.bf16.mxu0 %v5697_v52 }
 0x6f2   :  { %5043 = vmatpush3.bf16.msra.mxu1 %v5678_v6 }
 0x6f3   :  { %5044 = vmatprep.subr.bf16.mxu1 %v5697_v52 }
 0x6f4   :  { %5061 = vmatpush3.bf16.msra.mxu0 %v5679_v10 }
 0x6f5   :  { %5086 = vmatprep.subr.bf16.mxu0 %v5697_v52 }
 0x6f6   :  { %5045 = vmatpush3.bf16.msra.mxu1 %v5680_v17 }
 0x6f7   :  { %5063 = vmatmul.mubr.msk.bf16.vlgmr.msra.gmra.mrb[60].mxu0 %vm3838_vm7, %v3774_v21  ;;  %5046 = vmatprep.subr.bf16.mxu1 %v5697_v52 }
 0x6f8   :  { %5098 = vmatprep.mubr.msk.bf16.mxu0 %vm5698_vm6, %v5697_v52  ;;  %5087 = vmatpush3.bf16.msra.mxu0 %v5690_v53 }
 0x6f9   :  { %5088 = vmatprep.subr.bf16.mxu0 %v5697_v52 }
 0x6fa   :  { %5047 = vmatpush3.bf16.msra.mxu1 %v5681_v57 }
 0x6fb   :  { %5066 = vmatprep.subr.bf16.mxu1 %v5697_v52 }
 0x6fc   :  { %5089 = vmatpush3.bf16.msra.mxu0 %v5691_v61 }
 0x6fd   :  { %5049 = vmatmul.mubr.msk.bf16.vlgmr.msra.gmra.mrb[180].mxu1 %vm3838_vm7, %v4050_v45  ;;  %5090 = vmatprep.subr.bf16.mxu0 %v5697_v52 }
 0x6fe   :  { %5082 = vmatprep.mubr.msk.bf16.mxu1 %vm5698_vm6, %v5697_v52  ;;  %5067 = vmatpush3.bf16.msra.mxu1 %v5682_v49 }
 0x6ff   :  { %5068 = vmatprep.subr.bf16.mxu1 %v5697_v52 }
 0x700   :  { %5091 = vmatpush3.bf16.msra.mxu0 %v5692_v23 }
 0x701   :  { %5092 = vmatprep.subr.bf16.mxu0 %v5697_v52 }
 0x702   :  { %5069 = vmatpush3.bf16.msra.mxu1 %v5683_v35 }
 0x703   :  { %5070 = vmatprep.subr.bf16.mxu1 %v5697_v52 }
 0x704   :  { %5093 = vmatpush3.bf16.msra.mxu0 %v5693_v44 }
 0x705   :  { %5094 = vmatprep.subr.bf16.mxu0 %v5697_v52 }
 0x706   :  { %5071 = vmatpush3.bf16.msra.mxu1 %v5684_v40 }
 0x707   :  { %5072 = vmatprep.subr.bf16.mxu1 %v5697_v52 }
 0x708   :  { %5095 = vmatpush3.bf16.msra.mxu0 %v5694_v36 }
 0x709   :  { %5096 = vmatprep.subr.bf16.mxu0 %v5697_v52 }
 0x70a   :  { %5073 = vmatpush3.bf16.msra.mxu1 %v5685_v5 }
 0x70b   :  { %5074 = vmatprep.subr.bf16.mxu1 %v5697_v52 }
 0x70c   :  { %5097 = vmatpush3.bf16.msra.mxu0 %v4391_v30 }
 0x70e   :  { %5075 = vmatpush3.bf16.msra.mxu1 %v5686_v27 }
 0x70f   :  { %5076 = vmatprep.subr.bf16.mxu1 %v5697_v52 }
 0x712   :  { %5077 = vmatpush3.bf16.msra.mxu1 %v5687_v59 }
 0x713   :  { %5078 = vmatprep.subr.bf16.mxu1 %v5697_v52 }
 0x716   :  { %5079 = vmatpush3.bf16.msra.mxu1 %v5688_v2 }
 0x717   :  { %5080 = vmatprep.subr.bf16.mxu1 %v5697_v52  ;;  %v4942_v52 = vld [vmem:[%s7358_s14] ss:$0 sm:$0xff] }
 0x71a   :  { %5081 = vmatpush3.bf16.msra.mxu1 %v4292_v37 }
 0x7a8   :  { %v3876_v22 = vpop.f32.mrb[172].mxu1 }
 0x7a9   :  { %v5008_v26 = vpop.f32.mrb[173].mxu1 }
 0x7aa   :  { %v3879_v3 = vpop.f32.mrb[174].mxu1 }
 0x7ab   :  { %v5009_v25 = vpop.f32.mrb[175].mxu1 }
 0x7b6   :  { %v4031_v13 = vpop.f32.mrb[56].mxu0 }
 0x7b7   :  { %v5036_v28 = vpop.f32.mrb[57].mxu0 }
 0x7b8   :  { %v4034_v31 = vpop.f32.mrb[58].mxu0 }
 0x7b9   :  { %v5037_v41 = vpop.f32.mrb[59].mxu0 }
 0x7bc   :  { %v3948_v56 = vpop.f32.mrb[176].mxu1 }
 0x7bd   :  { %v3949_v0 = vadd.f32 %v3948_v56, %v3876_v22  ;;  %v5022_v46 = vpop.f32.mrb[177].mxu1 }
 0x7be   :  { %v3951_v15 = vpop.f32.mrb[178].mxu1 }
 0x7bf   :  { %v5023_v16 = vpop.f32.mrb[179].mxu1  ;;  %v4037_v29 = vadd.f32 %v4031_v13, %v3949_v0 }
 0x7ca   :  { %v4203_v33 = vpop.f32.mrb[60].mxu0 }
 0x7cb   :  { %v5064_v58 = vpop.f32.mrb[61].mxu0 }
 0x7cc   :  { %v4206_v8 = vpop.f32.mrb[62].mxu0 }
 0x7cd   :  { %v5065_v18 = vpop.f32.mrb[63].mxu0 }
 0x7d0   :  { %v4118_v24 = vpop.f32.mrb[180].mxu1 }
 0x7d1   :  { %v4124_v1 = vadd.f32 %v4118_v24, %v4037_v29  ;;  %v5050_v50 = vpop.f32.mrb[181].mxu1 }
 0x7d2   :  { %v4121_v11 = vpop.f32.mrb[182].mxu1 }
 0x7d3   :  { %v4209_v32 = vadd.f32 %v4203_v33, %v4124_v1  ;;  %v5051_v19 = vpop.f32.mrb[183].mxu1 }
 0x7d5   :  { %v4217_v14 = vadd.f32 %v4931_v60, %v4209_v32 }
 0x7d7   :  { %v4218_v42 = vmax.f32 %v4217_v14, 0.0 }
 0x7d9   :  { %v4219_v62 = vpack.c.bf16 %v4218_v42, %v4218_v42 }
 0x7db   :  { %5083 = vmatmul.mubr.msk.bf16.vlgmr.msra.gmra.mrb[184].mxu1 %vm4287_vm8, %v4219_v62 }
 0x8ae   :  { %v4328_v43 = vpop.f32.mrb[184].mxu1 }
 0x8af   :  { %v4329_v34 = vadd.f32 %v4932_v7, %v4328_v43  ;;  %v5084_v38 = vpop.f32.mrb[185].mxu1 }
 0x8b0   :  { %v4331_v54 = vpop.f32.mrb[186].mxu1 }
 0x8b1   :  { %v4334_v4 = vmax.f32 %v4329_v34, 0.0  ;;  %v5085_v48 = vpop.f32.mrb[187].mxu1 }
 0x8b3   :  { %v4335_v55 = vpack.c.bf16 %v4334_v4, %v4334_v4 }
 0x8b5   :  { %5099 = vmatmul.mubr.msk.bf16.vlgmr.msra.gmra.mrb[64].mxu0 %vm2558_vm4, %v4335_v55 }
 0x988   :  { %v4427_v51 = vpop.f32.mrb[64].mxu0 }
 0x989   :  { %v4428_v9 = vadd.f32 %v4942_v52, %v4427_v51  ;;  %v5100_v39 = vpop.f32.mrb[65].mxu0 }
 0x98a   :  { %v4430_v63 = vpop.f32.mrb[66].mxu0 }
 0x98b   :  { %4433 = vst [vmem:[%s7359_s15] sm:$0xff] %v4428_v9  ;;  %v5101_v6 = vpop.f32.mrb[67].mxu0 }

</bundles_post_ra>
